<compile_context>
chip_gen: v5e
topology: v5e:2x2
jax: 0.10.0
libtpu: 0.0.40
codegen_flags: <defaults>
</compile_context>

<pallas_src>
import math
import jax
import jax.numpy as jnp
from jax.experimental import pallas as pl
from jax.experimental.pallas import tpu as pltpu  # noqa: F401  (TPU backend)

# ----------------------------- configuration -------------------------------
BATCH = 2
SEQ = 16
HIDDEN = 128          # scaled-down stand-in for 768
INTER = 512           # 4 * HIDDEN
HEADS = 4
HEAD_DIM = HIDDEN // HEADS
LAYERS = 2
VOCAB = 256
PAD_ID = 1
MAX_POS = SEQ + 2     # RoBERTa position offset (padding_idx=1)
TYPE_VOCAB = 2
LN_EPS = 1e-5
DTYPE = jnp.float32


# ------------------------------ Pallas kernels ------------------------------
def layernorm(x, gamma, beta, eps=LN_EPS):
    """Standalone LayerNorm over last axis (used for the embedding LN)."""
    M, H = x.shape

    def kernel(x_ref, g_ref, b_ref, o_ref):
        xv = x_ref[...]
        mu = jnp.mean(xv, axis=-1, keepdims=True)
        xc = xv - mu
        var = jnp.mean(xc * xc, axis=-1, keepdims=True)
        inv = jax.lax.rsqrt(var + eps)
        o_ref[...] = ((xc * inv) * g_ref[...] + b_ref[...]).astype(o_ref.dtype)

    return pl.pallas_call(
        kernel,
        out_shape=jax.ShapeDtypeStruct((M, H), x.dtype),
    )(x, gamma.reshape(1, H), beta.reshape(1, H))


def encoder_layer(x, key_bias, wqkv, bqkv, wo, bo, ln1_g, ln1_b,
                  wi, bi, wf, bf, ln2_g, ln2_b):
    """One fused RoBERTa encoder layer.

    x:        [M, H]  (M = B*S, token-major activations)
    key_bias: [B, 1, S] additive attention mask ((1-mask) * finfo.min)
    wqkv:     [H, 3H]  merged Q/K/V projection (one MXU pass, 384 output lanes)
    """
    M, H = x.shape
    B = key_bias.shape[0]
    S = key_bias.shape[2]
    D = H // HEADS
    scale = 1.0 / math.sqrt(D)
    c_gelu = math.sqrt(2.0 / math.pi)

    def kernel(x_ref, kb_ref, wqkv_ref, bqkv_ref, wo_ref, bo_ref,
               g1_ref, b1_ref, wi_ref, bi_ref, wf_ref, bf_ref,
               g2_ref, b2_ref, o_ref):
        xv = x_ref[...]                                            # [M, H]

        # ---- fused QKV projection: one matmul, 3H output lanes ----
        qkv = jnp.dot(xv, wqkv_ref[...],
                      preferred_element_type=jnp.float32) + bqkv_ref[...]

        bias = kb_ref[...]                                         # [B, 1, S]

        # ---- multi-head self-attention ----
        # concat-then-project  ==  sum_h ctx_h @ wo[h*D:(h+1)*D, :],
        # so no context concatenation / scratch is needed.
        attn = jnp.zeros((M, H), jnp.float32)
        for hd in range(HEADS):
            qh = qkv[:, hd * D:(hd + 1) * D].reshape(B, S, D)
            kh = qkv[:, H + hd * D:H + (hd + 1) * D].reshape(B, S, D)
            vh = qkv[:, 2 * H + hd * D:2 * H + (hd + 1) * D].reshape(B, S, D)
            # scores: contract head_dim, batch over B (no explicit K transpose)
            s = jax.lax.dot_general(
                qh, kh, (((2,), (2,)), ((0,), (0,))),
                preferred_element_type=jnp.float32) * scale + bias  # [B,S,S]
            s = s - jnp.max(s, axis=-1, keepdims=True)
            p = jnp.exp(s)
            p = p / jnp.sum(p, axis=-1, keepdims=True)
            ctx = jax.lax.dot_general(
                p, vh, (((2,), (1,)), ((0,), (0,))),
                preferred_element_type=jnp.float32)                 # [B,S,D]
            attn = attn + jnp.dot(ctx.reshape(M, D),
                                  wo_ref[hd * D:(hd + 1) * D, :],
                                  preferred_element_type=jnp.float32)
        attn = attn + bo_ref[...]
        # TODO(synk): attention-output dropout treated as eval-mode identity.

        def ln(v, g, b):
            mu = jnp.mean(v, axis=-1, keepdims=True)
            vc = v - mu
            var = jnp.mean(vc * vc, axis=-1, keepdims=True)
            return vc * jax.lax.rsqrt(var + LN_EPS) * g + b

        # ---- residual + LayerNorm1 ----
        h1 = ln(xv + attn, g1_ref[...], b1_ref[...])

        # ---- feed-forward ----
        inter = jnp.dot(h1, wi_ref[...],
                        preferred_element_type=jnp.float32) + bi_ref[...]
        # TODO(synk): tanh-approx GELU; HF RoBERTa uses exact erf GELU.
        inter = 0.5 * inter * (1.0 + jnp.tanh(
            c_gelu * (inter + 0.044715 * inter * inter * inter)))
        ffn = jnp.dot(inter, wf_ref[...],
                      preferred_element_type=jnp.float32) + bf_ref[...]
        # TODO(synk): FFN-output dropout treated as eval-mode identity.

        # ---- residual + LayerNorm2 ----
        o_ref[...] = ln(h1 + ffn, g2_ref[...], b2_ref[...]).astype(o_ref.dtype)

    return pl.pallas_call(
        kernel,
        out_shape=jax.ShapeDtypeStruct((M, H), x.dtype),
    )(x, key_bias,
      wqkv, bqkv.reshape(1, 3 * H),
      wo, bo.reshape(1, H),
      ln1_g.reshape(1, H), ln1_b.reshape(1, H),
      wi, bi.reshape(1, INTER),
      wf, bf.reshape(1, H),
      ln2_g.reshape(1, H), ln2_b.reshape(1, H))


def classifier_head(x, w_pre, b_pre, w_cls_row, b_cls):
    """Fused pre_classifier (tanh) + classifier: out = tanh(x@Wp+bp) @ wc + bc."""
    B, H = x.shape

    def kernel(x_ref, wp_ref, bp_ref, wc_ref, bc_ref, o_ref):
        h = jnp.dot(x_ref[...], wp_ref[...],
                    preferred_element_type=jnp.float32) + bp_ref[...]
        h = jnp.tanh(h)
        # TODO(synk): Dropout(0.3) treated as eval-mode identity.
        o_ref[...] = (jnp.sum(h * wc_ref[...], axis=-1, keepdims=True)
                      + bc_ref[...]).astype(o_ref.dtype)

    return pl.pallas_call(
        kernel,
        out_shape=jax.ShapeDtypeStruct((B, 1), x.dtype),
    )(x, w_pre, b_pre.reshape(1, H), w_cls_row.reshape(1, H),
      b_cls.reshape(1, 1))


# ------------------------------ parameter init ------------------------------
def init_params(key):
    std = 0.02
    keys = iter(jax.random.split(key, 256))

    def dense(fan_in, fan_out):
        w = jax.random.normal(next(keys), (fan_in, fan_out), DTYPE) * std
        b = jnp.zeros((fan_out,), DTYPE)
        return w, b

    p = {}
    p["word_emb"] = jax.random.normal(next(keys), (VOCAB, HIDDEN), DTYPE) * std
    p["pos_emb"] = jax.random.normal(next(keys), (MAX_POS, HIDDEN), DTYPE) * std
    p["type_emb"] = jax.random.normal(next(keys), (TYPE_VOCAB, HIDDEN), DTYPE) * std
    p["emb_ln_g"] = jnp.ones((HIDDEN,), DTYPE)
    p["emb_ln_b"] = jnp.zeros((HIDDEN,), DTYPE)

    p["layers"] = []
    for _ in range(LAYERS):
        lp = {}
        # merged Q/K/V projection == torch's three Linear(H, H) concatenated on out-dim
        lp["wqkv"], lp["bqkv"] = dense(HIDDEN, 3 * HIDDEN)
        lp["wo"], lp["bo"] = dense(HIDDEN, HIDDEN)
        lp["ln1_g"] = jnp.ones((HIDDEN,), DTYPE)
        lp["ln1_b"] = jnp.zeros((HIDDEN,), DTYPE)
        lp["wi"], lp["bi"] = dense(HIDDEN, INTER)
        lp["wf"], lp["bf"] = dense(INTER, HIDDEN)
        lp["ln2_g"] = jnp.ones((HIDDEN,), DTYPE)
        lp["ln2_b"] = jnp.zeros((HIDDEN,), DTYPE)
        p["layers"].append(lp)

    p["w_pre"], p["b_pre"] = dense(HIDDEN, HIDDEN)   # pre_classifier Linear(768, 768)
    p["w_cls"], p["b_cls"] = dense(HIDDEN, 1)        # classifier Linear(768, 1)
    return p


# -------------------------------- forward ----------------------------------
def roberta_binary_class_forward(params, input_ids, attention_mask, token_type_ids):
    B, S = input_ids.shape
    M = B * S

    # --- embeddings (gathers are XLA glue) ---
    # RoBERTa position ids: cumsum over (input_ids != pad), offset by padding_idx.
    pad_mask = (input_ids != PAD_ID).astype(jnp.int32)
    pos_ids = jnp.cumsum(pad_mask, axis=1) * pad_mask + PAD_ID
    emb = (jnp.take(params["word_emb"], input_ids, axis=0)
           + jnp.take(params["pos_emb"], pos_ids, axis=0)
           + jnp.take(params["type_emb"], token_type_ids, axis=0))
    x = layernorm(emb.reshape(M, HIDDEN), params["emb_ln_g"], params["emb_ln_b"])
    # TODO(synk): embedding dropout treated as eval-mode identity.

    # additive key mask, broadcast over query positions inside the fused kernel
    key_bias = ((1.0 - attention_mask.astype(DTYPE))
                * jnp.finfo(DTYPE).min).reshape(B, 1, S)

    for lp in params["layers"]:
        x = encoder_layer(x, key_bias,
                          lp["wqkv"], lp["bqkv"], lp["wo"], lp["bo"],
                          lp["ln1_g"], lp["ln1_b"],
                          lp["wi"], lp["bi"], lp["wf"], lp["bf"],
                          lp["ln2_g"], lp["ln2_b"])

    hidden_state = x.reshape(B, S, HIDDEN)        # output_1[0]
    pooler = hidden_state[:, 0]                   # CLS token, [B, HIDDEN]
    output = classifier_head(pooler, params["w_pre"], params["b_pre"],
                             params["w_cls"].T, params["b_cls"])  # [B, 1]
    return output


# ---------------------------------- main ------------------------------------
if __name__ == "__main__":
    key = jax.random.PRNGKey(0)
    k_param, k_ids = jax.random.split(key)

    params = init_params(k_param)

    input_ids = jax.random.randint(k_ids, (BATCH, SEQ), minval=3, maxval=VOCAB,
                                   dtype=jnp.int32)
    # CLS-like token at position 0 (RoBERTa <s> id = 0)
    input_ids = input_ids.at[:, 0].set(0)
    attention_mask = jnp.ones((BATCH, SEQ), dtype=jnp.int32)
    token_type_ids = jnp.zeros((BATCH, SEQ), dtype=jnp.int32)

    fwd = jax.jit(roberta_binary_class_forward)
    out = fwd(params, input_ids, attention_mask, token_type_ids)
    out = jax.block_until_ready(out)
    assert out.shape == (BATCH, 1) and out.dtype == DTYPE
    print("KERNEL_OK")
</pallas_src>

<mosaic_0001>
module attributes {stable_mosaic.version = 11 : i64} {
  func.func @kernel(%arg0: memref<32x128xf32, #tpu.memory_space<vmem>>, %arg1: memref<1x128xf32, #tpu.memory_space<vmem>>, %arg2: memref<1x128xf32, #tpu.memory_space<vmem>>, %arg3: memref<32x128xf32, #tpu.memory_space<vmem>>) attributes {dimension_semantics = [], scalar_prefetch = 0 : i64, scratch_operands = 0 : i64, tpu.core_type = #tpu.core_type<tc>} {
    %c0 = arith.constant 0 : index
    %c0_0 = arith.constant 0 : index
    %0 = vector.load %arg0[%c0, %c0_0] : memref<32x128xf32, #tpu.memory_space<vmem>>, vector<32x128xf32>
    %cst = arith.constant dense<0.000000e+00> : vector<32xf32>
    %1 = vector.multi_reduction <add>, %0, %cst [1] : vector<32x128xf32> to vector<32xf32>
    %2 = vector.shape_cast %1 : vector<32xf32> to vector<32x1xf32>
    %cst_1 = arith.constant 1.280000e+02 : f32
    %3 = vector.broadcast %cst_1 : f32 to vector<32x1xf32>
    %4 = arith.divf %2, %3 : vector<32x1xf32>
    %5 = vector.broadcast %4 : vector<32x1xf32> to vector<32x128xf32>
    %6 = arith.subf %0, %5 : vector<32x128xf32>
    %7 = arith.mulf %6, %6 : vector<32x128xf32>
    %cst_2 = arith.constant dense<0.000000e+00> : vector<32xf32>
    %8 = vector.multi_reduction <add>, %7, %cst_2 [1] : vector<32x128xf32> to vector<32xf32>
    %9 = vector.shape_cast %8 : vector<32xf32> to vector<32x1xf32>
    %cst_3 = arith.constant 1.280000e+02 : f32
    %10 = vector.broadcast %cst_3 : f32 to vector<32x1xf32>
    %11 = arith.divf %9, %10 : vector<32x1xf32>
    %cst_4 = arith.constant 9.99999974E-6 : f32
    %12 = vector.broadcast %cst_4 : f32 to vector<32x1xf32>
    %13 = arith.addf %11, %12 : vector<32x1xf32>
    %14 = math.rsqrt %13 : vector<32x1xf32>
    %15 = vector.broadcast %14 : vector<32x1xf32> to vector<32x128xf32>
    %16 = arith.mulf %6, %15 : vector<32x128xf32>
    %c0_5 = arith.constant 0 : index
    %c0_6 = arith.constant 0 : index
    %17 = vector.load %arg1[%c0_5, %c0_6] : memref<1x128xf32, #tpu.memory_space<vmem>>, vector<1x128xf32>
    %18 = vector.broadcast %17 : vector<1x128xf32> to vector<32x128xf32>
    %19 = arith.mulf %16, %18 : vector<32x128xf32>
    %c0_7 = arith.constant 0 : index
    %c0_8 = arith.constant 0 : index
    %20 = vector.load %arg2[%c0_7, %c0_8] : memref<1x128xf32, #tpu.memory_space<vmem>>, vector<1x128xf32>
    %21 = vector.broadcast %20 : vector<1x128xf32> to vector<32x128xf32>
    %22 = arith.addf %19, %21 : vector<32x128xf32>
    %c0_9 = arith.constant 0 : index
    %c0_10 = arith.constant 0 : index
    %23 = vector.load %arg3[%c0_9, %c0_10] : memref<32x128xf32, #tpu.memory_space<vmem>>, vector<32x128xf32>
    tpu.vector_store %arg3[%c0_9, %c0_10], %22 {strides = array<i32>} : memref<32x128xf32, #tpu.memory_space<vmem>>, vector<32x128xf32>,
    return
  }
}

module attributes {stable_mosaic.version = 11 : i64} {
  func.func @kernel(%arg0: memref<32x128xf32, #tpu.memory_space<vmem>>, %arg1: memref<2x1x16xf32, #tpu.memory_space<vmem>>, %arg2: memref<128x384xf32, #tpu.memory_space<vmem>>, %arg3: memref<1x384xf32, #tpu.memory_space<vmem>>, %arg4: memref<128x128xf32, #tpu.memory_space<vmem>>, %arg5: memref<1x128xf32, #tpu.memory_space<vmem>>, %arg6: memref<1x128xf32, #tpu.memory_space<vmem>>, %arg7: memref<1x128xf32, #tpu.memory_space<vmem>>, %arg8: memref<128x512xf32, #tpu.memory_space<vmem>>, %arg9: memref<1x512xf32, #tpu.memory_space<vmem>>, %arg10: memref<512x128xf32, #tpu.memory_space<vmem>>, %arg11: memref<1x128xf32, #tpu.memory_space<vmem>>, %arg12: memref<1x128xf32, #tpu.memory_space<vmem>>, %arg13: memref<1x128xf32, #tpu.memory_space<vmem>>, %arg14: memref<32x128xf32, #tpu.memory_space<vmem>>) attributes {dimension_semantics = [], scalar_prefetch = 0 : i64, scratch_operands = 0 : i64, tpu.core_type = #tpu.core_type<tc>} {
    %c0 = arith.constant 0 : index
    %c0_0 = arith.constant 0 : index
    %0 = vector.load %arg0[%c0, %c0_0] : memref<32x128xf32, #tpu.memory_space<vmem>>, vector<32x128xf32>
    %c0_1 = arith.constant 0 : index
    %c0_2 = arith.constant 0 : index
    %1 = vector.load %arg2[%c0_1, %c0_2] : memref<128x384xf32, #tpu.memory_space<vmem>>, vector<128x384xf32>
    %cst = arith.constant dense<0.000000e+00> : vector<32x384xf32>
    %2 = tpu.matmul %0, %1, %cst {dimension_numbers = #tpu.dot_dimension_numbers<[1], [0], [0], [1], [0, 0, 1, 1], [], []>} : vector<32x128xf32>, vector<128x384xf32>, vector<32x384xf32> -> vector<32x384xf32>
    %c0_3 = arith.constant 0 : index
    %c0_4 = arith.constant 0 : index
    %3 = vector.load %arg3[%c0_3, %c0_4] : memref<1x384xf32, #tpu.memory_space<vmem>>, vector<1x384xf32>
    %4 = vector.broadcast %3 : vector<1x384xf32> to vector<32x384xf32>
    %5 = arith.addf %2, %4 : vector<32x384xf32>
    %c0_5 = arith.constant 0 : index
    %c0_6 = arith.constant 0 : index
    %c0_7 = arith.constant 0 : index
    %6 = vector.load %arg1[%c0_5, %c0_6, %c0_7] : memref<2x1x16xf32, #tpu.memory_space<vmem>>, vector<2x1x16xf32>
    %cst_8 = arith.constant 0.000000e+00 : f32
    %7 = vector.broadcast %cst_8 : f32 to vector<32x128xf32>
    %8 = vector.extract_strided_slice %5 {offsets = [0, 0], sizes = [32, 32], strides = [1, 1]} : vector<32x384xf32> to vector<32x32xf32>
    %9 = vector.shape_cast %8 : vector<32x32xf32> to vector<2x16x32xf32>
    %10 = vector.extract_strided_slice %5 {offsets = [0, 128], sizes = [32, 32], strides = [1, 1]} : vector<32x384xf32> to vector<32x32xf32>
    %11 = vector.shape_cast %10 : vector<32x32xf32> to vector<2x16x32xf32>
    %12 = vector.extract_strided_slice %5 {offsets = [0, 256], sizes = [32, 32], strides = [1, 1]} : vector<32x384xf32> to vector<32x32xf32>
    %13 = vector.shape_cast %12 : vector<32x32xf32> to vector<2x16x32xf32>
    %cst_9 = arith.constant dense<0.000000e+00> : vector<2x16x16xf32>
    %14 = tpu.matmul %9, %11, %cst_9 {dimension_numbers = #tpu.dot_dimension_numbers<[2], [2], [1], [1], [0, 0, 0, 1, 1, 1], [0], [0]>} : vector<2x16x32xf32>, vector<2x16x32xf32>, vector<2x16x16xf32> -> vector<2x16x16xf32>
    %cst_10 = arith.constant 0.176776692 : f32
    %15 = vector.broadcast %cst_10 : f32 to vector<2x16x16xf32>
    %16 = arith.mulf %14, %15 : vector<2x16x16xf32>
    %17 = vector.broadcast %6 : vector<2x1x16xf32> to vector<2x16x16xf32>
    %18 = arith.addf %16, %17 : vector<2x16x16xf32>
    %cst_11 = arith.constant dense<0xFF800000> : vector<2x16xf32>
    %19 = vector.multi_reduction <maximumf>, %18, %cst_11 [2] : vector<2x16x16xf32> to vector<2x16xf32>
    %20 = vector.shape_cast %19 : vector<2x16xf32> to vector<2x16x1xf32>
    %21 = vector.broadcast %20 : vector<2x16x1xf32> to vector<2x16x16xf32>
    %22 = arith.subf %18, %21 : vector<2x16x16xf32>
    %23 = math.exp %22 : vector<2x16x16xf32>
    %cst_12 = arith.constant dense<0.000000e+00> : vector<2x16xf32>
    %24 = vector.multi_reduction <add>, %23, %cst_12 [2] : vector<2x16x16xf32> to vector<2x16xf32>
    %25 = vector.shape_cast %24 : vector<2x16xf32> to vector<2x16x1xf32>
    %26 = vector.broadcast %25 : vector<2x16x1xf32> to vector<2x16x16xf32>
    %27 = arith.divf %23, %26 : vector<2x16x16xf32>
    %cst_13 = arith.constant dense<0.000000e+00> : vector<2x16x32xf32>
    %28 = tpu.matmul %27, %13, %cst_13 {dimension_numbers = #tpu.dot_dimension_numbers<[2], [1], [1], [2], [0, 0, 0, 1, 1, 2], [0], [0]>} : vector<2x16x16xf32>, vector<2x16x32xf32>, vector<2x16x32xf32> -> vector<2x16x32xf32>
    %29 = vector.shape_cast %28 : vector<2x16x32xf32> to vector<32x32xf32>
    %c0_14 = arith.constant 0 : index
    %c0_15 = arith.constant 0 : index
    %30 = vector.load %arg4[%c0_14, %c0_15] : memref<128x128xf32, #tpu.memory_space<vmem>>, vector<32x128xf32>
    %cst_16 = arith.constant dense<0.000000e+00> : vector<32x128xf32>
    %31 = tpu.matmul %29, %30, %cst_16 {dimension_numbers = #tpu.dot_dimension_numbers<[1], [0], [0], [1], [0, 0, 1, 1], [], []>} : vector<32x32xf32>, vector<32x128xf32>, vector<32x128xf32> -> vector<32x128xf32>
    %32 = arith.addf %7, %31 : vector<32x128xf32>
    %33 = vector.extract_strided_slice %5 {offsets = [0, 32], sizes = [32, 32], strides = [1, 1]} : vector<32x384xf32> to vector<32x32xf32>
    %34 = vector.shape_cast %33 : vector<32x32xf32> to vector<2x16x32xf32>
    %35 = vector.extract_strided_slice %5 {offsets = [0, 160], sizes = [32, 32], strides = [1, 1]} : vector<32x384xf32> to vector<32x32xf32>
    %36 = vector.shape_cast %35 : vector<32x32xf32> to vector<2x16x32xf32>
    %37 = vector.extract_strided_slice %5 {offsets = [0, 288], sizes = [32, 32], strides = [1, 1]} : vector<32x384xf32> to vector<32x32xf32>
    %38 = vector.shape_cast %37 : vector<32x32xf32> to vector<2x16x32xf32>
    %cst_17 = arith.constant dense<0.000000e+00> : vector<2x16x16xf32>
    %39 = tpu.matmul %34, %36, %cst_17 {dimension_numbers = #tpu.dot_dimension_numbers<[2], [2], [1], [1], [0, 0, 0, 1, 1, 1], [0], [0]>} : vector<2x16x32xf32>, vector<2x16x32xf32>, vector<2x16x16xf32> -> vector<2x16x16xf32>
    %cst_18 = arith.constant 0.176776692 : f32
    %40 = vector.broadcast %cst_18 : f32 to vector<2x16x16xf32>
    %41 = arith.mulf %39, %40 : vector<2x16x16xf32>
    %42 = vector.broadcast %6 : vector<2x1x16xf32> to vector<2x16x16xf32>
    %43 = arith.addf %41, %42 : vector<2x16x16xf32>
    %cst_19 = arith.constant dense<0xFF800000> : vector<2x16xf32>
    %44 = vector.multi_reduction <maximumf>, %43, %cst_19 [2] : vector<2x16x16xf32> to vector<2x16xf32>
    %45 = vector.shape_cast %44 : vector<2x16xf32> to vector<2x16x1xf32>
    %46 = vector.broadcast %45 : vector<2x16x1xf32> to vector<2x16x16xf32>
    %47 = arith.subf %43, %46 : vector<2x16x16xf32>
    %48 = math.exp %47 : vector<2x16x16xf32>
    %cst_20 = arith.constant dense<0.000000e+00> : vector<2x16xf32>
    %49 = vector.multi_reduction <add>, %48, %cst_20 [2] : vector<2x16x16xf32> to vector<2x16xf32>
    %50 = vector.shape_cast %49 : vector<2x16xf32> to vector<2x16x1xf32>
    %51 = vector.broadcast %50 : vector<2x16x1xf32> to vector<2x16x16xf32>
    %52 = arith.divf %48, %51 : vector<2x16x16xf32>
    %cst_21 = arith.constant dense<0.000000e+00> : vector<2x16x32xf32>
    %53 = tpu.matmul %52, %38, %cst_21 {dimension_numbers = #tpu.dot_dimension_numbers<[2], [1], [1], [2], [0, 0, 0, 1, 1, 2], [0], [0]>} : vector<2x16x16xf32>, vector<2x16x32xf32>, vector<2x16x32xf32> -> vector<2x16x32xf32>
    %54 = vector.shape_cast %53 : vector<2x16x32xf32> to vector<32x32xf32>
    %c32 = arith.constant 32 : index
    %c0_22 = arith.constant 0 : index
    %55 = vector.load %arg4[%c32, %c0_22] : memref<128x128xf32, #tpu.memory_space<vmem>>, vector<32x128xf32>
    %cst_23 = arith.constant dense<0.000000e+00> : vector<32x128xf32>
    %56 = tpu.matmul %54, %55, %cst_23 {dimension_numbers = #tpu.dot_dimension_numbers<[1], [0], [0], [1], [0, 0, 1, 1], [], []>} : vector<32x32xf32>, vector<32x128xf32>, vector<32x128xf32> -> vector<32x128xf32>
    %57 = arith.addf %32, %56 : vector<32x128xf32>
    %58 = vector.extract_strided_slice %5 {offsets = [0, 64], sizes = [32, 32], strides = [1, 1]} : vector<32x384xf32> to vector<32x32xf32>
    %59 = vector.shape_cast %58 : vector<32x32xf32> to vector<2x16x32xf32>
    %60 = vector.extract_strided_slice %5 {offsets = [0, 192], sizes = [32, 32], strides = [1, 1]} : vector<32x384xf32> to vector<32x32xf32>
    %61 = vector.shape_cast %60 : vector<32x32xf32> to vector<2x16x32xf32>
    %62 = vector.extract_strided_slice %5 {offsets = [0, 320], sizes = [32, 32], strides = [1, 1]} : vector<32x384xf32> to vector<32x32xf32>
    %63 = vector.shape_cast %62 : vector<32x32xf32> to vector<2x16x32xf32>
    %cst_24 = arith.constant dense<0.000000e+00> : vector<2x16x16xf32>
    %64 = tpu.matmul %59, %61, %cst_24 {dimension_numbers = #tpu.dot_dimension_numbers<[2], [2], [1], [1], [0, 0, 0, 1, 1, 1], [0], [0]>} : vector<2x16x32xf32>, vector<2x16x32xf32>, vector<2x16x16xf32> -> vector<2x16x16xf32>
    %cst_25 = arith.constant 0.176776692 : f32
    %65 = vector.broadcast %cst_25 : f32 to vector<2x16x16xf32>
    %66 = arith.mulf %64, %65 : vector<2x16x16xf32>
    %67 = vector.broadcast %6 : vector<2x1x16xf32> to vector<2x16x16xf32>
    %68 = arith.addf %66, %67 : vector<2x16x16xf32>
    %cst_26 = arith.constant dense<0xFF800000> : vector<2x16xf32>
    %69 = vector.multi_reduction <maximumf>, %68, %cst_26 [2] : vector<2x16x16xf32> to vector<2x16xf32>
    %70 = vector.shape_cast %69 : vector<2x16xf32> to vector<2x16x1xf32>
    %71 = vector.broadcast %70 : vector<2x16x1xf32> to vector<2x16x16xf32>
    %72 = arith.subf %68, %71 : vector<2x16x16xf32>
    %73 = math.exp %72 : vector<2x16x16xf32>
    %cst_27 = arith.constant dense<0.000000e+00> : vector<2x16xf32>
    %74 = vector.multi_reduction <add>, %73, %cst_27 [2] : vector<2x16x16xf32> to vector<2x16xf32>
    %75 = vector.shape_cast %74 : vector<2x16xf32> to vector<2x16x1xf32>
    %76 = vector.broadcast %75 : vector<2x16x1xf32> to vector<2x16x16xf32>
    %77 = arith.divf %73, %76 : vector<2x16x16xf32>
    %cst_28 = arith.constant dense<0.000000e+00> : vector<2x16x32xf32>
    %78 = tpu.matmul %77, %63, %cst_28 {dimension_numbers = #tpu.dot_dimension_numbers<[2], [1], [1], [2], [0, 0, 0, 1, 1, 2], [0], [0]>} : vector<2x16x16xf32>, vector<2x16x32xf32>, vector<2x16x32xf32> -> vector<2x16x32xf32>
    %79 = vector.shape_cast %78 : vector<2x16x32xf32> to vector<32x32xf32>
    %c64 = arith.constant 64 : index
    %c0_29 = arith.constant 0 : index
    %80 = vector.load %arg4[%c64, %c0_29] : memref<128x128xf32, #tpu.memory_space<vmem>>, vector<32x128xf32>
    %cst_30 = arith.constant dense<0.000000e+00> : vector<32x128xf32>
    %81 = tpu.matmul %79, %80, %cst_30 {dimension_numbers = #tpu.dot_dimension_numbers<[1], [0], [0], [1], [0, 0, 1, 1], [], []>} : vector<32x32xf32>, vector<32x128xf32>, vector<32x128xf32> -> vector<32x128xf32>
    %82 = arith.addf %57, %81 : vector<32x128xf32>
    %83 = vector.extract_strided_slice %5 {offsets = [0, 96], sizes = [32, 32], strides = [1, 1]} : vector<32x384xf32> to vector<32x32xf32>
    %84 = vector.shape_cast %83 : vector<32x32xf32> to vector<2x16x32xf32>
    %85 = vector.extract_strided_slice %5 {offsets = [0, 224], sizes = [32, 32], strides = [1, 1]} : vector<32x384xf32> to vector<32x32xf32>
    %86 = vector.shape_cast %85 : vector<32x32xf32> to vector<2x16x32xf32>
    %87 = vector.extract_strided_slice %5 {offsets = [0, 352], sizes = [32, 32], strides = [1, 1]} : vector<32x384xf32> to vector<32x32xf32>
    %88 = vector.shape_cast %87 : vector<32x32xf32> to vector<2x16x32xf32>
    %cst_31 = arith.constant dense<0.000000e+00> : vector<2x16x16xf32>
    %89 = tpu.matmul %84, %86, %cst_31 {dimension_numbers = #tpu.dot_dimension_numbers<[2], [2], [1], [1], [0, 0, 0, 1, 1, 1], [0], [0]>} : vector<2x16x32xf32>, vector<2x16x32xf32>, vector<2x16x16xf32> -> vector<2x16x16xf32>
    %cst_32 = arith.constant 0.176776692 : f32
    %90 = vector.broadcast %cst_32 : f32 to vector<2x16x16xf32>
    %91 = arith.mulf %89, %90 : vector<2x16x16xf32>
    %92 = vector.broadcast %6 : vector<2x1x16xf32> to vector<2x16x16xf32>
    %93 = arith.addf %91, %92 : vector<2x16x16xf32>
    %cst_33 = arith.constant dense<0xFF800000> : vector<2x16xf32>
    %94 = vector.multi_reduction <maximumf>, %93, %cst_33 [2] : vector<2x16x16xf32> to vector<2x16xf32>
    %95 = vector.shape_cast %94 : vector<2x16xf32> to vector<2x16x1xf32>
    %96 = vector.broadcast %95 : vector<2x16x1xf32> to vector<2x16x16xf32>
    %97 = arith.subf %93, %96 : vector<2x16x16xf32>
    %98 = math.exp %97 : vector<2x16x16xf32>
    %cst_34 = arith.constant dense<0.000000e+00> : vector<2x16xf32>
    %99 = vector.multi_reduction <add>, %98, %cst_34 [2] : vector<2x16x16xf32> to vector<2x16xf32>
    %100 = vector.shape_cast %99 : vector<2x16xf32> to vector<2x16x1xf32>
    %101 = vector.broadcast %100 : vector<2x16x1xf32> to vector<2x16x16xf32>
    %102 = arith.divf %98, %101 : vector<2x16x16xf32>
    %cst_35 = arith.constant dense<0.000000e+00> : vector<2x16x32xf32>
    %103 = tpu.matmul %102, %88, %cst_35 {dimension_numbers = #tpu.dot_dimension_numbers<[2], [1], [1], [2], [0, 0, 0, 1, 1, 2], [0], [0]>} : vector<2x16x16xf32>, vector<2x16x32xf32>, vector<2x16x32xf32> -> vector<2x16x32xf32>
    %104 = vector.shape_cast %103 : vector<2x16x32xf32> to vector<32x32xf32>
    %c96 = arith.constant 96 : index
    %c0_36 = arith.constant 0 : index
    %105 = vector.load %arg4[%c96, %c0_36] : memref<128x128xf32, #tpu.memory_space<vmem>>, vector<32x128xf32>
    %cst_37 = arith.constant dense<0.000000e+00> : vector<32x128xf32>
    %106 = tpu.matmul %104, %105, %cst_37 {dimension_numbers = #tpu.dot_dimension_numbers<[1], [0], [0], [1], [0, 0, 1, 1], [], []>} : vector<32x32xf32>, vector<32x128xf32>, vector<32x128xf32> -> vector<32x128xf32>
    %107 = arith.addf %82, %106 : vector<32x128xf32>
    %c0_38 = arith.constant 0 : index
    %c0_39 = arith.constant 0 : index
    %108 = vector.load %arg5[%c0_38, %c0_39] : memref<1x128xf32, #tpu.memory_space<vmem>>, vector<1x128xf32>
    %109 = vector.broadcast %108 : vector<1x128xf32> to vector<32x128xf32>
    %110 = arith.addf %107, %109 : vector<32x128xf32>
    %111 = arith.addf %0, %110 : vector<32x128xf32>
    %c0_40 = arith.constant 0 : index
    %c0_41 = arith.constant 0 : index
    %112 = vector.load %arg6[%c0_40, %c0_41] : memref<1x128xf32, #tpu.memory_space<vmem>>, vector<1x128xf32>
    %c0_42 = arith.constant 0 : index
    %c0_43 = arith.constant 0 : index
    %113 = vector.load %arg7[%c0_42, %c0_43] : memref<1x128xf32, #tpu.memory_space<vmem>>, vector<1x128xf32>
    %cst_44 = arith.constant dense<0.000000e+00> : vector<32xf32>
    %114 = vector.multi_reduction <add>, %111, %cst_44 [1] : vector<32x128xf32> to vector<32xf32>
    %115 = vector.shape_cast %114 : vector<32xf32> to vector<32x1xf32>
    %cst_45 = arith.constant 1.280000e+02 : f32
    %116 = vector.broadcast %cst_45 : f32 to vector<32x1xf32>
    %117 = arith.divf %115, %116 : vector<32x1xf32>
    %118 = vector.broadcast %117 : vector<32x1xf32> to vector<32x128xf32>
    %119 = arith.subf %111, %118 : vector<32x128xf32>
    %120 = arith.mulf %119, %119 : vector<32x128xf32>
    %cst_46 = arith.constant dense<0.000000e+00> : vector<32xf32>
    %121 = vector.multi_reduction <add>, %120, %cst_46 [1] : vector<32x128xf32> to vector<32xf32>
    %122 = vector.shape_cast %121 : vector<32xf32> to vector<32x1xf32>
    %cst_47 = arith.constant 1.280000e+02 : f32
    %123 = vector.broadcast %cst_47 : f32 to vector<32x1xf32>
    %124 = arith.divf %122, %123 : vector<32x1xf32>
    %cst_48 = arith.constant 9.99999974E-6 : f32
    %125 = vector.broadcast %cst_48 : f32 to vector<32x1xf32>
    %126 = arith.addf %124, %125 : vector<32x1xf32>
    %127 = math.rsqrt %126 : vector<32x1xf32>
    %128 = vector.broadcast %127 : vector<32x1xf32> to vector<32x128xf32>
    %129 = arith.mulf %119, %128 : vector<32x128xf32>
    %130 = vector.broadcast %112 : vector<1x128xf32> to vector<32x128xf32>
    %131 = arith.mulf %129, %130 : vector<32x128xf32>
    %132 = vector.broadcast %113 : vector<1x128xf32> to vector<32x128xf32>
    %133 = arith.addf %131, %132 : vector<32x128xf32>
    %c0_49 = arith.constant 0 : index
    %c0_50 = arith.constant 0 : index
    %134 = vector.load %arg8[%c0_49, %c0_50] : memref<128x512xf32, #tpu.memory_space<vmem>>, vector<128x512xf32>
    %cst_51 = arith.constant dense<0.000000e+00> : vector<32x512xf32>
    %135 = tpu.matmul %133, %134, %cst_51 {dimension_numbers = #tpu.dot_dimension_numbers<[1], [0], [0], [1], [0, 0, 1, 1], [], []>} : vector<32x128xf32>, vector<128x512xf32>, vector<32x512xf32> -> vector<32x512xf32>
    %c0_52 = arith.constant 0 : index
    %c0_53 = arith.constant 0 : index
    %136 = vector.load %arg9[%c0_52, %c0_53] : memref<1x512xf32, #tpu.memory_space<vmem>>, vector<1x512xf32>
    %137 = vector.broadcast %136 : vector<1x512xf32> to vector<32x512xf32>
    %138 = arith.addf %135, %137 : vector<32x512xf32>
    %cst_54 = arith.constant 5.000000e-01 : f32
    %139 = vector.broadcast %cst_54 : f32 to vector<32x512xf32>
    %140 = arith.mulf %139, %138 : vector<32x512xf32>
    %cst_55 = arith.constant 4.471500e-02 : f32
    %141 = vector.broadcast %cst_55 : f32 to vector<32x512xf32>
    %142 = arith.mulf %141, %138 : vector<32x512xf32>
    %143 = arith.mulf %142, %138 : vector<32x512xf32>
    %144 = arith.mulf %143, %138 : vector<32x512xf32>
    %145 = arith.addf %138, %144 : vector<32x512xf32>
    %cst_56 = arith.constant 0.797884583 : f32
    %146 = vector.broadcast %cst_56 : f32 to vector<32x512xf32>
    %147 = arith.mulf %146, %145 : vector<32x512xf32>
    %148 = math.tanh %147 : vector<32x512xf32>
    %cst_57 = arith.constant 1.000000e+00 : f32
    %149 = vector.broadcast %cst_57 : f32 to vector<32x512xf32>
    %150 = arith.addf %149, %148 : vector<32x512xf32>
    %151 = arith.mulf %140, %150 : vector<32x512xf32>
    %c0_58 = arith.constant 0 : index
    %c0_59 = arith.constant 0 : index
    %152 = vector.load %arg10[%c0_58, %c0_59] : memref<512x128xf32, #tpu.memory_space<vmem>>, vector<512x128xf32>
    %cst_60 = arith.constant dense<0.000000e+00> : vector<32x128xf32>
    %153 = tpu.matmul %151, %152, %cst_60 {dimension_numbers = #tpu.dot_dimension_numbers<[1], [0], [0], [1], [0, 0, 1, 1], [], []>} : vector<32x512xf32>, vector<512x128xf32>, vector<32x128xf32> -> vector<32x128xf32>
    %c0_61 = arith.constant 0 : index
    %c0_62 = arith.constant 0 : index
    %154 = vector.load %arg11[%c0_61, %c0_62] : memref<1x128xf32, #tpu.memory_space<vmem>>, vector<1x128xf32>
    %155 = vector.broadcast %154 : vector<1x128xf32> to vector<32x128xf32>
    %156 = arith.addf %153, %155 : vector<32x128xf32>
    %157 = arith.addf %133, %156 : vector<32x128xf32>
    %c0_63 = arith.constant 0 : index
    %c0_64 = arith.constant 0 : index
    %158 = vector.load %arg12[%c0_63, %c0_64] : memref<1x128xf32, #tpu.memory_space<vmem>>, vector<1x128xf32>
    %c0_65 = arith.constant 0 : index
    %c0_66 = arith.constant 0 : index
    %159 = vector.load %arg13[%c0_65, %c0_66] : memref<1x128xf32, #tpu.memory_space<vmem>>, vector<1x128xf32>
    %cst_67 = arith.constant dense<0.000000e+00> : vector<32xf32>
    %160 = vector.multi_reduction <add>, %157, %cst_67 [1] : vector<32x128xf32> to vector<32xf32>
    %161 = vector.shape_cast %160 : vector<32xf32> to vector<32x1xf32>
    %cst_68 = arith.constant 1.280000e+02 : f32
    %162 = vector.broadcast %cst_68 : f32 to vector<32x1xf32>
    %163 = arith.divf %161, %162 : vector<32x1xf32>
    %164 = vector.broadcast %163 : vector<32x1xf32> to vector<32x128xf32>
    %165 = arith.subf %157, %164 : vector<32x128xf32>
    %166 = arith.mulf %165, %165 : vector<32x128xf32>
    %cst_69 = arith.constant dense<0.000000e+00> : vector<32xf32>
    %167 = vector.multi_reduction <add>, %166, %cst_69 [1] : vector<32x128xf32> to vector<32xf32>
    %168 = vector.shape_cast %167 : vector<32xf32> to vector<32x1xf32>
    %cst_70 = arith.constant 1.280000e+02 : f32
    %169 = vector.broadcast %cst_70 : f32 to vector<32x1xf32>
    %170 = arith.divf %168, %169 : vector<32x1xf32>
    %cst_71 = arith.constant 9.99999974E-6 : f32
    %171 = vector.broadcast %cst_71 : f32 to vector<32x1xf32>
    %172 = arith.addf %170, %171 : vector<32x1xf32>
    %173 = math.rsqrt %172 : vector<32x1xf32>
    %174 = vector.broadcast %173 : vector<32x1xf32> to vector<32x128xf32>
    %175 = arith.mulf %165, %174 : vector<32x128xf32>
    %176 = vector.broadcast %158 : vector<1x128xf32> to vector<32x128xf32>
    %177 = arith.mulf %175, %176 : vector<32x128xf32>
    %178 = vector.broadcast %159 : vector<1x128xf32> to vector<32x128xf32>
    %179 = arith.addf %177, %178 : vector<32x128xf32>
    %c0_72 = arith.constant 0 : index
    %c0_73 = arith.constant 0 : index
    %180 = vector.load %arg14[%c0_72, %c0_73] : memref<32x128xf32, #tpu.memory_space<vmem>>, vector<32x128xf32>
    tpu.vector_store %arg14[%c0_72, %c0_73], %179 {strides = array<i32>} : memref<32x128xf32, #tpu.memory_space<vmem>>, vector<32x128xf32>,
    return
  }
}

module attributes {stable_mosaic.version = 11 : i64} {
  func.func @kernel(%arg0: memref<2x128xf32, #tpu.memory_space<vmem>>, %arg1: memref<128x128xf32, #tpu.memory_space<vmem>>, %arg2: memref<1x128xf32, #tpu.memory_space<vmem>>, %arg3: memref<1x128xf32, #tpu.memory_space<vmem>>, %arg4: memref<1x1xf32, #tpu.memory_space<vmem>>, %arg5: memref<2x1xf32, #tpu.memory_space<vmem>>) attributes {dimension_semantics = [], scalar_prefetch = 0 : i64, scratch_operands = 0 : i64, tpu.core_type = #tpu.core_type<tc>} {
    %c0 = arith.constant 0 : index
    %c0_0 = arith.constant 0 : index
    %0 = vector.load %arg0[%c0, %c0_0] : memref<2x128xf32, #tpu.memory_space<vmem>>, vector<2x128xf32>
    %c0_1 = arith.constant 0 : index
    %c0_2 = arith.constant 0 : index
    %1 = vector.load %arg1[%c0_1, %c0_2] : memref<128x128xf32, #tpu.memory_space<vmem>>, vector<128x128xf32>
    %cst = arith.constant dense<0.000000e+00> : vector<2x128xf32>
    %2 = tpu.matmul %0, %1, %cst {dimension_numbers = #tpu.dot_dimension_numbers<[1], [0], [0], [1], [0, 0, 1, 1], [], []>} : vector<2x128xf32>, vector<128x128xf32>, vector<2x128xf32> -> vector<2x128xf32>
    %c0_3 = arith.constant 0 : index
    %c0_4 = arith.constant 0 : index
    %3 = vector.load %arg2[%c0_3, %c0_4] : memref<1x128xf32, #tpu.memory_space<vmem>>, vector<1x128xf32>
    %4 = vector.broadcast %3 : vector<1x128xf32> to vector<2x128xf32>
    %5 = arith.addf %2, %4 : vector<2x128xf32>
    %6 = math.tanh %5 : vector<2x128xf32>
    %c0_5 = arith.constant 0 : index
    %c0_6 = arith.constant 0 : index
    %7 = vector.load %arg3[%c0_5, %c0_6] : memref<1x128xf32, #tpu.memory_space<vmem>>, vector<1x128xf32>
    %8 = vector.broadcast %7 : vector<1x128xf32> to vector<2x128xf32>
    %9 = arith.mulf %6, %8 : vector<2x128xf32>
    %cst_7 = arith.constant dense<0.000000e+00> : vector<2xf32>
    %10 = vector.multi_reduction <add>, %9, %cst_7 [1] : vector<2x128xf32> to vector<2xf32>
    %11 = vector.shape_cast %10 : vector<2xf32> to vector<2x1xf32>
    %c0_8 = arith.constant 0 : index
    %c0_9 = arith.constant 0 : index
    %12 = vector.load %arg4[%c0_8, %c0_9] : memref<1x1xf32, #tpu.memory_space<vmem>>, vector<1x1xf32>
    %13 = vector.broadcast %12 : vector<1x1xf32> to vector<2x1xf32>
    %14 = arith.addf %11, %13 : vector<2x1xf32>
    %c0_10 = arith.constant 0 : index
    %c0_11 = arith.constant 0 : index
    %15 = vector.load %arg5[%c0_10, %c0_11] : memref<2x1xf32, #tpu.memory_space<vmem>>, vector<2x1xf32>
    tpu.vector_store %arg5[%c0_10, %c0_11], %14 {strides = array<i32>} : memref<2x1xf32, #tpu.memory_space<vmem>>, vector<2x1xf32>,
    return
  }
}

module attributes {stable_mosaic.version = 11 : i64} {
  func.func @kernel(%arg0: memref<32x128xf32, #tpu.memory_space<vmem>>, %arg1: memref<2x1x16xf32, #tpu.memory_space<vmem>>, %arg2: memref<128x384xf32, #tpu.memory_space<vmem>>, %arg3: memref<1x384xf32, #tpu.memory_space<vmem>>, %arg4: memref<128x128xf32, #tpu.memory_space<vmem>>, %arg5: memref<1x128xf32, #tpu.memory_space<vmem>>, %arg6: memref<1x128xf32, #tpu.memory_space<vmem>>, %arg7: memref<1x128xf32, #tpu.memory_space<vmem>>, %arg8: memref<128x512xf32, #tpu.memory_space<vmem>>, %arg9: memref<1x512xf32, #tpu.memory_space<vmem>>, %arg10: memref<512x128xf32, #tpu.memory_space<vmem>>, %arg11: memref<1x128xf32, #tpu.memory_space<vmem>>, %arg12: memref<1x128xf32, #tpu.memory_space<vmem>>, %arg13: memref<1x128xf32, #tpu.memory_space<vmem>>, %arg14: memref<32x128xf32, #tpu.memory_space<vmem>>) attributes {dimension_semantics = [], scalar_prefetch = 0 : i64, scratch_operands = 0 : i64, tpu.core_type = #tpu.core_type<tc>} {
    %c0 = arith.constant 0 : index
    %c0_0 = arith.constant 0 : index
    %0 = vector.load %arg0[%c0, %c0_0] : memref<32x128xf32, #tpu.memory_space<vmem>>, vector<32x128xf32>
    %c0_1 = arith.constant 0 : index
    %c0_2 = arith.constant 0 : index
    %1 = vector.load %arg2[%c0_1, %c0_2] : memref<128x384xf32, #tpu.memory_space<vmem>>, vector<128x384xf32>
    %cst = arith.constant dense<0.000000e+00> : vector<32x384xf32>
    %2 = tpu.matmul %0, %1, %cst {dimension_numbers = #tpu.dot_dimension_numbers<[1], [0], [0], [1], [0, 0, 1, 1], [], []>} : vector<32x128xf32>, vector<128x384xf32>, vector<32x384xf32> -> vector<32x384xf32>
    %c0_3 = arith.constant 0 : index
    %c0_4 = arith.constant 0 : index
    %3 = vector.load %arg3[%c0_3, %c0_4] : memref<1x384xf32, #tpu.memory_space<vmem>>, vector<1x384xf32>
    %4 = vector.broadcast %3 : vector<1x384xf32> to vector<32x384xf32>
    %5 = arith.addf %2, %4 : vector<32x384xf32>
    %c0_5 = arith.constant 0 : index
    %c0_6 = arith.constant 0 : index
    %c0_7 = arith.constant 0 : index
    %6 = vector.load %arg1[%c0_5, %c0_6, %c0_7] : memref<2x1x16xf32, #tpu.memory_space<vmem>>, vector<2x1x16xf32>
    %cst_8 = arith.constant 0.000000e+00 : f32
    %7 = vector.broadcast %cst_8 : f32 to vector<32x128xf32>
    %8 = vector.extract_strided_slice %5 {offsets = [0, 0], sizes = [32, 32], strides = [1, 1]} : vector<32x384xf32> to vector<32x32xf32>
    %9 = vector.shape_cast %8 : vector<32x32xf32> to vector<2x16x32xf32>
    %10 = vector.extract_strided_slice %5 {offsets = [0, 128], sizes = [32, 32], strides = [1, 1]} : vector<32x384xf32> to vector<32x32xf32>
    %11 = vector.shape_cast %10 : vector<32x32xf32> to vector<2x16x32xf32>
    %12 = vector.extract_strided_slice %5 {offsets = [0, 256], sizes = [32, 32], strides = [1, 1]} : vector<32x384xf32> to vector<32x32xf32>
    %13 = vector.shape_cast %12 : vector<32x32xf32> to vector<2x16x32xf32>
    %cst_9 = arith.constant dense<0.000000e+00> : vector<2x16x16xf32>
    %14 = tpu.matmul %9, %11, %cst_9 {dimension_numbers = #tpu.dot_dimension_numbers<[2], [2], [1], [1], [0, 0, 0, 1, 1, 1], [0], [0]>} : vector<2x16x32xf32>, vector<2x16x32xf32>, vector<2x16x16xf32> -> vector<2x16x16xf32>
    %cst_10 = arith.constant 0.176776692 : f32
    %15 = vector.broadcast %cst_10 : f32 to vector<2x16x16xf32>
    %16 = arith.mulf %14, %15 : vector<2x16x16xf32>
    %17 = vector.broadcast %6 : vector<2x1x16xf32> to vector<2x16x16xf32>
    %18 = arith.addf %16, %17 : vector<2x16x16xf32>
    %cst_11 = arith.constant dense<0xFF800000> : vector<2x16xf32>
    %19 = vector.multi_reduction <maximumf>, %18, %cst_11 [2] : vector<2x16x16xf32> to vector<2x16xf32>
    %20 = vector.shape_cast %19 : vector<2x16xf32> to vector<2x16x1xf32>
    %21 = vector.broadcast %20 : vector<2x16x1xf32> to vector<2x16x16xf32>
    %22 = arith.subf %18, %21 : vector<2x16x16xf32>
    %23 = math.exp %22 : vector<2x16x16xf32>
    %cst_12 = arith.constant dense<0.000000e+00> : vector<2x16xf32>
    %24 = vector.multi_reduction <add>, %23, %cst_12 [2] : vector<2x16x16xf32> to vector<2x16xf32>
    %25 = vector.shape_cast %24 : vector<2x16xf32> to vector<2x16x1xf32>
    %26 = vector.broadcast %25 : vector<2x16x1xf32> to vector<2x16x16xf32>
    %27 = arith.divf %23, %26 : vector<2x16x16xf32>
    %cst_13 = arith.constant dense<0.000000e+00> : vector<2x16x32xf32>
    %28 = tpu.matmul %27, %13, %cst_13 {dimension_numbers = #tpu.dot_dimension_numbers<[2], [1], [1], [2], [0, 0, 0, 1, 1, 2], [0], [0]>} : vector<2x16x16xf32>, vector<2x16x32xf32>, vector<2x16x32xf32> -> vector<2x16x32xf32>
    %29 = vector.shape_cast %28 : vector<2x16x32xf32> to vector<32x32xf32>
    %c0_14 = arith.constant 0 : index
    %c0_15 = arith.constant 0 : index
    %30 = vector.load %arg4[%c0_14, %c0_15] : memref<128x128xf32, #tpu.memory_space<vmem>>, vector<32x128xf32>
    %cst_16 = arith.constant dense<0.000000e+00> : vector<32x128xf32>
    %31 = tpu.matmul %29, %30, %cst_16 {dimension_numbers = #tpu.dot_dimension_numbers<[1], [0], [0], [1], [0, 0, 1, 1], [], []>} : vector<32x32xf32>, vector<32x128xf32>, vector<32x128xf32> -> vector<32x128xf32>
    %32 = arith.addf %7, %31 : vector<32x128xf32>
    %33 = vector.extract_strided_slice %5 {offsets = [0, 32], sizes = [32, 32], strides = [1, 1]} : vector<32x384xf32> to vector<32x32xf32>
    %34 = vector.shape_cast %33 : vector<32x32xf32> to vector<2x16x32xf32>
    %35 = vector.extract_strided_slice %5 {offsets = [0, 160], sizes = [32, 32], strides = [1, 1]} : vector<32x384xf32> to vector<32x32xf32>
    %36 = vector.shape_cast %35 : vector<32x32xf32> to vector<2x16x32xf32>
    %37 = vector.extract_strided_slice %5 {offsets = [0, 288], sizes = [32, 32], strides = [1, 1]} : vector<32x384xf32> to vector<32x32xf32>
    %38 = vector.shape_cast %37 : vector<32x32xf32> to vector<2x16x32xf32>
    %cst_17 = arith.constant dense<0.000000e+00> : vector<2x16x16xf32>
    %39 = tpu.matmul %34, %36, %cst_17 {dimension_numbers = #tpu.dot_dimension_numbers<[2], [2], [1], [1], [0, 0, 0, 1, 1, 1], [0], [0]>} : vector<2x16x32xf32>, vector<2x16x32xf32>, vector<2x16x16xf32> -> vector<2x16x16xf32>
    %cst_18 = arith.constant 0.176776692 : f32
    %40 = vector.broadcast %cst_18 : f32 to vector<2x16x16xf32>
    %41 = arith.mulf %39, %40 : vector<2x16x16xf32>
    %42 = vector.broadcast %6 : vector<2x1x16xf32> to vector<2x16x16xf32>
    %43 = arith.addf %41, %42 : vector<2x16x16xf32>
    %cst_19 = arith.constant dense<0xFF800000> : vector<2x16xf32>
    %44 = vector.multi_reduction <maximumf>, %43, %cst_19 [2] : vector<2x16x16xf32> to vector<2x16xf32>
    %45 = vector.shape_cast %44 : vector<2x16xf32> to vector<2x16x1xf32>
    %46 = vector.broadcast %45 : vector<2x16x1xf32> to vector<2x16x16xf32>
    %47 = arith.subf %43, %46 : vector<2x16x16xf32>
    %48 = math.exp %47 : vector<2x16x16xf32>
    %cst_20 = arith.constant dense<0.000000e+00> : vector<2x16xf32>
    %49 = vector.multi_reduction <add>, %48, %cst_20 [2] : vector<2x16x16xf32> to vector<2x16xf32>
    %50 = vector.shape_cast %49 : vector<2x16xf32> to vector<2x16x1xf32>
    %51 = vector.broadcast %50 : vector<2x16x1xf32> to vector<2x16x16xf32>
    %52 = arith.divf %48, %51 : vector<2x16x16xf32>
    %cst_21 = arith.constant dense<0.000000e+00> : vector<2x16x32xf32>
    %53 = tpu.matmul %52, %38, %cst_21 {dimension_numbers = #tpu.dot_dimension_numbers<[2], [1], [1], [2], [0, 0, 0, 1, 1, 2], [0], [0]>} : vector<2x16x16xf32>, vector<2x16x32xf32>, vector<2x16x32xf32> -> vector<2x16x32xf32>
    %54 = vector.shape_cast %53 : vector<2x16x32xf32> to vector<32x32xf32>
    %c32 = arith.constant 32 : index
    %c0_22 = arith.constant 0 : index
    %55 = vector.load %arg4[%c32, %c0_22] : memref<128x128xf32, #tpu.memory_space<vmem>>, vector<32x128xf32>
    %cst_23 = arith.constant dense<0.000000e+00> : vector<32x128xf32>
    %56 = tpu.matmul %54, %55, %cst_23 {dimension_numbers = #tpu.dot_dimension_numbers<[1], [0], [0], [1], [0, 0, 1, 1], [], []>} : vector<32x32xf32>, vector<32x128xf32>, vector<32x128xf32> -> vector<32x128xf32>
    %57 = arith.addf %32, %56 : vector<32x128xf32>
    %58 = vector.extract_strided_slice %5 {offsets = [0, 64], sizes = [32, 32], strides = [1, 1]} : vector<32x384xf32> to vector<32x32xf32>
    %59 = vector.shape_cast %58 : vector<32x32xf32> to vector<2x16x32xf32>
    %60 = vector.extract_strided_slice %5 {offsets = [0, 192], sizes = [32, 32], strides = [1, 1]} : vector<32x384xf32> to vector<32x32xf32>
    %61 = vector.shape_cast %60 : vector<32x32xf32> to vector<2x16x32xf32>
    %62 = vector.extract_strided_slice %5 {offsets = [0, 320], sizes = [32, 32], strides = [1, 1]} : vector<32x384xf32> to vector<32x32xf32>
    %63 = vector.shape_cast %62 : vector<32x32xf32> to vector<2x16x32xf32>
    %cst_24 = arith.constant dense<0.000000e+00> : vector<2x16x16xf32>
    %64 = tpu.matmul %59, %61, %cst_24 {dimension_numbers = #tpu.dot_dimension_numbers<[2], [2], [1], [1], [0, 0, 0, 1, 1, 1], [0], [0]>} : vector<2x16x32xf32>, vector<2x16x32xf32>, vector<2x16x16xf32> -> vector<2x16x16xf32>
    %cst_25 = arith.constant 0.176776692 : f32
    %65 = vector.broadcast %cst_25 : f32 to vector<2x16x16xf32>
    %66 = arith.mulf %64, %65 : vector<2x16x16xf32>
    %67 = vector.broadcast %6 : vector<2x1x16xf32> to vector<2x16x16xf32>
    %68 = arith.addf %66, %67 : vector<2x16x16xf32>
    %cst_26 = arith.constant dense<0xFF800000> : vector<2x16xf32>
    %69 = vector.multi_reduction <maximumf>, %68, %cst_26 [2] : vector<2x16x16xf32> to vector<2x16xf32>
    %70 = vector.shape_cast %69 : vector<2x16xf32> to vector<2x16x1xf32>
    %71 = vector.broadcast %70 : vector<2x16x1xf32> to vector<2x16x16xf32>
    %72 = arith.subf %68, %71 : vector<2x16x16xf32>
    %73 = math.exp %72 : vector<2x16x16xf32>
    %cst_27 = arith.constant dense<0.000000e+00> : vector<2x16xf32>
    %74 = vector.multi_reduction <add>, %73, %cst_27 [2] : vector<2x16x16xf32> to vector<2x16xf32>
    %75 = vector.shape_cast %74 : vector<2x16xf32> to vector<2x16x1xf32>
    %76 = vector.broadcast %75 : vector<2x16x1xf32> to vector<2x16x16xf32>
    %77 = arith.divf %73, %76 : vector<2x16x16xf32>
    %cst_28 = arith.constant dense<0.000000e+00> : vector<2x16x32xf32>
    %78 = tpu.matmul %77, %63, %cst_28 {dimension_numbers = #tpu.dot_dimension_numbers<[2], [1], [1], [2], [0, 0, 0, 1, 1, 2], [0], [0]>} : vector<2x16x16xf32>, vector<2x16x32xf32>, vector<2x16x32xf32> -> vector<2x16x32xf32>
    %79 = vector.shape_cast %78 : vector<2x16x32xf32> to vector<32x32xf32>
    %c64 = arith.constant 64 : index
    %c0_29 = arith.constant 0 : index
    %80 = vector.load %arg4[%c64, %c0_29] : memref<128x128xf32, #tpu.memory_space<vmem>>, vector<32x128xf32>
    %cst_30 = arith.constant dense<0.000000e+00> : vector<32x128xf32>
    %81 = tpu.matmul %79, %80, %cst_30 {dimension_numbers = #tpu.dot_dimension_numbers<[1], [0], [0], [1], [0, 0, 1, 1], [], []>} : vector<32x32xf32>, vector<32x128xf32>, vector<32x128xf32> -> vector<32x128xf32>
    %82 = arith.addf %57, %81 : vector<32x128xf32>
    %83 = vector.extract_strided_slice %5 {offsets = [0, 96], sizes = [32, 32], strides = [1, 1]} : vector<32x384xf32> to vector<32x32xf32>
    %84 = vector.shape_cast %83 : vector<32x32xf32> to vector<2x16x32xf32>
    %85 = vector.extract_strided_slice %5 {offsets = [0, 224], sizes = [32, 32], strides = [1, 1]} : vector<32x384xf32> to vector<32x32xf32>
    %86 = vector.shape_cast %85 : vector<32x32xf32> to vector<2x16x32xf32>
    %87 = vector.extract_strided_slice %5 {offsets = [0, 352], sizes = [32, 32], strides = [1, 1]} : vector<32x384xf32> to vector<32x32xf32>
    %88 = vector.shape_cast %87 : vector<32x32xf32> to vector<2x16x32xf32>
    %cst_31 = arith.constant dense<0.000000e+00> : vector<2x16x16xf32>
    %89 = tpu.matmul %84, %86, %cst_31 {dimension_numbers = #tpu.dot_dimension_numbers<[2], [2], [1], [1], [0, 0, 0, 1, 1, 1], [0], [0]>} : vector<2x16x32xf32>, vector<2x16x32xf32>, vector<2x16x16xf32> -> vector<2x16x16xf32>
    %cst_32 = arith.constant 0.176776692 : f32
    %90 = vector.broadcast %cst_32 : f32 to vector<2x16x16xf32>
    %91 = arith.mulf %89, %90 : vector<2x16x16xf32>
    %92 = vector.broadcast %6 : vector<2x1x16xf32> to vector<2x16x16xf32>
    %93 = arith.addf %91, %92 : vector<2x16x16xf32>
    %cst_33 = arith.constant dense<0xFF800000> : vector<2x16xf32>
    %94 = vector.multi_reduction <maximumf>, %93, %cst_33 [2] : vector<2x16x16xf32> to vector<2x16xf32>
    %95 = vector.shape_cast %94 : vector<2x16xf32> to vector<2x16x1xf32>
    %96 = vector.broadcast %95 : vector<2x16x1xf32> to vector<2x16x16xf32>
    %97 = arith.subf %93, %96 : vector<2x16x16xf32>
    %98 = math.exp %97 : vector<2x16x16xf32>
    %cst_34 = arith.constant dense<0.000000e+00> : vector<2x16xf32>
    %99 = vector.multi_reduction <add>, %98, %cst_34 [2] : vector<2x16x16xf32> to vector<2x16xf32>
    %100 = vector.shape_cast %99 : vector<2x16xf32> to vector<2x16x1xf32>
    %101 = vector.broadcast %100 : vector<2x16x1xf32> to vector<2x16x16xf32>
    %102 = arith.divf %98, %101 : vector<2x16x16xf32>
    %cst_35 = arith.constant dense<0.000000e+00> : vector<2x16x32xf32>
    %103 = tpu.matmul %102, %88, %cst_35 {dimension_numbers = #tpu.dot_dimension_numbers<[2], [1], [1], [2], [0, 0, 0, 1, 1, 2], [0], [0]>} : vector<2x16x16xf32>, vector<2x16x32xf32>, vector<2x16x32xf32> -> vector<2x16x32xf32>
    %104 = vector.shape_cast %103 : vector<2x16x32xf32> to vector<32x32xf32>
    %c96 = arith.constant 96 : index
    %c0_36 = arith.constant 0 : index
    %105 = vector.load %arg4[%c96, %c0_36] : memref<128x128xf32, #tpu.memory_space<vmem>>, vector<32x128xf32>
    %cst_37 = arith.constant dense<0.000000e+00> : vector<32x128xf32>
    %106 = tpu.matmul %104, %105, %cst_37 {dimension_numbers = #tpu.dot_dimension_numbers<[1], [0], [0], [1], [0, 0, 1, 1], [], []>} : vector<32x32xf32>, vector<32x128xf32>, vector<32x128xf32> -> vector<32x128xf32>
    %107 = arith.addf %82, %106 : vector<32x128xf32>
    %c0_38 = arith.constant 0 : index
    %c0_39 = arith.constant 0 : index
    %108 = vector.load %arg5[%c0_38, %c0_39] : memref<1x128xf32, #tpu.memory_space<vmem>>, vector<1x128xf32>
    %109 = vector.broadcast %108 : vector<1x128xf32> to vector<32x128xf32>
    %110 = arith.addf %107, %109 : vector<32x128xf32>
    %111 = arith.addf %0, %110 : vector<32x128xf32>
    %c0_40 = arith.constant 0 : index
    %c0_41 = arith.constant 0 : index
    %112 = vector.load %arg6[%c0_40, %c0_41] : memref<1x128xf32, #tpu.memory_space<vmem>>, vector<1x128xf32>
    %c0_42 = arith.constant 0 : index
    %c0_43 = arith.constant 0 : index
    %113 = vector.load %arg7[%c0_42, %c0_43] : memref<1x128xf32, #tpu.memory_space<vmem>>, vector<1x128xf32>
    %cst_44 = arith.constant dense<0.000000e+00> : vector<32xf32>
    %114 = vector.multi_reduction <add>, %111, %cst_44 [1] : vector<32x128xf32> to vector<32xf32>
    %115 = vector.shape_cast %114 : vector<32xf32> to vector<32x1xf32>
    %cst_45 = arith.constant 1.280000e+02 : f32
    %116 = vector.broadcast %cst_45 : f32 to vector<32x1xf32>
    %117 = arith.divf %115, %116 : vector<32x1xf32>
    %118 = vector.broadcast %117 : vector<32x1xf32> to vector<32x128xf32>
    %119 = arith.subf %111, %118 : vector<32x128xf32>
    %120 = arith.mulf %119, %119 : vector<32x128xf32>
    %cst_46 = arith.constant dense<0.000000e+00> : vector<32xf32>
    %121 = vector.multi_reduction <add>, %120, %cst_46 [1] : vector<32x128xf32> to vector<32xf32>
    %122 = vector.shape_cast %121 : vector<32xf32> to vector<32x1xf32>
    %cst_47 = arith.constant 1.280000e+02 : f32
    %123 = vector.broadcast %cst_47 : f32 to vector<32x1xf32>
    %124 = arith.divf %122, %123 : vector<32x1xf32>
    %cst_48 = arith.constant 9.99999974E-6 : f32
    %125 = vector.broadcast %cst_48 : f32 to vector<32x1xf32>
    %126 = arith.addf %124, %125 : vector<32x1xf32>
    %127 = math.rsqrt %126 : vector<32x1xf32>
    %128 = vector.broadcast %127 : vector<32x1xf32> to vector<32x128xf32>
    %129 = arith.mulf %119, %128 : vector<32x128xf32>
    %130 = vector.broadcast %112 : vector<1x128xf32> to vector<32x128xf32>
    %131 = arith.mulf %129, %130 : vector<32x128xf32>
    %132 = vector.broadcast %113 : vector<1x128xf32> to vector<32x128xf32>
    %133 = arith.addf %131, %132 : vector<32x128xf32>
    %c0_49 = arith.constant 0 : index
    %c0_50 = arith.constant 0 : index
    %134 = vector.load %arg8[%c0_49, %c0_50] : memref<128x512xf32, #tpu.memory_space<vmem>>, vector<128x512xf32>
    %cst_51 = arith.constant dense<0.000000e+00> : vector<32x512xf32>
    %135 = tpu.matmul %133, %134, %cst_51 {dimension_numbers = #tpu.dot_dimension_numbers<[1], [0], [0], [1], [0, 0, 1, 1], [], []>} : vector<32x128xf32>, vector<128x512xf32>, vector<32x512xf32> -> vector<32x512xf32>
    %c0_52 = arith.constant 0 : index
    %c0_53 = arith.constant 0 : index
    %136 = vector.load %arg9[%c0_52, %c0_53] : memref<1x512xf32, #tpu.memory_space<vmem>>, vector<1x512xf32>
    %137 = vector.broadcast %136 : vector<1x512xf32> to vector<32x512xf32>
    %138 = arith.addf %135, %137 : vector<32x512xf32>
    %cst_54 = arith.constant 5.000000e-01 : f32
    %139 = vector.broadcast %cst_54 : f32 to vector<32x512xf32>
    %140 = arith.mulf %139, %138 : vector<32x512xf32>
    %cst_55 = arith.constant 4.471500e-02 : f32
    %141 = vector.broadcast %cst_55 : f32 to vector<32x512xf32>
    %142 = arith.mulf %141, %138 : vector<32x512xf32>
    %143 = arith.mulf %142, %138 : vector<32x512xf32>
    %144 = arith.mulf %143, %138 : vector<32x512xf32>
    %145 = arith.addf %138, %144 : vector<32x512xf32>
    %cst_56 = arith.constant 0.797884583 : f32
    %146 = vector.broadcast %cst_56 : f32 to vector<32x512xf32>
    %147 = arith.mulf %146, %145 : vector<32x512xf32>
    %148 = math.tanh %147 : vector<32x512xf32>
    %cst_57 = arith.constant 1.000000e+00 : f32
    %149 = vector.broadcast %cst_57 : f32 to vector<32x512xf32>
    %150 = arith.addf %149, %148 : vector<32x512xf32>
    %151 = arith.mulf %140, %150 : vector<32x512xf32>
    %c0_58 = arith.constant 0 : index
    %c0_59 = arith.constant 0 : index
    %152 = vector.load %arg10[%c0_58, %c0_59] : memref<512x128xf32, #tpu.memory_space<vmem>>, vector<512x128xf32>
    %cst_60 = arith.constant dense<0.000000e+00> : vector<32x128xf32>
    %153 = tpu.matmul %151, %152, %cst_60 {dimension_numbers = #tpu.dot_dimension_numbers<[1], [0], [0], [1], [0, 0, 1, 1], [], []>} : vector<32x512xf32>, vector<512x128xf32>, vector<32x128xf32> -> vector<32x128xf32>
    %c0_61 = arith.constant 0 : index
    %c0_62 = arith.constant 0 : index
    %154 = vector.load %arg11[%c0_61, %c0_62] : memref<1x128xf32, #tpu.memory_space<vmem>>, vector<1x128xf32>
    %155 = vector.broadcast %154 : vector<1x128xf32> to vector<32x128xf32>
    %156 = arith.addf %153, %155 : vector<32x128xf32>
    %157 = arith.addf %133, %156 : vector<32x128xf32>
    %c0_63 = arith.constant 0 : index
    %c0_64 = arith.constant 0 : index
    %158 = vector.load %arg12[%c0_63, %c0_64] : memref<1x128xf32, #tpu.memory_space<vmem>>, vector<1x128xf32>
    %c0_65 = arith.constant 0 : index
    %c0_66 = arith.constant 0 : index
    %159 = vector.load %arg13[%c0_65, %c0_66] : memref<1x128xf32, #tpu.memory_space<vmem>>, vector<1x128xf32>
    %cst_67 = arith.constant dense<0.000000e+00> : vector<32xf32>
    %160 = vector.multi_reduction <add>, %157, %cst_67 [1] : vector<32x128xf32> to vector<32xf32>
    %161 = vector.shape_cast %160 : vector<32xf32> to vector<32x1xf32>
    %cst_68 = arith.constant 1.280000e+02 : f32
    %162 = vector.broadcast %cst_68 : f32 to vector<32x1xf32>
    %163 = arith.divf %161, %162 : vector<32x1xf32>
    %164 = vector.broadcast %163 : vector<32x1xf32> to vector<32x128xf32>
    %165 = arith.subf %157, %164 : vector<32x128xf32>
    %166 = arith.mulf %165, %165 : vector<32x128xf32>
    %cst_69 = arith.constant dense<0.000000e+00> : vector<32xf32>
    %167 = vector.multi_reduction <add>, %166, %cst_69 [1] : vector<32x128xf32> to vector<32xf32>
    %168 = vector.shape_cast %167 : vector<32xf32> to vector<32x1xf32>
    %cst_70 = arith.constant 1.280000e+02 : f32
    %169 = vector.broadcast %cst_70 : f32 to vector<32x1xf32>
    %170 = arith.divf %168, %169 : vector<32x1xf32>
    %cst_71 = arith.constant 9.99999974E-6 : f32
    %171 = vector.broadcast %cst_71 : f32 to vector<32x1xf32>
    %172 = arith.addf %170, %171 : vector<32x1xf32>
    %173 = math.rsqrt %172 : vector<32x1xf32>
    %174 = vector.broadcast %173 : vector<32x1xf32> to vector<32x128xf32>
    %175 = arith.mulf %165, %174 : vector<32x128xf32>
    %176 = vector.broadcast %158 : vector<1x128xf32> to vector<32x128xf32>
    %177 = arith.mulf %175, %176 : vector<32x128xf32>
    %178 = vector.broadcast %159 : vector<1x128xf32> to vector<32x128xf32>
    %179 = arith.addf %177, %178 : vector<32x128xf32>
    %c0_72 = arith.constant 0 : index
    %c0_73 = arith.constant 0 : index
    %180 = vector.load %arg14[%c0_72, %c0_73] : memref<32x128xf32, #tpu.memory_space<vmem>>, vector<32x128xf32>
    tpu.vector_store %arg14[%c0_72, %c0_73], %179 {strides = array<i32>} : memref<32x128xf32, #tpu.memory_space<vmem>>, vector<32x128xf32>,
    return
  }
}

</mosaic_0001>

<bundles_post_ra>
// kernel: roberta_binary_class_forward.4
= control target key start
LH: loop header
LB: loop body
LE: loop exit
PB: predicated region body
PF: predicated region fallthrough
CT: control target
= control target key end

     0   :  { %v142_v4 = vmov 128.0   ;;  %s203_s0 = inlined_call_operand.vmem [shape: f32[32,128], index: 0, kind: input, shape index: {}]   ;;  %s204_s1 = inlined_call_operand.vmem [shape: f32[1,128], index: 1, kind: input, shape index: {}]   ;;  %s205_s2 = inlined_call_operand.vmem [shape: f32[1,128], index: 2, kind: input, shape index: {}]   ;;  %s206_s3 = inlined_call_operand.vmem [shape: f32[32,128], index: 3, kind: output, shape index: {}]  }
   0x1   :  { %v16_v0 = vld [vmem:[%s203_s0 + $0x10] sm:$0xff]  ;;  %v14_v1 = vld [vmem:[%s203_s0] sm:$0xff]  ;;  %v17_v2 = vld [vmem:[%s203_s0 + $0x18] sm:$0xff]  ;;  %132 = vrcp.f32 %v142_v4 }
   0x2   :  { %22 = vadd.xlane.f32.xlu1 %v16_v0  ;;  %18 = vadd.xlane.f32.xlu0 %v14_v1  ;;  %v15_v3 = vld [vmem:[%s203_s0 + $0x8] sm:$0xff]  ;;  %v130_v53 = vld [vmem:[%s204_s1] ss:$0 sm:$0xff] }
   0x3   :  { %v131_v58 = vld [vmem:[%s205_s2] ss:$0 sm:$0xff] }
   0x7   :  { %v133_v5 = vpop.eup %132 }
   0x8   :  { %v27_v6 = vmul.f32 128.0, %v133_v5  ;;  %vm31_vm0 = vweird.f32 %v133_v5 }
   0xa   :  { %24 = vadd.xlane.f32.xlu1 %v17_v2  ;;  %20 = vadd.xlane.f32.xlu0 %v15_v3  ;;  %v28_v7 = vsub.f32 1.0, %v27_v6 }
   0xc   :  { %v29_v8 = vmul.f32 %v133_v5, %v28_v7 }
   0xe   :  { %v30_v9 = vadd.f32 %v133_v5, %v29_v8 }
  0x10   :  { %v32_v10 = vsel %vm31_vm0, %v133_v5, %v30_v9 }
  0x75   :  { %v23_v11 = vpop.xlane.xlu1 %22  ;;  %v19_v12 = vpop.xlane.xlu0 %18 }
  0x76   :  { %v35_v13 = vmul.f32 %v32_v10, %v23_v11  ;;  %v33_v14 = vmul.f32 %v32_v10, %v19_v12 }
  0x78   :  { %v39_v15 = vsub.f32 %v16_v0, %v35_v13  ;;  %v37_v16 = vsub.f32 %v14_v1, %v33_v14 }
  0x7a   :  { %v43_v17 = vmul.f32 %v39_v15, %v39_v15  ;;  %v41_v18 = vmul.f32 %v37_v16, %v37_v16 }
  0x7c   :  { %49 = vadd.xlane.f32.xlu0 %v43_v17  ;;  %45 = vadd.xlane.f32.xlu2 %v41_v18 }
  0x7d   :  { %v25_v19 = vpop.xlane.xlu1 %24  ;;  %v21_v20 = vpop.xlane.xlu0 %20 }
  0x7e   :  { %v36_v21 = vmul.f32 %v32_v10, %v25_v19  ;;  %v34_v22 = vmul.f32 %v32_v10, %v21_v20 }
  0x80   :  { %v175_v23 = vsub.f32 %v17_v2, %v36_v21  ;;  %v177_v24 = vsub.f32 %v15_v3, %v34_v22 }
  0x82   :  { %v44_v25 = vmul.f32 %v175_v23, %v175_v23  ;;  %v42_v26 = vmul.f32 %v177_v24, %v177_v24 }
  0x84   :  { %51 = vadd.xlane.f32.xlu1 %v44_v25  ;;  %47 = vadd.xlane.f32.xlu2 %v42_v26 }
  0xef   :  { %v46_v27 = vpop.xlane.xlu2 %45  ;;  %v50_v28 = vpop.xlane.xlu0 %49 }
  0xf0   :  { %v53_v29 = vmul.f32 %v46_v27, %v32_v10  ;;  %v55_v30 = vmul.f32 %v50_v28, %v32_v10 }
  0xf2   :  { %v57_v31 = vadd.f32 1e-05, %v53_v29  ;;  %v59_v32 = vadd.f32 1e-05, %v55_v30 }
  0xf4   :  { %134 = vrsqrt.f32 %v57_v31  ;;  %vm67_vm3 = vweird.f32 %v57_v31  ;;  %vm87_vm5 = vweird.f32 %v59_v32 }
  0xf5   :  { %136 = vrsqrt.f32 %v59_v32 }
  0xf7   :  { %v52_v33 = vpop.xlane.xlu1 %51  ;;  %v48_v34 = vpop.xlane.xlu2 %47 }
  0xf8   :  { %v56_v35 = vmul.f32 %v52_v33, %v32_v10  ;;  %v54_v36 = vmul.f32 %v48_v34, %v32_v10 }
  0xfa   :  { %v135_v37 = vpop.eup %134  ;;  %v60_v38 = vadd.f32 1e-05, %v56_v35  ;;  %v58_v39 = vadd.f32 1e-05, %v54_v36 }
  0xfb   :  { %v137_v40 = vpop.eup %136  ;;  %v62_v41 = vmul.f32 %v135_v37, %v57_v31  ;;  %vm68_vm1 = vweird.f32 %v135_v37 }
  0xfc   :  { %v82_v42 = vmul.f32 %v137_v40, %v59_v32  ;;  %138 = vrsqrt.f32 %v60_v38  ;;  %vm88_vm2 = vweird.f32 %v137_v40  ;;  %vm69_vm4 = vmor %vm67_vm3, %vm68_vm1  ;;  %vm97_vm9 = vweird.f32 %v60_v38 }
  0xfd   :  { %v63_v43 = vmul.f32 %v135_v37, %v62_v41  ;;  %140 = vrsqrt.f32 %v58_v39  ;;  %vm89_vm6 = vmor %vm87_vm5, %vm88_vm2  ;;  %vm77_vm11 = vweird.f32 %v58_v39 }
  0xfe   :  { %v83_v44 = vmul.f32 %v137_v40, %v82_v42 }
  0xff   :  { %v64_v45 = vmul.f32 0.5, %v63_v43 }
 0x100   :  { %v84_v46 = vmul.f32 0.5, %v83_v44 }
 0x101   :  { %v65_v47 = vsub.f32 1.5, %v64_v45 }
 0x102   :  { %v139_v48 = vpop.eup %138  ;;  %v85_v49 = vsub.f32 1.5, %v84_v46 }
 0x103   :  { %v141_v50 = vpop.eup %140  ;;  %v66_v51 = vmul.f32 %v135_v37, %v65_v47  ;;  %v92_v52 = vmul.f32 %v139_v48, %v60_v38  ;;  %vm98_vm7 = vweird.f32 %v139_v48 }
 0x104   :  { %v86_v54 = vmul.f32 %v137_v40, %v85_v49  ;;  %v72_v55 = vmul.f32 %v141_v50, %v58_v39  ;;  %vm78_vm8 = vweird.f32 %v141_v50  ;;  %vm99_vm10 = vmor %vm97_vm9, %vm98_vm7 }
 0x105   :  { %v70_v56 = vsel %vm69_vm4, %v135_v37, %v66_v51  ;;  %v93_v57 = vmul.f32 %v139_v48, %v92_v52  ;;  %vm79_vm12 = vmor %vm77_vm11, %vm78_vm8 }
 0x106   :  { %v101_v59 = vmul.f32 %v70_v56, %v37_v16  ;;  %v90_v60 = vsel %vm89_vm6, %v137_v40, %v86_v54  ;;  %v73_v61 = vmul.f32 %v141_v50, %v72_v55 }
 0x107   :  { %v103_v62 = vmul.f32 %v90_v60, %v39_v15  ;;  %v94_v63 = vmul.f32 0.5, %v93_v57 }
 0x108   :  { %v109_v0 = vmul.f32 %v130_v53, %v101_v59  ;;  %v74_v1 = vmul.f32 0.5, %v73_v61 }
 0x109   :  { %v111_v2 = vmul.f32 %v130_v53, %v103_v62  ;;  %v95_v3 = vsub.f32 1.5, %v94_v63 }
 0x10a   :  { %v117_v4 = vadd.f32 %v131_v58, %v109_v0  ;;  %v75_v5 = vsub.f32 1.5, %v74_v1 }
 0x10b   :  { %v119_v6 = vadd.f32 %v131_v58, %v111_v2  ;;  %v96_v7 = vmul.f32 %v139_v48, %v95_v3 }
 0x10c   :  { %121 = vst [vmem:[%s206_s3] sm:$0xff] %v117_v4  ;;  %v76_v8 = vmul.f32 %v141_v50, %v75_v5 }
 0x10d   :  { %123 = vst [vmem:[%s206_s3 + $0x10] sm:$0xff] %v119_v6  ;;  %v100_v9 = vsel %vm99_vm10, %v139_v48, %v96_v7 }
 0x10e   :  { %v104_v10 = vmul.f32 %v100_v9, %v175_v23  ;;  %v80_v11 = vsel %vm79_vm12, %v141_v50, %v76_v8 }
 0x10f   :  { %v102_v12 = vmul.f32 %v80_v11, %v177_v24 }
 0x110   :  { %v112_v13 = vmul.f32 %v130_v53, %v104_v10 }
 0x111   :  { %v110_v14 = vmul.f32 %v130_v53, %v102_v12 }
 0x112   :  { %v120_v15 = vadd.f32 %v131_v58, %v112_v13 }
 0x113   :  { %v118_v16 = vadd.f32 %v131_v58, %v110_v14 }
 0x114   :  { %124 = vst [vmem:[%s206_s3 + $0x18] sm:$0xff] %v120_v15 }
 0x115   :  { %122 = vst [vmem:[%s206_s3 + $0x8] sm:$0xff] %v118_v16 }

// kernel: roberta_binary_class_forward.7
= control target key start
LH: loop header
LB: loop body
LE: loop exit
PB: predicated region body
PF: predicated region fallthrough
CT: control target
= control target key end

     0   :  { %s186_s0 = inlined_call_operand.vmem [shape: f32[2,128], index: 0, kind: input, shape index: {}]   ;;  %s187_s1 = inlined_call_operand.hbm [shape: f32[128,128], index: 1, kind: input, shape index: {}]   ;;  %s188_s2 = inlined_call_operand.vmem [shape: f32[1,128], index: 2, kind: input, shape index: {}]   ;;  %s189_s3 = inlined_call_operand.vmem [shape: f32[1,128], index: 3, kind: input, shape index: {}]   ;;  %s190_s4 = inlined_call_operand.<no memory space> [shape: f32[1,1], index: 4, kind: input, shape index: {}]   ;;  %s191_s5 = inlined_call_operand.vmem [shape: f32[2,1], index: 5, kind: output, shape index: {}]  }
   0x1   :  { %v10_v0 = vstv %s190_s4 }
   0x2   :  { %11 = vst [vmem:[#allocation2] sm:$0x1] %v10_v0 }
   0x3   :  { %12 = vsyncpa [#allocation4], 0  ;;  %s19_s22 = sshll.u32 %s187_s1, 4  ;;  %s135_s23 = smov [#allocation3]   ;;  %s20_s22 = int_to_ptr.hbm [resolvable:$true] %s19_s22 }
   0x4   :  { %s21_s24 = sshll.u32 %s135_s23, 4  ;;  %s136_s25 = smov 128   ;;  %s22_s24 = int_to_ptr.vmem [resolvable:$true] %s21_s24 }
   0x5   :  { %s137_s26 = smov 8  }
   0x6   :  { %27 = dma.hbm_to_vmem [thread:$0]  %s20_s22, 2048, %s22_s24, [#allocation4], %s136_s25, %s136_s25, %s137_s26  }
   0x7   :  { %133 = dma.done.wait [#allocation4], 2048  }
   0x8   :  { %134 = vsyncadd [#allocation4], 4294965248  ;;  %v54_v1 = vld [vmem:[#allocation3 + $0x78] sm:$0xff]  ;;  %v53_v2 = vld [vmem:[#allocation3 + $0x70] sm:$0xff]  ;;  %vm85_vm0 = vcmask 1041408   ;;  %vm94_vm1 = vcmask 1024  }
   0x9   :  { %59 = vmatpush.msra.mxu0 %v54_v1  ;;  %v52_v3 = vld [vmem:[#allocation3 + $0x68] sm:$0xff]  ;;  %v51_v4 = vld [vmem:[#allocation3 + $0x60] sm:$0xff]  ;;  %v50_v5 = vld [vmem:[#allocation3 + $0x58] sm:$0xff] }
   0xa   :  { %v49_v6 = vld [vmem:[#allocation3 + $0x50] sm:$0xff]  ;;  %v48_v7 = vld [vmem:[#allocation3 + $0x48] sm:$0xff]  ;;  %v47_v8 = vld [vmem:[#allocation3 + $0x40] sm:$0xff] }
   0xb   :  { %60 = vmatpush.msra.mxu0 %v53_v2  ;;  %v46_v9 = vld [vmem:[#allocation3 + $0x38] sm:$0xff]  ;;  %v45_v10 = vld [vmem:[#allocation3 + $0x30] sm:$0xff]  ;;  %v44_v11 = vld [vmem:[#allocation3 + $0x28] sm:$0xff] }
   0xc   :  { %v43_v12 = vld [vmem:[#allocation3 + $0x20] sm:$0xff]  ;;  %v42_v13 = vld [vmem:[#allocation3 + $0x18] sm:$0xff]  ;;  %v41_v14 = vld [vmem:[#allocation3 + $0x10] sm:$0xff] }
   0xd   :  { %61 = vmatpush.msra.mxu0 %v52_v3  ;;  %v40_v15 = vld [vmem:[#allocation3 + $0x8] sm:$0xff]  ;;  %v39_v16 = vld [vmem:[#allocation3] sm:$0xff]  ;;  %v104_v18 = vld [vmem:[%s188_s2] ss:$0 sm:$0xff] }
   0xe   :  { %v38_v17 = vld [vmem:[%s186_s0] sm:$0x3] }
   0xf   :  { %62 = vmatpush.msra.mxu0 %v51_v4  ;;  %v105_v21 = vld [vmem:[%s189_s3] ss:$0 sm:$0xff] }
  0x10   :  { %v106_v25 = vld [vmem:[#allocation2] ss:$0 sm:$0xff] }
  0x11   :  { %63 = vmatpush.msra.mxu0 %v50_v5 }
  0x13   :  { %64 = vmatpush.msra.mxu0 %v49_v6 }
  0x15   :  { %65 = vmatpush.msra.mxu0 %v48_v7 }
  0x17   :  { %66 = vmatpush.msra.mxu0 %v47_v8 }
  0x19   :  { %67 = vmatpush.msra.mxu0 %v46_v9 }
  0x1b   :  { %68 = vmatpush.msra.mxu0 %v45_v10 }
  0x1d   :  { %69 = vmatpush.msra.mxu0 %v44_v11 }
  0x1f   :  { %70 = vmatpush.msra.mxu0 %v43_v12 }
  0x21   :  { %71 = vmatpush.msra.mxu0 %v42_v13 }
  0x23   :  { %72 = vmatpush.msra.mxu0 %v41_v14 }
  0x25   :  { %73 = vmatpush.msra.mxu0 %v40_v15 }
  0x27   :  { %74 = vmatpush.msra.mxu0 %v39_v16 }
  0x28   :  { %75 = vmatmul.f32.vlgmr.msra.gmra.mxu0 %v38_v17 }
  0xa5   :  { %v76_v19 = vpop.f32.mrf.mxu0 }
  0xa6   :  { %v77_v20 = vadd.f32 %v104_v18, %v76_v19 }
  0xa8   :  { %107 = vtanh.f32 %v77_v20 }
  0xae   :  { %v108_v22 = vpop.eup %107 }
  0xaf   :  { %v84_v23 = vmul.f32 %v108_v22, %v105_v21 }
  0xb1   :  { %v86_v24 = vsel %vm85_vm0, %v84_v23, 0.0 }
  0xb2   :  { %87 = vadd.xlane.f32.xlu0 %v86_v24 }
 0x125   :  { %v88_v26 = vpop.xlane.xlu0 %87 }
 0x126   :  { %v93_v27 = vadd.f32 %v106_v25, %v88_v26 }
 0x128   :  { %95 = vst.msk [vmem:[%s191_s5] sm:$0x3] %vm94_vm1, %v93_v27 }
 0x129   :  { %100 = vsyncpa [#allocation4], 1 }

// kernel: roberta_binary_class_forward.5
= control target key start
LH: loop header
LB: loop body
LE: loop exit
PB: predicated region body
PF: predicated region fallthrough
CT: control target
= control target key end

     0   :  { %19 = vsyncpa [#allocation3], 0  ;;  %s3433_s0 = inlined_call_operand.vmem [shape: f32[32,128], index: 0, kind: input, shape index: {}]   ;;  %s3434_s1 = inlined_call_operand.vmem [shape: f32[2,1,16], index: 1, kind: input, shape index: {}]   ;;  %s3435_s2 = inlined_call_operand.vmem [shape: f32[128,384], index: 2, kind: input, shape index: {}]   ;;  %s3436_s3 = inlined_call_operand.vmem [shape: f32[1,384], index: 3, kind: input, shape index: {}]   ;;  %s3437_s4 = inlined_call_operand.hbm [shape: f32[128,128], index: 4, kind: input, shape index: {}]   ;;  %s3438_s5 = inlined_call_operand.vmem [shape: f32[1,128], index: 5, kind: input, shape index: {}]   ;;  %s3439_s6 = inlined_call_operand.vmem [shape: f32[1,128], index: 6, kind: input, shape index: {}]   ;;  %s3440_s7 = inlined_call_operand.vmem [shape: f32[1,128], index: 7, kind: input, shape index: {}]   ;;  %s3441_s8 = inlined_call_operand.vmem [shape: f32[128,512], index: 8, kind: input, shape index: {}]   ;;  %s3442_s9 = inlined_call_operand.vmem [shape: f32[1,512], index: 9, kind: input, shape index: {}]   ;;  %s3443_s10 = inlined_call_operand.hbm [shape: f32[512,128], index: 10, kind: input, shape index: {}]   ;;  %s3444_s11 = inlined_call_operand.vmem [shape: f32[1,128], index: 11, kind: input, shape index: {}]   ;;  %s3445_s12 = inlined_call_operand.vmem [shape: f32[1,128], index: 12, kind: input, shape index: {}]   ;;  %s3446_s13 = inlined_call_operand.vmem [shape: f32[1,128], index: 13, kind: input, shape index: {}]   ;;  %s3447_s14 = inlined_call_operand.vmem [shape: f32[32,128], index: 14, kind: output, shape index: {}]  }
   0x1   :  { %s33_s15 = sshll.u32 %s3437_s4, 4  ;;  %s34_s15 = int_to_ptr.hbm [resolvable:$true] %s33_s15 }
   0x2   :  { %20 = vsyncpa [#allocation5], 0  ;;  %s2441_s16 = smov [#allocation2]   ;;  %s56_s20 = sshll.u32 %s3443_s10, 4  ;;  %s57_s20 = int_to_ptr.hbm [resolvable:$true] %s56_s20 }
   0x3   :  { %s35_s17 = sshll.u32 %s2441_s16, 4  ;;  %s2442_s21 = smov 128   ;;  %s36_s17 = int_to_ptr.vmem [resolvable:$true] %s35_s17 }
   0x4   :  { %s2443_s22 = smov 8   ;;  %s2444_s23 = smov [#allocation4]  }
   0x5   :  { %41 = dma.hbm_to_vmem [thread:$0]  %s34_s15, 2048, %s36_s17, [#allocation3], %s2442_s21, %s2442_s21, %s2443_s22  }
   0x6   :  { %s58_s24 = sshll.u32 %s2444_s23, 4  ;;  %s59_s24 = int_to_ptr.vmem [resolvable:$true] %s58_s24 }
   0x7   :  { %64 = dma.hbm_to_vmem [thread:$0]  %s57_s20, 8192, %s59_s24, [#allocation5], %s2442_s21, %s2442_s21, %s2443_s22  }
   0x8   :  { %2437 = dma.done.wait [#allocation3], 2048  }
   0x9   :  { %2438 = vsyncadd [#allocation3], 4294965248 }
   0xa   :  { %2439 = dma.done.wait [#allocation5], 8192  }
   0xb   :  { %2440 = vsyncadd [#allocation5], 4294959104  ;;  %v129_v0 = vld [vmem:[%s3435_s2 + $0x170] sm:$0xff]  ;;  %v126_v1 = vld [vmem:[%s3435_s2 + $0x158] sm:$0xff]  ;;  %s2445_s4 = smov 96   ;;  %vm228_vm0 = vcmask 261120  }
   0xc   :  { %168 = vmatpush.msra.mxu1 %v129_v0  ;;  %v123_v2 = vld [vmem:[%s3435_s2 + $0x140] sm:$0xff]  ;;  %v128_v3 = vld [vmem:[%s3435_s2 + $0x168] sm:$0xff]  ;;  %v125_v5 = vld [vmem:[%s3435_s2 + $0x150] sm:$0xff]  ;;  %vm313_vm1 = vcmask 130048   ;;  %s2446_s24 = smov 64  }
   0xd   :  { %v120_v4 = vld [vmem:[%s3435_s2 + $0x128] sm:$0xff]  ;;  %139 = vmatpush.msra.mxu0 %v128_v3  ;;  %v122_v6 = vld [vmem:[%s3435_s2 + $0x138] sm:$0xff]  ;;  %v117_v7 = vld [vmem:[%s3435_s2 + $0x110] sm:$0xff] }
   0xe   :  { %169 = vmatpush.msra.mxu1 %v126_v1  ;;  %v119_v8 = vld [vmem:[%s3435_s2 + $0x120] sm:$0xff]  ;;  %v114_v9 = vld [vmem:[%s3435_s2 + $0xf8] sm:$0xff]  ;;  %v116_v10 = vld [vmem:[%s3435_s2 + $0x108] sm:$0xff] }
   0xf   :  { %140 = vmatpush.msra.mxu0 %v125_v5  ;;  %v111_v11 = vld [vmem:[%s3435_s2 + $0xe0] sm:$0xff]  ;;  %v108_v12 = vld [vmem:[%s3435_s2 + $0xc8] sm:$0xff]  ;;  %v113_v13 = vld [vmem:[%s3435_s2 + $0xf0] sm:$0xff] }
  0x10   :  { %170 = vmatpush.msra.mxu1 %v123_v2  ;;  %v110_v14 = vld [vmem:[%s3435_s2 + $0xd8] sm:$0xff]  ;;  %v105_v15 = vld [vmem:[%s3435_s2 + $0xb0] sm:$0xff]  ;;  %v107_v16 = vld [vmem:[%s3435_s2 + $0xc0] sm:$0xff] }
  0x11   :  { %141 = vmatpush.msra.mxu0 %v122_v6  ;;  %v102_v17 = vld [vmem:[%s3435_s2 + $0x98] sm:$0xff]  ;;  %v104_v18 = vld [vmem:[%s3435_s2 + $0xa8] sm:$0xff]  ;;  %v99_v19 = vld [vmem:[%s3435_s2 + $0x80] sm:$0xff] }
  0x12   :  { %171 = vmatpush.msra.mxu1 %v120_v4  ;;  %v101_v20 = vld [vmem:[%s3435_s2 + $0x90] sm:$0xff]  ;;  %v96_v21 = vld [vmem:[%s3435_s2 + $0x68] sm:$0xff]  ;;  %v98_v22 = vld [vmem:[%s3435_s2 + $0x78] sm:$0xff] }
  0x13   :  { %142 = vmatpush.msra.mxu0 %v119_v8  ;;  %v93_v23 = vld [vmem:[%s3435_s2 + $0x50] sm:$0xff]  ;;  %v95_v24 = vld [vmem:[%s3435_s2 + $0x60] sm:$0xff]  ;;  %v90_v25 = vld [vmem:[%s3435_s2 + $0x38] sm:$0xff] }
  0x14   :  { %172 = vmatpush.msra.mxu1 %v117_v7  ;;  %v92_v26 = vld [vmem:[%s3435_s2 + $0x48] sm:$0xff]  ;;  %v87_v27 = vld [vmem:[%s3435_s2 + $0x20] sm:$0xff]  ;;  %v89_v28 = vld [vmem:[%s3435_s2 + $0x30] sm:$0xff] }
  0x15   :  { %143 = vmatpush.msra.mxu0 %v116_v10  ;;  %v84_v29 = vld [vmem:[%s3435_s2 + $0x8] sm:$0xff]  ;;  %v2623_v30 = vld [vmem:[%s3433_s0] sm:$0xff]  ;;  %v86_v31 = vld [vmem:[%s3435_s2 + $0x18] sm:$0xff] }
  0x16   :  { %173 = vmatpush.msra.mxu1 %v114_v9  ;;  %v83_v32 = vld [vmem:[%s3435_s2] sm:$0xff]  ;;  %v2636_v33 = vld [vmem:[%s3433_s0 + $0x8] sm:$0xff]  ;;  %v2643_v34 = vld [vmem:[%s3433_s0 + $0x10] sm:$0xff] }
  0x17   :  { %144 = vmatpush.msra.mxu0 %v113_v13  ;;  %v2650_v35 = vld [vmem:[%s3436_s3] sm:$0x7]  ;;  %v82_v46 = vld [vmem:[%s3433_s0 + $0x18] sm:$0xff]  ;;  %v124_v49 = vld [vmem:[%s3435_s2 + $0x148] sm:$0xff] }
  0x18   :  { %174 = vmatpush.msra.mxu1 %v111_v11  ;;  %v2653_v37 = vperm.slane %v2650_v35, 0  ;;  %v2661_v40 = vperm.slane %v2650_v35, 1  ;;  %v130_v47 = vld [vmem:[%s3435_s2 + $0x178] sm:$0xff]  ;;  %v127_v48 = vld [vmem:[%s3435_s2 + $0x160] sm:$0xff]  ;;  %v121_v50 = vld [vmem:[%s3435_s2 + $0x130] sm:$0xff] }
  0x19   :  { %145 = vmatpush.msra.mxu0 %v110_v14  ;;  %197 = vmatpush.msra.mxu2 %v130_v47  ;;  %v118_v51 = vld [vmem:[%s3435_s2 + $0x118] sm:$0xff]  ;;  %v115_v52 = vld [vmem:[%s3435_s2 + $0x100] sm:$0xff]  ;;  %v112_v53 = vld [vmem:[%s3435_s2 + $0xe8] sm:$0xff] }
  0x1a   :  { %175 = vmatpush.msra.mxu1 %v108_v12  ;;  %v109_v54 = vld [vmem:[%s3435_s2 + $0xd0] sm:$0xff]  ;;  %v106_v55 = vld [vmem:[%s3435_s2 + $0xb8] sm:$0xff]  ;;  %v103_v56 = vld [vmem:[%s3435_s2 + $0xa0] sm:$0xff] }
  0x1b   :  { %146 = vmatpush.msra.mxu0 %v107_v16  ;;  %198 = vmatpush.msra.mxu2 %v127_v48  ;;  %v100_v58 = vld [vmem:[%s3435_s2 + $0x88] sm:$0xff]  ;;  %v97_v59 = vld [vmem:[%s3435_s2 + $0x70] sm:$0xff]  ;;  %v94_v60 = vld [vmem:[%s3435_s2 + $0x58] sm:$0xff] }
  0x1c   :  { %176 = vmatpush.msra.mxu1 %v105_v15  ;;  %v91_v61 = vld [vmem:[%s3435_s2 + $0x40] sm:$0xff]  ;;  %v88_v0 = vld [vmem:[%s3435_s2 + $0x28] sm:$0xff]  ;;  %v85_v1 = vld [vmem:[%s3435_s2 + $0x10] sm:$0xff] }
  0x1d   :  { %147 = vmatpush.msra.mxu0 %v104_v18  ;;  %199 = vmatpush.msra.mxu2 %v124_v49  ;;  %v2771_v13 = vld [vmem:[%s3434_s1] ss:$0 sm:$0xff] }
  0x1e   :  { %177 = vmatpush.msra.mxu1 %v102_v17 }
  0x1f   :  { %148 = vmatpush.msra.mxu0 %v101_v20  ;;  %200 = vmatpush.msra.mxu2 %v121_v50 }
  0x20   :  { %178 = vmatpush.msra.mxu1 %v99_v19 }
  0x21   :  { %149 = vmatpush.msra.mxu0 %v98_v22  ;;  %201 = vmatpush.msra.mxu2 %v118_v51 }
  0x22   :  { %179 = vmatpush.msra.mxu1 %v96_v21  ;;  %v2778_v21 = vperm.slane %v2650_v35, 2 }
  0x23   :  { %150 = vmatpush.msra.mxu0 %v95_v24  ;;  %202 = vmatpush.msra.mxu2 %v115_v52 }
  0x24   :  { %180 = vmatpush.msra.mxu1 %v93_v23 }
  0x25   :  { %151 = vmatpush.msra.mxu0 %v92_v26  ;;  %203 = vmatpush.msra.mxu2 %v112_v53 }
  0x26   :  { %181 = vmatpush.msra.mxu1 %v90_v25 }
  0x27   :  { %152 = vmatpush.msra.mxu0 %v89_v28  ;;  %204 = vmatpush.msra.mxu2 %v109_v54  ;;  %v2820_v54 = vld [vmem:[%s3434_s1 + $0x1] ss:$0 sm:$0xff]  ;;  %s2447_s1 = smov 32  }
  0x28   :  { %182 = vmatpush.msra.mxu1 %v87_v27 }
  0x29   :  { %153 = vmatpush.msra.mxu0 %v86_v31  ;;  %205 = vmatpush.msra.mxu2 %v106_v55 }
  0x2a   :  { %183 = vmatpush.msra.mxu1 %v84_v29 }
  0x2b   :  { %184 = vmatmul.f32.vlgmr.msra.gmra.mxu1 %v2623_v30  ;;  %154 = vmatpush.msra.mxu0 %v83_v32 }
  0x2c   :  { %155 = vmatmul.f32.vlgmr.msra.gmra.mxu0 %v2623_v30  ;;  %206 = vmatpush.msra.mxu2 %v103_v56 }
  0x2e   :  { %207 = vmatpush.msra.mxu2 %v100_v58 }
  0x30   :  { %208 = vmatpush.msra.mxu2 %v97_v59 }
  0x32   :  { %209 = vmatpush.msra.mxu2 %v94_v60 }
  0x33   :  { %187 = vmatmul.f32.gmra.mxu1 %v2636_v33 }
  0x34   :  { %158 = vmatmul.f32.gmra.mxu0 %v2636_v33  ;;  %210 = vmatpush.msra.mxu2 %v91_v61 }
  0x36   :  { %211 = vmatpush.msra.mxu2 %v88_v0 }
  0x38   :  { %212 = vmatpush.msra.mxu2 %v85_v1 }
  0x39   :  { %213 = vmatmul.f32.vlgmr.msra.gmra.mxu2 %v2623_v30 }
  0x3b   :  { %190 = vmatmul.f32.gmra.mxu1 %v2643_v34 }
  0x3c   :  { %161 = vmatmul.f32.gmra.mxu0 %v2643_v34 }
  0x41   :  { %216 = vmatmul.f32.gmra.mxu2 %v2636_v33 }
  0x43   :  { %193 = vmatmul.f32.gmra.mxu1 %v82_v46 }
  0x44   :  { %164 = vmatmul.f32.gmra.mxu0 %v82_v46 }
  0x49   :  { %219 = vmatmul.f32.gmra.mxu2 %v2643_v34 }
  0x51   :  { %222 = vmatmul.f32.gmra.mxu2 %v82_v46 }
  0xa8   :  { %v185_v36 = vpop.f32.mrf.mxu1 }
  0xa9   :  { %v156_v38 = vpop.f32.mrf.mxu0  ;;  %v2674_v45 = vadd.f32 %v185_v36, %v2661_v40 }
  0xaa   :  { %v2656_v39 = vadd.f32 %v156_v38, %v2653_v37 }
  0xac   :  { %472 = vrot.lane.b32.xlu1 %v2656_v39, %s2445_s4 }
  0xb0   :  { %v188_v41 = vpop.f32.mrf.mxu1 }
  0xb1   :  { %v2664_v42 = vadd.f32 %v188_v41, %v2661_v40  ;;  %v159_v43 = vpop.f32.mrf.mxu0 }
  0xb2   :  { %v2671_v44 = vadd.f32 %v159_v43, %v2653_v37 }
  0xb3   :  { %478 = vrot.lane.b32.xlu0 %v2664_v42, %s2445_s4  ;;  %2159 = vmatpush.xpose.msk.msra.mxu3 %vm228_vm0, %v2664_v42 }
  0xb4   :  { %474 = vrot.lane.b32.xlu1 %v2671_v44, %s2445_s4 }
  0xb7   :  { %2160 = vmatpush.xpose.msk.msra.mxu3 %vm228_vm0, %v2674_v45 }
  0xb8   :  { %v191_v3 = vpop.f32.mrf.mxu1 }
  0xb9   :  { %v162_v5 = vpop.f32.mrf.mxu0  ;;  %v2748_v7 = vadd.f32 %v191_v3, %v2661_v40 }
  0xba   :  { %2161 = vmatmul.msk.f32.vlgmr.msra.gmra.mxu3 %vm228_vm0, %v2656_v39  ;;  %v2755_v8 = vadd.f32 %v162_v5, %v2653_v37 }
  0xbb   :  { %476 = vrot.lane.b32.xlu0 %v2674_v45, %s2445_s4 }
  0xbc   :  { %v214_v17 = vpop.f32.mrf.mxu2 }
  0xbd   :  { %v215_v24 = vadd.f32 %v214_v17, %v2778_v21 }
  0xc0   :  { %v194_v4 = vpop.f32.mrf.mxu1 }
  0xc1   :  { %v2745_v6 = vadd.f32 %v194_v4, %v2661_v40  ;;  %v165_v9 = vpop.f32.mrf.mxu0 }
  0xc2   :  { %2162 = vmatmul.msk.f32.gmra.mxu3 %vm228_vm0, %v2671_v44  ;;  %v2764_v10 = vadd.f32 %v165_v9, %v2653_v37 }
  0xc3   :  { %517 = vrot.lane.b32.xlu0 %v2745_v6, %s2445_s4  ;;  %2163 = vmatpush.xpose.msk.msrb.mxu3 %vm228_vm0, %v2745_v6 }
  0xc4   :  { %v217_v22 = vpop.f32.mrf.mxu2 }
  0xc5   :  { %v218_v23 = vadd.f32 %v217_v22, %v2778_v21 }
  0xc7   :  { %2164 = vmatpush.xpose.msk.msrb.mxu3 %vm228_vm0, %v2748_v7  ;;  %v2786_v25 = vpack.i.bf16 %v215_v24, %v218_v23 }
  0xca   :  { %2165 = vmatmul.msk.f32.vlgmr.msrb.gmra.mxu3 %vm228_vm0, %v2755_v8 }
  0xcb   :  { %511 = vrot.lane.b32.xlu0 %v2755_v8, %s2445_s4  ;;  %430 = vmatpush.msra.mxu3 %v218_v23 }
  0xcd   :  { %431 = vmatpush.msra.mxu3 %v215_v24 }
  0xd2   :  { %2166 = vmatmul.msk.f32.gmra.mxu3 %vm228_vm0, %v2764_v10 }
 0x11e   :  { %v473_v62 = vpop.permute.xlu1 %472 }
 0x125   :  { %v479_v57 = vpop.permute.xlu0 %478 }
 0x126   :  { %2171 = vmatpush.xpose.msk.msrb.mxu0 %vm228_vm0, %v479_v57  ;;  %v475_v2 = vpop.permute.xlu1 %474 }
 0x12d   :  { %v477_v63 = vpop.permute.xlu0 %476 }
 0x12e   :  { %2172 = vmatpush.xpose.msk.msrb.mxu0 %vm228_vm0, %v477_v63 }
 0x131   :  { %2173 = vmatmul.msk.f32.vlgmr.msrb.gmra.mxu0 %vm228_vm0, %v473_v62 }
 0x135   :  { %v518_v26 = vpop.permute.xlu0 %517 }
 0x136   :  { %2175 = vmatpush.xpose.msk.msra.mxu0 %vm228_vm0, %v518_v26  ;;  %2223 = vmatpush.xpose.msk.msrb.mxu1 %vm228_vm0, %v518_v26 }
 0x139   :  { %2174 = vmatmul.msk.f32.gmra.mxu0 %vm228_vm0, %v475_v2 }
 0x13d   :  { %v258_v27 = vpop.f32.mrf.mxu3  ;;  %v512_v46 = vpop.permute.xlu0 %511 }
 0x13e   :  { %v299_v47 = vmul.f32 0.17677669, %v258_v27 }
 0x140   :  { %v309_v50 = vadd.f32 %v2771_v13, %v299_v47 }
 0x142   :  { %v314_v53 = vsel %vm313_vm1, %v309_v50, -inf }
 0x145   :  { %v261_v28 = vpop.f32.mrf.mxu3 }
 0x146   :  { %v300_v29 = vmul.f32 0.17677669, %v261_v28 }
 0x148   :  { %v2799_v30 = vadd.f32 %v2771_v13, %v300_v29 }
 0x14a   :  { %v317_v31 = vsel %vm313_vm1, %v2799_v30, -inf }
 0x14d   :  { %v293_v51 = vpop.f32.mrf.mxu3 }
 0x14e   :  { %v301_v52 = vmul.f32 0.17677669, %v293_v51 }
 0x150   :  { %v2823_v56 = vadd.f32 %v2820_v54, %v301_v52 }
 0x152   :  { %v320_v59 = vsel %vm313_vm1, %v2823_v56, -inf }
 0x155   :  { %v296_v61 = vpop.f32.mrf.mxu3 }
 0x156   :  { %v302_v62 = vmul.f32 0.17677669, %v296_v61 }
 0x158   :  { %v2831_v63 = vadd.f32 %v2820_v54, %v302_v62 }
 0x15a   :  { %v323_v0 = vsel %vm313_vm1, %v2831_v63, -inf }
 0x1ae   :  { %v505_v11 = vpop.f32.mrf.mxu0 }
 0x1af   :  { %v550_v12 = vmul.f32 0.17677669, %v505_v11 }
 0x1b1   :  { %v554_v14 = vadd.f32 %v2771_v13, %v550_v12 }
 0x1b3   :  { %v558_v15 = vsel %vm313_vm1, %v554_v14, -inf }
 0x1b4   :  { %559 = vmax.xlane.f32.xlu2 %v558_v15 }
 0x1b6   :  { %v508_v16 = vpop.f32.mrf.mxu0 }
 0x1b7   :  { %v551_v18 = vmul.f32 0.17677669, %v508_v16 }
 0x1b9   :  { %v555_v19 = vadd.f32 %v2771_v13, %v551_v18 }
 0x1bb   :  { %v561_v20 = vsel %vm313_vm1, %v555_v19, -inf }
 0x1bc   :  { %562 = vmax.xlane.f32.xlu2 %v561_v20 }
 0x1d4   :  { %515 = vrot.lane.b32.xlu2 %v2748_v7, %s2445_s4 }
 0x1dc   :  { %513 = vrot.lane.b32.xlu2 %v2764_v10, %s2445_s4 }
 0x1e4   :  { %2234 = vrot.lane.b32.xlu2 %v2786_v25, %s2445_s4 }
 0x1ec   :  { %820 = vrot.lane.b32.xlu2 %v2664_v42, %s2446_s24 }
 0x1f4   :  { %814 = vrot.lane.b32.xlu2 %v2656_v39, %s2446_s24 }
 0x1fc   :  { %816 = vrot.lane.b32.xlu2 %v2671_v44, %s2446_s24 }
 0x225   :  { %318 = vmax.xlane.f32.xlu2 %v317_v31 }
 0x227   :  { %v560_v32 = vpop.xlane.xlu2 %559 }
 0x228   :  { %v570_v33 = vsub.f32 %v554_v14, %v560_v32 }
 0x22a   :  { %v574_v34 = vmul.f32 1.442695, %v570_v33 }
 0x22c   :  { %2271 = vpow2.f32 %v574_v34 }
 0x22f   :  { %v563_v35 = vpop.xlane.xlu2 %562 }
 0x230   :  { %v571_v36 = vsub.f32 %v555_v19, %v563_v35 }
 0x232   :  { %v2803_v37 = vpop.eup %2271  ;;  %v576_v38 = vmul.f32 1.442695, %v571_v36 }
 0x233   :  { %v582_v40 = vsel %vm313_vm1, %v2803_v37, 0.0 }
 0x234   :  { %2273 = vpow2.f32 %v576_v38  ;;  %583 = vadd.xlane.f32.xlu1 %v582_v40 }
 0x237   :  { %v516_v41 = vpop.permute.xlu2 %515 }
 0x238   :  { %2176 = vmatpush.xpose.msk.msra.mxu0 %vm228_vm0, %v516_v41  ;;  %2224 = vmatpush.xpose.msk.msrb.mxu1 %vm228_vm0, %v516_v41 }
 0x23a   :  { %v2809_v43 = vpop.eup %2273 }
 0x23b   :  { %2177 = vmatmul.msk.f32.vlgmr.msra.gmra.mxu0 %vm228_vm0, %v512_v46  ;;  %v585_v48 = vsel %vm313_vm1, %v2809_v43, 0.0 }
 0x23c   :  { %586 = vadd.xlane.f32.xlu0 %v585_v48 }
 0x23f   :  { %v514_v49 = vpop.permute.xlu2 %513 }
 0x240   :  { %2178 = vmatmul.msk.f32.vlgmr.msrb.gmra.mxu1 %vm228_vm0, %v514_v49 }
 0x244   :  { %315 = vmax.xlane.f32.xlu0 %v314_v53 }
 0x247   :  { %v2235_v55 = vpop.permute.xlu2 %2234 }
 0x248   :  { %v2236_v57 = vunpack.i.l.bf16 %v2235_v55  ;;  %v2237_v58 = vunpack.i.h.bf16 %v2235_v55 }
 0x24a   :  { %682 = vmatpush.msrb.mxu2 %v2236_v57 }
 0x24c   :  { %321 = vmax.xlane.f32.xlu0 %v320_v59  ;;  %683 = vmatpush.msrb.mxu2 %v2237_v58 }
 0x24d   :  { %818 = vrot.lane.b32.xlu1 %v2674_v45, %s2446_s24 }
 0x24f   :  { %v821_v60 = vpop.permute.xlu2 %820 }
 0x250   :  { %2191 = vmatpush.xpose.msk.msra.mxu2 %vm228_vm0, %v821_v60 }
 0x257   :  { %v815_v1 = vpop.permute.xlu2 %814 }
 0x25f   :  { %v817_v4 = vpop.permute.xlu2 %816 }
 0x277   :  { %324 = vmax.xlane.f32.xlu1 %v323_v0 }
 0x298   :  { %v319_v19 = vpop.xlane.xlu2 %318 }
 0x299   :  { %v327_v32 = vsub.f32 %v2799_v30, %v319_v19 }
 0x29b   :  { %v332_v46 = vmul.f32 1.442695, %v327_v32 }
 0x2a7   :  { %v584_v2 = vpop.xlane.xlu1 %583 }
 0x2a8   :  { %2275 = vrcp.f32 %v584_v2  ;;  %v605_v12 = vand.u32 2147483648, %v584_v2  ;;  %v603_v15 = vand.u32 2147483647, %v584_v2  ;;  %vm599_vm3 = vweird.f32 %v584_v2 }
 0x2aa   :  { %v606_v18 = vor.u32 1.1754944e-38, %v605_v12  ;;  %vm604_vm5 = vcmp.eq.f32.partialorder %v603_v15, 8.507059e+37  ;;  %v731_v12 = vld [vmem:[#allocation2 + $0x38] sm:$0xff]  ;;  %v729_v15 = vld [vmem:[#allocation2 + $0x28] sm:$0xff] }
 0x2ab   :  { %756 = vmatpush.msrb.mxu0 %v731_v12 }
 0x2ae   :  { %v2276_v3 = vpop.eup %2275 }
 0x2af   :  { %v595_v5 = vmul.f32 %v2276_v3, %v584_v2  ;;  %v587_v9 = vpop.xlane.xlu0 %586  ;;  %vm600_vm2 = vweird.f32 %v2276_v3 }
 0x2b0   :  { %2277 = vrcp.f32 %v587_v9  ;;  %vm601_vm4 = vmor %vm599_vm3, %vm600_vm2  ;;  %v620_v33 = vand.u32 2147483648, %v587_v9  ;;  %v618_v38 = vand.u32 2147483647, %v587_v9  ;;  %vm614_vm7 = vweird.f32 %v587_v9 }
 0x2b1   :  { %v596_v11 = vsub.f32 1.0, %v595_v5  ;;  %v220_v5 = vpop.f32.mrf.mxu2 }
 0x2b2   :  { %v621_v47 = vor.u32 1.1754944e-38, %v620_v33  ;;  %vm619_vm9 = vcmp.eq.f32.partialorder %v618_v38, 8.507059e+37 }
 0x2b3   :  { %v597_v14 = vmul.f32 %v2276_v3, %v596_v11 }
 0x2b5   :  { %v598_v16 = vadd.f32 %v2276_v3, %v597_v14  ;;  %v730_v14 = vld [vmem:[#allocation2 + $0x30] sm:$0xff] }
 0x2b6   :  { %v2278_v17 = vpop.eup %2277  ;;  %757 = vmatpush.msrb.mxu0 %v730_v14 }
 0x2b7   :  { %v610_v20 = vmul.f32 %v2278_v17, %v587_v9  ;;  %v316_v22 = vpop.xlane.xlu0 %315  ;;  %v602_v23 = vsel %vm601_vm4, %v2276_v3, %v598_v16  ;;  %vm615_vm6 = vweird.f32 %v2278_v17  ;;  %v728_v16 = vld [vmem:[#allocation2 + $0x20] sm:$0xff] }
 0x2b8   :  { %v326_v24 = vsub.f32 %v309_v50, %v316_v22  ;;  %v544_v26 = vpop.f32.mrf.mxu0  ;;  %v607_v27 = vsel %vm604_vm5, %v606_v18, %v602_v23  ;;  %vm616_vm8 = vmor %vm614_vm7, %vm615_vm6  ;;  %758 = vmatpush.msrb.mxu0 %v729_v15 }
 0x2b9   :  { %v611_v28 = vsub.f32 1.0, %v610_v20  ;;  %v552_v29 = vmul.f32 0.17677669, %v544_v26  ;;  %v608_v31 = vmul.f32 %v2803_v37, %v607_v27  ;;  %v223_v9 = vpop.f32.mrf.mxu2 }
 0x2ba   :  { %v330_v34 = vmul.f32 1.442695, %v326_v24  ;;  %v224_v11 = vadd.f32 %v223_v9, %v2778_v21  ;;  %759 = vmatpush.msrb.mxu0 %v728_v16 }
 0x2bb   :  { %v612_v35 = vmul.f32 %v2278_v17, %v611_v28  ;;  %2179 = vmatmul.msk.f32.vlgmr.msrb.gmra.mxu2 %vm313_vm1, %v608_v31  ;;  %v556_v36 = vadd.f32 %v2820_v54, %v552_v29 }
 0x2bc   :  { %2279 = vpow2.f32 %v330_v34  ;;  %459 = vmatpush.msrb.mxu3 %v224_v11 }
 0x2bd   :  { %v564_v40 = vsel %vm313_vm1, %v556_v36, -inf  ;;  %v613_v41 = vadd.f32 %v2278_v17, %v612_v35  ;;  %2281 = vpow2.f32 %v332_v46  ;;  %v547_v62 = vpop.f32.mrf.mxu1 }
 0x2be   :  { %565 = vmax.xlane.f32.xlu2 %v564_v40 }
 0x2bf   :  { %v819_v37 = vpop.permute.xlu1 %818  ;;  %v322_v30 = vpop.xlane.xlu0 %321  ;;  %v617_v48 = vsel %vm616_vm8, %v2278_v17, %v613_v41 }
 0x2c0   :  { %2192 = vmatpush.xpose.msk.msra.mxu2 %vm228_vm0, %v819_v37  ;;  %v622_v49 = vsel %vm619_vm9, %v621_v47, %v617_v48  ;;  %v328_v52 = vsub.f32 %v2823_v56, %v322_v30 }
 0x2c1   :  { %v623_v50 = vmul.f32 %v2809_v43, %v622_v49 }
 0x2c2   :  { %v2842_v51 = vpop.eup %2279  ;;  %v334_v55 = vmul.f32 1.442695, %v328_v52 }
 0x2c3   :  { %2180 = vmatmul.msk.f32.gmra.mxu2 %vm313_vm1, %v623_v50  ;;  %v338_v53 = vsel %vm313_vm1, %v2842_v51, 0.0  ;;  %v2848_v57 = vpop.eup %2281 }
 0x2c4   :  { %339 = vadd.xlane.f32.xlu0 %v338_v53  ;;  %2283 = vpow2.f32 %v334_v55  ;;  %v341_v43 = vsel %vm313_vm1, %v2848_v57, 0.0 }
 0x2ca   :  { %v2853_v58 = vpop.eup %2283 }
 0x2cb   :  { %2193 = vmatmul.msk.f32.vlgmr.msra.gmra.mxu2 %vm228_vm0, %v815_v1  ;;  %v344_v56 = vsel %vm313_vm1, %v2853_v58, 0.0  ;;  %v553_v1 = vmul.f32 0.17677669, %v547_v62 }
 0x2cc   :  { %342 = vadd.xlane.f32.xlu0 %v341_v43 }
 0x2cd   :  { %v2864_v3 = vadd.f32 %v2820_v54, %v553_v1 }
 0x2d3   :  { %2194 = vmatmul.msk.f32.gmra.mxu2 %vm228_vm0, %v817_v4  ;;  %v567_v4 = vsel %vm313_vm1, %v2864_v3, -inf }
 0x2d4   :  { %345 = vadd.xlane.f32.xlu0 %v344_v56 }
 0x2ea   :  { %v325_v59 = vpop.xlane.xlu1 %324 }
 0x2eb   :  { %v329_v60 = vsub.f32 %v2831_v63, %v325_v59  ;;  %v221_v63 = vadd.f32 %v220_v5, %v2778_v21 }
 0x2ed   :  { %v336_v61 = vmul.f32 1.442695, %v329_v60  ;;  %460 = vmatpush.msrb.mxu3 %v221_v63  ;;  %v2875_v34 = vpack.i.bf16 %v221_v63, %v224_v11 }
 0x2ef   :  { %2285 = vpow2.f32 %v336_v61 }
 0x2f5   :  { %v2859_v0 = vpop.eup %2285 }
 0x2f6   :  { %v347_v2 = vsel %vm313_vm1, %v2859_v0, 0.0 }
 0x2f7   :  { %348 = vadd.xlane.f32.xlu0 %v347_v2 }
 0x2ff   :  { %568 = vmax.xlane.f32.xlu0 %v567_v4 }
 0x331   :  { %v566_v17 = vpop.xlane.xlu2 %565 }
 0x332   :  { %v572_v18 = vsub.f32 %v556_v36, %v566_v17 }
 0x334   :  { %v578_v19 = vmul.f32 1.442695, %v572_v18 }
 0x336   :  { %2287 = vpow2.f32 %v578_v19 }
 0x337   :  { %v340_v20 = vpop.xlane.xlu0 %339 }
 0x338   :  { %2289 = vrcp.f32 %v340_v20  ;;  %v361_v29 = vand.u32 2147483648, %v340_v20  ;;  %v359_v32 = vand.u32 2147483647, %v340_v20  ;;  %vm355_vm11 = vweird.f32 %v340_v20 }
 0x33a   :  { %v362_v36 = vor.u32 1.1754944e-38, %v361_v29  ;;  %vm360_vm13 = vcmp.eq.f32.partialorder %v359_v32, 8.507059e+37 }
 0x33c   :  { %v2870_v22 = vpop.eup %2287 }
 0x33d   :  { %v588_v21 = vsel %vm313_vm1, %v2870_v22, 0.0 }
 0x33e   :  { %v2290_v23 = vpop.eup %2289  ;;  %v685_v24 = vpop.f32.mrf.mxu2  ;;  %589 = vadd.xlane.f32.xlu0 %v588_v21 }
 0x33f   :  { %v351_v26 = vmul.f32 %v2290_v23, %v340_v20  ;;  %2183 = vmatmul.msk.f32.vlgmr.msrb.gmra.mxu0 %vm228_vm0, %v685_v24  ;;  %v343_v27 = vpop.xlane.xlu0 %342  ;;  %vm356_vm10 = vweird.f32 %v2290_v23 }
 0x340   :  { %2291 = vrcp.f32 %v343_v27  ;;  %vm357_vm12 = vmor %vm355_vm11, %vm356_vm10  ;;  %v376_v48 = vand.u32 2147483648, %v343_v27  ;;  %v374_v50 = vand.u32 2147483647, %v343_v27  ;;  %vm370_vm15 = vweird.f32 %v343_v27 }
 0x341   :  { %v352_v28 = vsub.f32 1.0, %v351_v26 }
 0x342   :  { %v377_v55 = vor.u32 1.1754944e-38, %v376_v48  ;;  %vm375_vm3 = vcmp.eq.f32.partialorder %v374_v50, 8.507059e+37 }
 0x343   :  { %v353_v31 = vmul.f32 %v2290_v23, %v352_v28 }
 0x345   :  { %v354_v33 = vadd.f32 %v2290_v23, %v353_v31 }
 0x346   :  { %v2292_v35 = vpop.eup %2291  ;;  %v688_v38 = vpop.f32.mrf.mxu2 }
 0x347   :  { %v358_v40 = vsel %vm357_vm12, %v2290_v23, %v354_v33  ;;  %v366_v41 = vmul.f32 %v2292_v35, %v343_v27  ;;  %2184 = vmatmul.msk.f32.gmra.mxu0 %vm228_vm0, %v688_v38  ;;  %v346_v46 = vpop.xlane.xlu0 %345  ;;  %vm371_vm14 = vweird.f32 %v2292_v35  ;;  %v468_v38 = vld [vmem:[#allocation2] sm:$0xff] }
 0x348   :  { %v363_v47 = vsel %vm360_vm13, %v362_v36, %v358_v40  ;;  %2293 = vrcp.f32 %v346_v46  ;;  %vm372_vm2 = vmor %vm370_vm15, %vm371_vm14  ;;  %v389_v2 = vand.u32 2147483647, %v346_v46  ;;  %vm385_vm5 = vweird.f32 %v346_v46  ;;  %v469_v36 = vld [vmem:[#allocation2 + $0x8] sm:$0xff] }
 0x349   :  { %v367_v37 = vsub.f32 1.0, %v366_v41  ;;  %v364_v30 = vmul.f32 %v2842_v51, %v363_v47  ;;  %v391_v51 = vand.u32 2147483648, %v346_v46 }
 0x34a   :  { %vm390_vm7 = vcmp.eq.f32.partialorder %v389_v2, 8.507059e+37 }
 0x34b   :  { %v368_v49 = vmul.f32 %v2292_v35, %v367_v37  ;;  %2167 = vmatmul.msk.f32.vlgmr.msra.gmra.mxu3 %vm313_vm1, %v364_v30  ;;  %v392_v5 = vor.u32 1.1754944e-38, %v391_v51 }
 0x34d   :  { %v369_v52 = vadd.f32 %v2292_v35, %v368_v49 }
 0x34e   :  { %v2294_v53 = vpop.eup %2293  ;;  %v847_v43 = vpop.f32.mrf.mxu2 }
 0x34f   :  { %v381_v56 = vmul.f32 %v2294_v53, %v346_v46  ;;  %v373_v59 = vsel %vm372_vm2, %v2292_v35, %v369_v52  ;;  %vm386_vm4 = vweird.f32 %v2294_v53  ;;  %v892_v32 = vmul.f32 0.17677669, %v847_v43 }
 0x350   :  { %v378_v60 = vsel %vm375_vm3, %v377_v55, %v373_v59  ;;  %vm387_vm6 = vmor %vm385_vm5, %vm386_vm4 }
 0x351   :  { %v382_v61 = vsub.f32 1.0, %v381_v56  ;;  %v379_v62 = vmul.f32 %v2848_v57, %v378_v60  ;;  %v2913_v35 = vadd.f32 %v2771_v13, %v892_v32 }
 0x352   :  { %859 = vrot.lane.b32.xlu0 %v2745_v6, %s2446_s24 }
 0x353   :  { %v383_v1 = vmul.f32 %v2294_v53, %v382_v61  ;;  %2168 = vmatmul.msk.f32.gmra.mxu3 %vm313_vm1, %v379_v62 }
 0x355   :  { %v384_v4 = vadd.f32 %v2294_v53, %v383_v1 }
 0x356   :  { %v850_v9 = vpop.f32.mrf.mxu2 }
 0x357   :  { %v388_v63 = vsel %vm387_vm6, %v2294_v53, %v384_v4  ;;  %v893_v11 = vmul.f32 0.17677669, %v850_v9 }
 0x358   :  { %v393_v12 = vsel %vm390_vm7, %v392_v5, %v388_v63 }
 0x359   :  { %v394_v57 = vmul.f32 %v2853_v58, %v393_v12  ;;  %v2886_v14 = vadd.f32 %v2771_v13, %v893_v11 }
 0x35a   :  { %853 = vrot.lane.b32.xlu0 %v2755_v8, %s2446_s24 }
 0x35b   :  { %2169 = vmatmul.msk.f32.vlgmr.msrb.gmra.mxu3 %vm313_vm1, %v394_v57  ;;  %v903_v15 = vsel %vm313_vm1, %v2886_v14, -inf }
 0x35c   :  { %904 = vmax.xlane.f32.xlu2 %v903_v15 }
 0x362   :  { %855 = vrot.lane.b32.xlu0 %v2764_v10, %s2446_s24 }
 0x36a   :  { %1121 = vrot.lane.b32.xlu0 %v2664_v42, %s2447_s1  ;;  %v349_v58 = vpop.xlane.xlu0 %348 }
 0x36b   :  { %2295 = vrcp.f32 %v349_v58  ;;  %v406_v21 = vand.u32 2147483648, %v349_v58  ;;  %v404_v26 = vand.u32 2147483647, %v349_v58  ;;  %vm400_vm9 = vweird.f32 %v349_v58 }
 0x36d   :  { %v407_v27 = vor.u32 1.1754944e-38, %v406_v21  ;;  %vm405_vm11 = vcmp.eq.f32.partialorder %v404_v26, 8.507059e+37 }
 0x371   :  { %v2296_v16 = vpop.eup %2295 }
 0x372   :  { %v396_v17 = vmul.f32 %v2296_v16, %v349_v58  ;;  %2244 = vrot.lane.b32.xlu0 %v2786_v25, %s2446_s24  ;;  %v569_v18 = vpop.xlane.xlu0 %568  ;;  %vm401_vm8 = vweird.f32 %v2296_v16 }
 0x373   :  { %v573_v19 = vsub.f32 %v2864_v3, %v569_v18  ;;  %vm402_vm10 = vmor %vm400_vm9, %vm401_vm8 }
 0x374   :  { %v397_v20 = vsub.f32 1.0, %v396_v17  ;;  %2239 = vrot.lane.b32.xlu2 %v2875_v34, %s2445_s4 }
 0x375   :  { %v580_v23 = vmul.f32 1.442695, %v573_v19 }
 0x376   :  { %v398_v24 = vmul.f32 %v2296_v16, %v397_v20 }
 0x377   :  { %2297 = vpow2.f32 %v580_v23 }
 0x378   :  { %v399_v42 = vadd.f32 %v2296_v16, %v398_v24 }
 0x37a   :  { %1119 = vrot.lane.b32.xlu0 %v2674_v45, %s2447_s1  ;;  %v403_v28 = vsel %vm402_vm10, %v2296_v16, %v399_v42  ;;  %v900_v45 = vsel %vm313_vm1, %v2913_v35, -inf }
 0x37b   :  { %v408_v3 = vsel %vm405_vm11, %v407_v27, %v403_v28 }
 0x37c   :  { %v409_v29 = vmul.f32 %v2859_v0, %v408_v3  ;;  %v470_v0 = vld [vmem:[#allocation2 + $0x10] sm:$0xff] }
 0x37d   :  { %v2905_v31 = vpop.eup %2297 }
 0x37e   :  { %2170 = vmatmul.msk.f32.gmra.mxu3 %vm313_vm1, %v409_v29  ;;  %v591_v33 = vsel %vm313_vm1, %v2905_v31, 0.0 }
 0x37f   :  { %592 = vadd.xlane.f32.xlu1 %v591_v33 }
 0x382   :  { %1115 = vrot.lane.b32.xlu0 %v2656_v39, %s2447_s1  ;;  %v471_v39 = vld [vmem:[#allocation2 + $0x18] sm:$0xff] }
 0x383   :  { %797 = vmatpush.msra.mxu1 %v471_v39 }
 0x385   :  { %798 = vmatpush.msra.mxu1 %v470_v0 }
 0x387   :  { %901 = vmax.xlane.f32.xlu1 %v900_v45  ;;  %799 = vmatpush.msra.mxu1 %v469_v36 }
 0x389   :  { %800 = vmatpush.msra.mxu1 %v468_v38 }
 0x38a   :  { %1160 = vrot.lane.b32.xlu0 %v2745_v6, %s2447_s1 }
 0x392   :  { %1154 = vrot.lane.b32.xlu0 %v2755_v8, %s2447_s1 }
 0x39a   :  { %1156 = vrot.lane.b32.xlu0 %v2764_v10, %s2447_s1 }
 0x3a0   :  { %857 = vrot.lane.b32.xlu1 %v2748_v7, %s2446_s24 }
 0x3b1   :  { %v590_v40 = vpop.xlane.xlu0 %589 }
 0x3b2   :  { %2299 = vrcp.f32 %v590_v40  ;;  %v635_v50 = vand.u32 2147483648, %v590_v40  ;;  %vm629_vm13 = vweird.f32 %v590_v40  ;;  %v633_v53 = vand.u32 2147483647, %v590_v40 }
 0x3b4   :  { %v636_v56 = vor.u32 1.1754944e-38, %v635_v50  ;;  %vm634_vm15 = vcmp.eq.f32.partialorder %v633_v53, 8.507059e+37 }
 0x3b8   :  { %v2300_v6 = vpop.eup %2299 }
 0x3b9   :  { %v625_v46 = vmul.f32 %v2300_v6, %v590_v40  ;;  %vm630_vm12 = vweird.f32 %v2300_v6 }
 0x3ba   :  { %vm631_vm14 = vmor %vm629_vm13, %vm630_vm12 }
 0x3bb   :  { %v626_v8 = vsub.f32 1.0, %v625_v46 }
 0x3bd   :  { %v627_v10 = vmul.f32 %v2300_v6, %v626_v8 }
 0x3bf   :  { %v628_v49 = vadd.f32 %v2300_v6, %v627_v10 }
 0x3c1   :  { %v632_v43 = vsel %vm631_vm14, %v2300_v6, %v628_v49 }
 0x3c2   :  { %v637_v61 = vsel %vm634_vm15, %v636_v56, %v632_v43 }
 0x3c3   :  { %v638_v4 = vmul.f32 %v2870_v22, %v637_v61 }
 0x3c4   :  { %v860_v41 = vpop.permute.xlu0 %859 }
 0x3cc   :  { %v2925_v47 = vpop.permute.xlu0 %853 }
 0x3ce   :  { %v433_v37 = vpop.f32.mrf.mxu3 }
 0x3cf   :  { %v905_v30 = vpop.xlane.xlu2 %904  ;;  %2187 = vmatmul.msk.f32.vlgmr.msra.gmra.mxu1 %vm228_vm0, %v433_v37 }
 0x3d0   :  { %v913_v48 = vsub.f32 %v2886_v14, %v905_v30 }
 0x3d2   :  { %v918_v52 = vmul.f32 1.442695, %v913_v48 }
 0x3d4   :  { %2301 = vpow2.f32 %v918_v52  ;;  %v2929_v55 = vpop.permute.xlu0 %855 }
 0x3d6   :  { %v436_v59 = vpop.f32.mrf.mxu3 }
 0x3d7   :  { %v2240_v60 = vpop.permute.xlu2 %2239  ;;  %2188 = vmatmul.msk.f32.gmra.mxu1 %vm228_vm0, %v436_v59 }
 0x3d8   :  { %v2241_v62 = vunpack.i.l.bf16 %v2240_v60  ;;  %v2242_v1 = vunpack.i.h.bf16 %v2240_v60 }
 0x3da   :  { %v2932_v51 = vpop.eup %2301  ;;  %719 = vmatpush.msra.mxu3 %v2241_v62 }
 0x3db   :  { %v927_v2 = vsel %vm313_vm1, %v2932_v51, 0.0 }
 0x3dc   :  { %720 = vmatpush.msra.mxu3 %v2242_v1  ;;  %928 = vadd.xlane.f32.xlu1 %v927_v2  ;;  %v1122_v5 = vpop.permute.xlu0 %1121 }
 0x3dd   :  { %2181 = vmatmul.msk.f32.vlgmr.msra.gmra.mxu3 %vm313_vm1, %v638_v4  ;;  %2207 = vmatpush.xpose.msk.msrb.mxu1 %vm228_vm0, %v1122_v5 }
 0x3de   :  { %2195 = vmatpush.xpose.msk.msrb.mxu3 %vm228_vm0, %v860_v41  ;;  %v462_v9 = vpop.f32.mrf.mxu3 }
 0x3df   :  { %2189 = vmatmul.msk.f32.gmra.mxu1 %vm228_vm0, %v462_v9 }
 0x3e4   :  { %v2245_v63 = vpop.permute.xlu0 %2244 }
 0x3e5   :  { %v2246_v11 = vunpack.i.l.bf16 %v2245_v63  ;;  %v2247_v12 = vunpack.i.h.bf16 %v2245_v63 }
 0x3e7   :  { %1022 = vmatpush.msrb.mxu2 %v2246_v11 }
 0x3e9   :  { %1023 = vmatpush.msrb.mxu2 %v2247_v12 }
 0x3ec   :  { %v1120_v57 = vpop.permute.xlu0 %1119 }
 0x3ed   :  { %2208 = vmatpush.xpose.msk.msrb.mxu1 %vm228_vm0, %v1120_v57 }
 0x3f2   :  { %v593_v22 = vpop.xlane.xlu1 %592 }
 0x3f3   :  { %2303 = vrcp.f32 %v593_v22  ;;  %v650_v20 = vand.u32 2147483648, %v593_v22  ;;  %v648_v24 = vand.u32 2147483647, %v593_v22  ;;  %vm644_vm3 = vweird.f32 %v593_v22 }
 0x3f4   :  { %v1116_v14 = vpop.permute.xlu0 %1115 }
 0x3f5   :  { %1158 = vrot.lane.b32.xlu1 %v2748_v7, %s2447_s1  ;;  %v651_v42 = vor.u32 1.1754944e-38, %v650_v20  ;;  %vm649_vm5 = vcmp.eq.f32.partialorder %v648_v24, 8.507059e+37  ;;  %v1068_v20 = vld [vmem:[#allocation2 + $0x50] sm:$0xff] }
 0x3f9   :  { %v2304_v15 = vpop.eup %2303 }
 0x3fa   :  { %v640_v58 = vmul.f32 %v2304_v15, %v593_v22  ;;  %v902_v16 = vpop.xlane.xlu1 %901  ;;  %vm645_vm2 = vweird.f32 %v2304_v15 }
 0x3fb   :  { %v912_v17 = vsub.f32 %v2913_v35, %v902_v16  ;;  %vm646_vm4 = vmor %vm644_vm3, %vm645_vm2 }
 0x3fc   :  { %v641_v18 = vsub.f32 1.0, %v640_v58  ;;  %v1161_v19 = vpop.permute.xlu0 %1160 }
 0x3fd   :  { %v916_v21 = vmul.f32 1.442695, %v912_v17  ;;  %2211 = vmatpush.xpose.msk.msra.mxu2 %vm228_vm0, %v1161_v19  ;;  %v1069_v19 = vld [vmem:[#allocation2 + $0x58] sm:$0xff] }
 0x3fe   :  { %v642_v23 = vmul.f32 %v2304_v15, %v641_v18  ;;  %1094 = vmatpush.msra.mxu0 %v1069_v19 }
 0x3ff   :  { %2305 = vpow2.f32 %v916_v21  ;;  %v1067_v21 = vld [vmem:[#allocation2 + $0x48] sm:$0xff] }
 0x400   :  { %v643_v26 = vadd.f32 %v2304_v15, %v642_v23  ;;  %1095 = vmatpush.msra.mxu0 %v1068_v20  ;;  %v1066_v23 = vld [vmem:[#allocation2 + $0x40] sm:$0xff] }
 0x401   :  { %v465_v27 = vpop.f32.mrf.mxu3 }
 0x402   :  { %2190 = vmatmul.msk.f32.gmra.mxu1 %vm228_vm0, %v465_v27  ;;  %v647_v7 = vsel %vm646_vm4, %v2304_v15, %v643_v26  ;;  %1096 = vmatpush.msra.mxu0 %v1067_v21 }
 0x403   :  { %v652_v28 = vsel %vm649_vm5, %v651_v42, %v647_v7 }
 0x404   :  { %v653_v3 = vmul.f32 %v2905_v31, %v652_v28  ;;  %v1155_v22 = vpop.permute.xlu0 %1154  ;;  %1097 = vmatpush.msra.mxu0 %v1066_v23 }
 0x405   :  { %v2306_v29 = vpop.eup %2305 }
 0x406   :  { %2182 = vmatmul.msk.f32.gmra.mxu3 %vm313_vm1, %v653_v3  ;;  %v924_v32 = vsel %vm313_vm1, %v2306_v29, 0.0 }
 0x407   :  { %925 = vadd.xlane.f32.xlu2 %v924_v32 }
 0x40a   :  { %2209 = vmatmul.msk.f32.vlgmr.msrb.gmra.mxu1 %vm228_vm0, %v1116_v14 }
 0x40c   :  { %v1157_v18 = vpop.permute.xlu0 %1156 }
 0x412   :  { %v858_v33 = vpop.permute.xlu1 %857 }
 0x413   :  { %2196 = vmatpush.xpose.msk.msrb.mxu3 %vm228_vm0, %v858_v33 }
 0x416   :  { %2197 = vmatmul.msk.f32.vlgmr.msrb.gmra.mxu3 %vm228_vm0, %v2925_v47 }
 0x41e   :  { %2198 = vmatmul.msk.f32.gmra.mxu3 %vm228_vm0, %v2929_v55 }
 0x41f   :  { %1117 = vrot.lane.b32.xlu2 %v2671_v44, %s2447_s1 }
 0x44c   :  { %v2959_v45 = vpop.f32.mrf.mxu1 }
 0x44f   :  { %v929_v31 = vpop.xlane.xlu1 %928 }
 0x450   :  { %2307 = vrcp.f32 %v929_v31  ;;  %v962_v61 = vand.u32 2147483648, %v929_v31  ;;  %vm956_vm11 = vweird.f32 %v929_v31  ;;  %v960_v4 = vand.u32 2147483647, %v929_v31 }
 0x452   :  { %v963_v9 = vor.u32 1.1754944e-38, %v962_v61  ;;  %vm961_vm13 = vcmp.eq.f32.partialorder %v960_v4, 8.507059e+37 }
 0x454   :  { %v2962_v0 = vpop.f32.mrf.mxu1 }
 0x456   :  { %v2308_v40 = vpop.eup %2307 }
 0x457   :  { %v952_v6 = vmul.f32 %v2308_v40, %v929_v31  ;;  %vm957_vm9 = vweird.f32 %v2308_v40 }
 0x458   :  { %vm958_vm12 = vmor %vm956_vm11, %vm957_vm9 }
 0x459   :  { %v953_v46 = vsub.f32 1.0, %v952_v6 }
 0x45b   :  { %v954_v30 = vmul.f32 %v2308_v40, %v953_v46 }
 0x45c   :  { %v2964_v36 = vpop.f32.mrf.mxu1 }
 0x45d   :  { %v955_v60 = vadd.f32 %v2308_v40, %v954_v30 }
 0x45f   :  { %v959_v5 = vsel %vm958_vm12, %v2308_v40, %v955_v60 }
 0x460   :  { %v722_v35 = vpop.f32.mrf.mxu3  ;;  %v964_v63 = vsel %vm961_vm13, %v963_v9, %v959_v5 }
 0x461   :  { %2185 = vmatmul.msk.f32.gmra.mxu0 %vm228_vm0, %v722_v35  ;;  %v965_v11 = vmul.f32 %v2932_v51, %v964_v63 }
 0x467   :  { %v1159_v39 = vpop.permute.xlu1 %1158 }
 0x468   :  { %2212 = vmatpush.xpose.msk.msra.mxu2 %vm228_vm0, %v1159_v39 }
 0x47a   :  { %v926_v38 = vpop.xlane.xlu2 %925 }
 0x47b   :  { %2309 = vrcp.f32 %v926_v38  ;;  %v947_v37 = vand.u32 2147483648, %v926_v38  ;;  %v945_v49 = vand.u32 2147483647, %v926_v38  ;;  %vm941_vm7 = vweird.f32 %v926_v38 }
 0x47d   :  { %v948_v55 = vor.u32 1.1754944e-38, %v947_v37  ;;  %vm946_vm10 = vcmp.eq.f32.partialorder %v945_v49, 8.507059e+37 }
 0x47f   :  { %v2966_v41 = vpop.f32.mrf.mxu1 }
 0x481   :  { %v2310_v44 = vpop.eup %2309 }
 0x482   :  { %v937_v8 = vmul.f32 %v2310_v44, %v926_v38  ;;  %v1118_v47 = vpop.permute.xlu2 %1117  ;;  %vm942_vm6 = vweird.f32 %v2310_v44 }
 0x483   :  { %2210 = vmatmul.msk.f32.gmra.mxu1 %vm228_vm0, %v1118_v47  ;;  %vm943_vm8 = vmor %vm941_vm7, %vm942_vm6 }
 0x484   :  { %v938_v10 = vsub.f32 1.0, %v937_v8 }
 0x486   :  { %v939_v48 = vmul.f32 %v2310_v44, %v938_v10 }
 0x487   :  { %v1148_v50 = vpop.f32.mrf.mxu1 }
 0x488   :  { %v940_v52 = vadd.f32 %v2310_v44, %v939_v48  ;;  %v1193_v53 = vmul.f32 0.17677669, %v1148_v50 }
 0x489   :  { %v725_v43 = vpop.f32.mrf.mxu3 }
 0x48a   :  { %v944_v56 = vsel %vm943_vm8, %v2310_v44, %v940_v52  ;;  %2186 = vmatmul.msk.f32.gmra.mxu0 %vm228_vm0, %v725_v43  ;;  %v1197_v59 = vadd.f32 %v2771_v13, %v1193_v53 }
 0x48b   :  { %v949_v62 = vsel %vm946_vm10, %v948_v55, %v944_v56 }
 0x48c   :  { %v1201_v1 = vsel %vm313_vm1, %v1197_v59, -inf  ;;  %v950_v2 = vmul.f32 %v2306_v29, %v949_v62 }
 0x48d   :  { %1202 = vmax.xlane.f32.xlu1 %v1201_v1 }
 0x48e   :  { %2199 = vmatmul.msk.f32.vlgmr.msrb.gmra.mxu2 %vm313_vm1, %v950_v2 }
 0x496   :  { %2200 = vmatmul.msk.f32.gmra.mxu2 %vm313_vm1, %v965_v11 }
 0x499   :  { %v886_v12 = vpop.f32.mrf.mxu3 }
 0x49a   :  { %v894_v57 = vmul.f32 0.17677669, %v886_v12 }
 0x49c   :  { %v898_v14 = vadd.f32 %v2820_v54, %v894_v57 }
 0x49e   :  { %2213 = vmatmul.msk.f32.vlgmr.msra.gmra.mxu2 %vm228_vm0, %v1155_v22  ;;  %v906_v15 = vsel %vm313_vm1, %v898_v14, -inf }
 0x49f   :  { %907 = vmax.xlane.f32.xlu2 %v906_v15 }
 0x4a1   :  { %v889_v58 = vpop.f32.mrf.mxu3 }
 0x4a2   :  { %v895_v16 = vmul.f32 0.17677669, %v889_v58 }
 0x4a4   :  { %v899_v17 = vadd.f32 %v2820_v54, %v895_v16 }
 0x4a6   :  { %2214 = vmatmul.msk.f32.gmra.mxu2 %vm228_vm0, %v1157_v18  ;;  %v909_v51 = vsel %vm313_vm1, %v899_v17, -inf }
 0x4a7   :  { %910 = vmax.xlane.f32.xlu0 %v909_v51 }
 0x500   :  { %v1203_v24 = vpop.xlane.xlu1 %1202  ;;  %v1151_v26 = vpop.f32.mrf.mxu1 }
 0x501   :  { %v1213_v42 = vsub.f32 %v1197_v59, %v1203_v24  ;;  %v1194_v27 = vmul.f32 0.17677669, %v1151_v26 }
 0x503   :  { %v1217_v7 = vmul.f32 1.442695, %v1213_v42  ;;  %v1198_v28 = vadd.f32 %v2771_v13, %v1194_v27 }
 0x505   :  { %2311 = vpow2.f32 %v1217_v7  ;;  %v1204_v3 = vsel %vm313_vm1, %v1198_v28, -inf }
 0x506   :  { %1205 = vmax.xlane.f32.xlu2 %v1204_v3 }
 0x50b   :  { %v2983_v29 = vpop.eup %2311 }
 0x50c   :  { %v1225_v32 = vsel %vm313_vm1, %v2983_v29, 0.0 }
 0x50d   :  { %1226 = vadd.xlane.f32.xlu1 %v1225_v32 }
 0x511   :  { %v1025_v33 = vpop.f32.mrf.mxu2 }
 0x512   :  { %v908_v31 = vpop.xlane.xlu2 %907  ;;  %2203 = vmatmul.msk.f32.vlgmr.msra.gmra.mxu0 %vm228_vm0, %v1025_v33 }
 0x513   :  { %v914_v35 = vsub.f32 %v898_v14, %v908_v31 }
 0x515   :  { %v920_v39 = vmul.f32 1.442695, %v914_v35 }
 0x517   :  { %2313 = vpow2.f32 %v920_v39 }
 0x519   :  { %v1028_v38 = vpop.f32.mrf.mxu2 }
 0x51a   :  { %v911_v40 = vpop.xlane.xlu0 %910  ;;  %2204 = vmatmul.msk.f32.gmra.mxu0 %vm228_vm0, %v1028_v38 }
 0x51b   :  { %v915_v6 = vsub.f32 %v899_v17, %v911_v40 }
 0x51d   :  { %v2989_v13 = vpop.eup %2313  ;;  %v922_v46 = vmul.f32 1.442695, %v915_v6 }
 0x51e   :  { %v930_v44 = vsel %vm313_vm1, %v2989_v13, 0.0 }
 0x51f   :  { %931 = vadd.xlane.f32.xlu2 %v930_v44  ;;  %2315 = vpow2.f32 %v922_v46 }
 0x521   :  { %v1187_v8 = vpop.f32.mrf.mxu2 }
 0x522   :  { %v1195_v47 = vmul.f32 0.17677669, %v1187_v8 }
 0x524   :  { %v1199_v10 = vadd.f32 %v2820_v54, %v1195_v47 }
 0x525   :  { %v2995_v49 = vpop.eup %2315 }
 0x526   :  { %v1207_v37 = vsel %vm313_vm1, %v1199_v10, -inf  ;;  %v933_v52 = vsel %vm313_vm1, %v2995_v49, 0.0 }
 0x527   :  { %1208 = vmax.xlane.f32.xlu0 %v1207_v37 }
 0x529   :  { %v1190_v30 = vpop.f32.mrf.mxu2 }
 0x52a   :  { %v1196_v48 = vmul.f32 0.17677669, %v1190_v30 }
 0x52c   :  { %v1200_v50 = vadd.f32 %v2820_v54, %v1196_v48 }
 0x52e   :  { %v1210_v53 = vsel %vm313_vm1, %v1200_v50, -inf }
 0x52f   :  { %934 = vadd.xlane.f32.xlu0 %v933_v52  ;;  %1211 = vmax.xlane.f32.xlu1 %v1210_v53 }
 0x537   :  { %2249 = vrot.lane.b32.xlu2 %v2875_v34, %s2446_s24 }
 0x53f   :  { %2259 = vrot.lane.b32.xlu2 %v2875_v34, %s2447_s1 }
 0x548   :  { %2254 = vrot.lane.b32.xlu1 %v2786_v25, %s2447_s1 }
 0x579   :  { %v1206_v55 = vpop.xlane.xlu2 %1205 }
 0x57a   :  { %v1214_v43 = vsub.f32 %v1198_v28, %v1206_v55 }
 0x57c   :  { %v1219_v56 = vmul.f32 1.442695, %v1214_v43 }
 0x57e   :  { %2317 = vpow2.f32 %v1219_v56 }
 0x580   :  { %v3011_v34 = vpop.xlane.xlu1 %1226 }
 0x581   :  { %vm1242_vm9 = vweird.f32 %v3011_v34  ;;  %v1246_v37 = vand.u32 2147483647, %v3011_v34 }
 0x583   :  { %vm1247_vm11 = vcmp.eq.f32.partialorder %v1246_v37, 8.507059e+37 }
 0x584   :  { %v3007_v54 = vpop.eup %2317 }
 0x585   :  { %v1228_v59 = vsel %vm313_vm1, %v3007_v54, 0.0 }
 0x586   :  { %1229 = vadd.xlane.f32.xlu0 %v1228_v59 }
 0x592   :  { %v932_v60 = vpop.xlane.xlu2 %931 }
 0x593   :  { %2319 = vrcp.f32 %v932_v60  ;;  %v977_v9 = vand.u32 2147483648, %v932_v60  ;;  %v975_v57 = vand.u32 2147483647, %v932_v60  ;;  %vm971_vm15 = vweird.f32 %v932_v60 }
 0x594   :  { %2321 = vrcp.f32 %v3011_v34 }
 0x595   :  { %v978_v14 = vor.u32 1.1754944e-38, %v977_v9  ;;  %vm976_vm3 = vcmp.eq.f32.partialorder %v975_v57, 8.507059e+37  ;;  %v1370_v9 = vld [vmem:[#allocation2 + $0x78] sm:$0xff] }
 0x596   :  { %1395 = vmatpush.msrb.mxu2 %v1370_v9 }
 0x599   :  { %v2320_v61 = vpop.eup %2319 }
 0x59a   :  { %v967_v62 = vmul.f32 %v2320_v61, %v932_v60  ;;  %v2250_v1 = vpop.permute.xlu2 %2249  ;;  %v1209_v2 = vpop.xlane.xlu0 %1208  ;;  %vm972_vm14 = vweird.f32 %v2320_v61 }
 0x59b   :  { %v2251_v4 = vunpack.i.l.bf16 %v2250_v1  ;;  %v1215_v25 = vsub.f32 %v1199_v10, %v1209_v2  ;;  %v2252_v63 = vunpack.i.h.bf16 %v2250_v1  ;;  %vm973_vm2 = vmor %vm971_vm15, %vm972_vm14  ;;  %v2322_v19 = vpop.eup %2321  ;;  %v1248_v10 = vand.u32 2147483648, %v3011_v34 }
 0x59c   :  { %v968_v5 = vsub.f32 1.0, %v967_v62  ;;  %v1238_v27 = vmul.f32 %v2322_v19, %v3011_v34  ;;  %vm1243_vm8 = vweird.f32 %v2322_v19 }
 0x59d   :  { %v1221_v11 = vmul.f32 1.442695, %v1215_v25  ;;  %1057 = vmatpush.msra.mxu3 %v2251_v4  ;;  %vm1244_vm10 = vmor %vm1242_vm9, %vm1243_vm8  ;;  %v1249_v48 = vor.u32 1.1754944e-38, %v1248_v10 }
 0x59e   :  { %v969_v12 = vmul.f32 %v2320_v61, %v968_v5  ;;  %v1239_v3 = vsub.f32 1.0, %v1238_v27 }
 0x59f   :  { %2323 = vpow2.f32 %v1221_v11  ;;  %1058 = vmatpush.msra.mxu3 %v2252_v63  ;;  %v1369_v63 = vld [vmem:[#allocation2 + $0x70] sm:$0xff]  ;;  %v1368_v11 = vld [vmem:[#allocation2 + $0x68] sm:$0xff] }
 0x5a0   :  { %v970_v22 = vadd.f32 %v2320_v61, %v969_v12  ;;  %v1240_v40 = vmul.f32 %v2322_v19, %v1239_v3  ;;  %1396 = vmatpush.msrb.mxu2 %v1369_v63 }
 0x5a2   :  { %v974_v15 = vsel %vm973_vm2, %v2320_v61, %v970_v22  ;;  %v2260_v58 = vpop.permute.xlu2 %2259  ;;  %v935_v16 = vpop.xlane.xlu0 %934  ;;  %v1241_v8 = vadd.f32 %v2322_v19, %v1240_v40  ;;  %1397 = vmatpush.msrb.mxu2 %v1368_v11 }
 0x5a3   :  { %v979_v17 = vsel %vm976_vm3, %v978_v14, %v974_v15  ;;  %v2261_v18 = vunpack.i.l.bf16 %v2260_v58  ;;  %2325 = vrcp.f32 %v935_v16  ;;  %v1212_v51 = vpop.xlane.xlu1 %1211  ;;  %v2262_v24 = vunpack.i.h.bf16 %v2260_v58  ;;  %v1367_v14 = vld [vmem:[#allocation2 + $0x60] sm:$0xff] }
 0x5a4   :  { %v1216_v20 = vsub.f32 %v1200_v50, %v1212_v51  ;;  %v980_v21 = vmul.f32 %v2989_v13, %v979_v17  ;;  %v992_v33 = vand.u32 2147483648, %v935_v16  ;;  %v990_v39 = vand.u32 2147483647, %v935_v16  ;;  %1398 = vmatpush.msrb.mxu2 %v1367_v14 }
 0x5a5   :  { %v3015_v23 = vpop.eup %2323  ;;  %1358 = vmatpush.msra.mxu1 %v2261_v18  ;;  %vm986_vm5 = vweird.f32 %v935_v16  ;;  %v1245_v30 = vsel %vm1244_vm10, %v2322_v19, %v1241_v8 }
 0x5a6   :  { %v1223_v26 = vmul.f32 1.442695, %v1216_v20  ;;  %2201 = vmatmul.msk.f32.vlgmr.msra.gmra.mxu3 %vm313_vm1, %v980_v21  ;;  %v1231_v42 = vsel %vm313_vm1, %v3015_v23, 0.0  ;;  %v993_v6 = vor.u32 1.1754944e-38, %v992_v33  ;;  %vm991_vm7 = vcmp.eq.f32.partialorder %v990_v39, 8.507059e+37 }
 0x5a7   :  { %1359 = vmatpush.msra.mxu1 %v2262_v24  ;;  %1232 = vadd.xlane.f32.xlu0 %v1231_v42  ;;  %v1250_v52 = vsel %vm1247_vm11, %v1249_v48, %v1245_v30  ;;  %v2265_v30 = vld [vmem:[%s3438_s5] ss:$0 sm:$0xff] }
 0x5a8   :  { %2327 = vpow2.f32 %v1223_v26  ;;  %v1251_v43 = vmul.f32 %v2983_v29, %v1250_v52 }
 0x5a9   :  { %v2326_v7 = vpop.eup %2325 }
 0x5aa   :  { %v982_v28 = vmul.f32 %v2326_v7, %v935_v16  ;;  %vm987_vm4 = vweird.f32 %v2326_v7 }
 0x5ab   :  { %vm988_vm6 = vmor %vm986_vm5, %vm987_vm4 }
 0x5ac   :  { %v983_v32 = vsub.f32 1.0, %v982_v28 }
 0x5ae   :  { %v3021_v31 = vpop.eup %2327  ;;  %v984_v35 = vmul.f32 %v2326_v7, %v983_v32 }
 0x5af   :  { %v1234_v38 = vsel %vm313_vm1, %v3021_v31, 0.0 }
 0x5b0   :  { %1235 = vadd.xlane.f32.xlu0 %v1234_v38  ;;  %v985_v13 = vadd.f32 %v2326_v7, %v984_v35 }
 0x5b2   :  { %v989_v44 = vsel %vm988_vm6, %v2326_v7, %v985_v13  ;;  %v761_v13 = vpop.f32.mrf.mxu0 }
 0x5b3   :  { %v994_v46 = vsel %vm991_vm7, %v993_v6, %v989_v44  ;;  %v803_v10 = vadd.f32 %v2959_v45, %v761_v13  ;;  %v1585_v13 = vld [vmem:[%s3441_s8 + $0x1b0] sm:$0xff] }
 0x5b4   :  { %v995_v47 = vmul.f32 %v2995_v49, %v994_v46 }
 0x5b6   :  { %2202 = vmatmul.msk.f32.gmra.mxu3 %vm313_vm1, %v995_v47 }
 0x5ba   :  { %v2255_v50 = vpop.permute.xlu1 %2254  ;;  %v764_v6 = vpop.f32.mrf.mxu0 }
 0x5bb   :  { %v2256_v53 = vunpack.i.l.bf16 %v2255_v50  ;;  %v2257_v55 = vunpack.i.h.bf16 %v2255_v50 }
 0x5bd   :  { %1323 = vmatpush.msrb.mxu3 %v2256_v53  ;;  %v2385_v53 = vld [vmem:[%s3433_s0] sm:$0xff] }
 0x5bf   :  { %1324 = vmatpush.msrb.mxu3 %v2257_v55 }
 0x5c0   :  { %2215 = vmatmul.msk.f32.vlgmr.msrb.gmra.mxu3 %vm313_vm1, %v1251_v43 }
 0x5c2   :  { %v767_v46 = vpop.f32.mrf.mxu0 }
 0x5f9   :  { %v1230_v49 = vpop.xlane.xlu0 %1229 }
 0x5fa   :  { %2329 = vrcp.f32 %v1230_v49  ;;  %v1263_v61 = vand.u32 2147483648, %v1230_v49  ;;  %v1261_v1 = vand.u32 2147483647, %v1230_v49  ;;  %vm1257_vm13 = vweird.f32 %v1230_v49 }
 0x5fc   :  { %v1264_v34 = vor.u32 1.1754944e-38, %v1263_v61  ;;  %vm1262_vm15 = vcmp.eq.f32.partialorder %v1261_v1, 8.507059e+37  ;;  %v2386_v61 = vld [vmem:[%s3433_s0 + $0x8] sm:$0xff]  ;;  %v2448_v1 = vmov 128.0  }
 0x600   :  { %v2330_v56 = vpop.eup %2329 }
 0x601   :  { %v1253_v59 = vmul.f32 %v2330_v56, %v1230_v49  ;;  %vm1258_vm12 = vweird.f32 %v2330_v56  ;;  %v806_v49 = vadd.f32 %v2962_v0, %v764_v6  ;;  %v1586_v6 = vld [vmem:[%s3441_s8 + $0x1b8] sm:$0xff] }
 0x602   :  { %vm1259_vm14 = vmor %vm1257_vm13, %vm1258_vm12 }
 0x603   :  { %v1254_v60 = vsub.f32 1.0, %v1253_v59 }
 0x605   :  { %v1255_v62 = vmul.f32 %v2330_v56, %v1254_v60 }
 0x607   :  { %v1256_v2 = vadd.f32 %v2330_v56, %v1255_v62 }
 0x609   :  { %v1260_v4 = vsel %vm1259_vm14, %v2330_v56, %v1256_v2 }
 0x60a   :  { %v1265_v25 = vsel %vm1262_vm15, %v1264_v34, %v1260_v4  ;;  %v809_v4 = vadd.f32 %v2964_v36, %v767_v46  ;;  %v1580_v46 = vld [vmem:[%s3441_s8 + $0x188] sm:$0xff] }
 0x60b   :  { %v1266_v29 = vmul.f32 %v3007_v54, %v1265_v25 }
 0x60d   :  { %2216 = vmatmul.msk.f32.gmra.mxu3 %vm313_vm1, %v1266_v29 }
 0x61a   :  { %v1233_v5 = vpop.xlane.xlu0 %1232 }
 0x61b   :  { %2331 = vrcp.f32 %v1233_v5  ;;  %v1278_v58 = vand.u32 2147483648, %v1233_v5  ;;  %v1276_v54 = vand.u32 2147483647, %v1233_v5  ;;  %vm1272_vm3 = vweird.f32 %v1233_v5 }
 0x61d   :  { %v1279_v18 = vor.u32 1.1754944e-38, %v1278_v58  ;;  %vm1277_vm5 = vcmp.eq.f32.partialorder %v1276_v54, 8.507059e+37 }
 0x621   :  { %v2332_v12 = vpop.eup %2331 }
 0x622   :  { %v1268_v57 = vmul.f32 %v2332_v12, %v1233_v5  ;;  %vm1273_vm2 = vweird.f32 %v2332_v12 }
 0x623   :  { %v1236_v22 = vpop.xlane.xlu0 %1235  ;;  %vm1274_vm4 = vmor %vm1272_vm3, %vm1273_vm2 }
 0x624   :  { %v1269_v15 = vsub.f32 1.0, %v1268_v57  ;;  %2333 = vrcp.f32 %v1236_v22  ;;  %v1293_v27 = vand.u32 2147483648, %v1236_v22  ;;  %v1291_v28 = vand.u32 2147483647, %v1236_v22 }
 0x625   :  { %vm1287_vm7 = vweird.f32 %v1236_v22  ;;  %2335 = vrcp.f32 %v2448_v1 }
 0x626   :  { %v1270_v16 = vmul.f32 %v2332_v12, %v1269_v15  ;;  %v1294_v32 = vor.u32 1.1754944e-38, %v1293_v27  ;;  %vm1292_vm9 = vcmp.eq.f32.partialorder %v1291_v28, 8.507059e+37  ;;  %v1592_v28 = vld [vmem:[%s3441_s8 + $0x1e8] sm:$0xff] }
 0x627   :  { %1634 = vmatpush.msra.mxu3 %v1592_v28 }
 0x628   :  { %v1271_v17 = vadd.f32 %v2332_v12, %v1270_v16 }
 0x629   :  { %v1060_v51 = vpop.f32.mrf.mxu3 }
 0x62a   :  { %v2334_v19 = vpop.eup %2333  ;;  %v1275_v20 = vsel %vm1274_vm4, %v2332_v12, %v1271_v17  ;;  %2205 = vmatmul.msk.f32.gmra.mxu0 %vm228_vm0, %v1060_v51  ;;  %v2387_v12 = vld [vmem:[%s3433_s0 + $0x10] sm:$0xff]  ;;  %v2388_v17 = vld [vmem:[%s3433_s0 + $0x18] sm:$0xff] }
 0x62b   :  { %v1280_v21 = vsel %vm1277_vm5, %v1279_v18, %v1275_v20  ;;  %v1283_v24 = vmul.f32 %v2334_v19, %v1236_v22  ;;  %vm1288_vm6 = vweird.f32 %v2334_v19  ;;  %v2336_v34 = vpop.eup %2335 }
 0x62c   :  { %v1281_v26 = vmul.f32 %v3015_v23, %v1280_v21  ;;  %vm1289_vm8 = vmor %vm1287_vm7, %vm1288_vm6  ;;  %v1439_v5 = vmul.f32 128.0, %v2336_v34 }
 0x62d   :  { %v1284_v42 = vsub.f32 1.0, %v1283_v24 }
 0x62e   :  { %2217 = vmatmul.msk.f32.vlgmr.msra.gmra.mxu1 %vm313_vm1, %v1281_v26  ;;  %v1440_v63 = vsub.f32 1.0, %v1439_v5  ;;  %v1555_v5 = vld [vmem:[%s3441_s8 + $0xc0] sm:$0xff] }
 0x62f   :  { %v1285_v7 = vmul.f32 %v2334_v19, %v1284_v42 }
 0x630   :  { %v1441_v15 = vmul.f32 %v2336_v34, %v1440_v63  ;;  %v1558_v63 = vld [vmem:[%s3441_s8 + $0xd8] sm:$0xff] }
 0x631   :  { %v1286_v3 = vadd.f32 %v2334_v19, %v1285_v7  ;;  %v1591_v7 = vld [vmem:[%s3441_s8 + $0x1e0] sm:$0xff] }
 0x632   :  { %v1442_v54 = vadd.f32 %v2336_v34, %v1441_v15  ;;  %1605 = vmatpush.msrb.mxu0 %v1591_v7  ;;  %v1547_v15 = vld [vmem:[%s3441_s8 + $0x80] sm:$0xff]  ;;  %v1541_v7 = vld [vmem:[%s3441_s8 + $0x50] sm:$0xff] }
 0x633   :  { %v1290_v33 = vsel %vm1289_vm8, %v2334_v19, %v1286_v3  ;;  %v1593_v3 = vld [vmem:[%s3441_s8 + $0x1f0] sm:$0xff] }
 0x634   :  { %v1295_v35 = vsel %vm1292_vm9, %v1294_v32, %v1290_v33  ;;  %v1594_v32 = vld [vmem:[%s3441_s8 + $0x1f8] sm:$0xff]  ;;  %v1587_v33 = vld [vmem:[%s3441_s8 + $0x1c0] sm:$0xff]  ;;  %1663 = vmatpush.msrb.mxu1 %v1593_v3 }
 0x635   :  { %v1296_v39 = vmul.f32 %v3021_v31, %v1295_v35  ;;  %v770_v31 = vpop.f32.mrf.mxu0  ;;  %v1588_v35 = vld [vmem:[%s3441_s8 + $0x1c8] sm:$0xff]  ;;  %1692 = vmatpush.msra.mxu2 %v1594_v32  ;;  %1606 = vmatpush.msrb.mxu0 %v1587_v33  ;;  %v1542_v3 = vld [vmem:[%s3441_s8 + $0x58] sm:$0xff]  ;;  %v1535_v32 = vld [vmem:[%s3441_s8 + $0x20] sm:$0xff] }
 0x636   :  { %v812_v22 = vadd.f32 %v2966_v41, %v770_v31  ;;  %1635 = vmatpush.msra.mxu3 %v1588_v35  ;;  %v1582_v31 = vld [vmem:[%s3441_s8 + $0x198] sm:$0xff]  ;;  %v1536_v33 = vld [vmem:[%s3441_s8 + $0x28] sm:$0xff] }
 0x637   :  { %2218 = vmatmul.msk.f32.gmra.mxu1 %vm313_vm1, %v1296_v39  ;;  %v1589_v39 = vld [vmem:[%s3441_s8 + $0x1d0] sm:$0xff]  ;;  %v1538_v35 = vld [vmem:[%s3441_s8 + $0x38] sm:$0xff] }
 0x638   :  { %1664 = vmatpush.msrb.mxu1 %v1589_v39 }
 0x639   :  { %v1063_v38 = vpop.f32.mrf.mxu3 }
 0x63a   :  { %2206 = vmatmul.msk.f32.gmra.mxu0 %vm228_vm0, %v1063_v38  ;;  %v1590_v38 = vld [vmem:[%s3441_s8 + $0x1d8] sm:$0xff]  ;;  %1665 = vmatpush.msrb.mxu1 %v1585_v13 }
 0x63b   :  { %1693 = vmatpush.msra.mxu2 %v1590_v38  ;;  %v1531_v38 = vld [vmem:[%s3441_s8] sm:$0xff]  ;;  %v1534_v13 = vld [vmem:[%s3441_s8 + $0x18] sm:$0xff] }
 0x63d   :  { %v1099_v47 = vpop.f32.mrf.mxu0  ;;  %1694 = vmatpush.msra.mxu2 %v1586_v6 }
 0x63e   :  { %v1111_v37 = vadd.f32 %v1099_v47, %v803_v10  ;;  %v1575_v47 = vld [vmem:[%s3441_s8 + $0x160] sm:$0xff]  ;;  %v1576_v10 = vld [vmem:[%s3441_s8 + $0x168] sm:$0xff] }
 0x63f   :  { %1695 = vmatpush.msra.mxu2 %v1582_v31 }
 0x643   :  { %v1326_v23 = vpop.f32.mrf.mxu3 }
 0x644   :  { %2219 = vmatmul.msk.f32.vlgmr.msrb.gmra.mxu2 %vm228_vm0, %v1326_v23  ;;  %v1583_v23 = vld [vmem:[%s3441_s8 + $0x1a0] sm:$0xff] }
 0x645   :  { %v1102_v43 = vpop.f32.mrf.mxu0  ;;  %1607 = vmatpush.msrb.mxu0 %v1583_v23  ;;  %v1532_v23 = vld [vmem:[%s3441_s8 + $0x8] sm:$0xff] }
 0x646   :  { %v1112_v56 = vadd.f32 %v1102_v43, %v806_v49  ;;  %v1568_v43 = vld [vmem:[%s3441_s8 + $0x128] sm:$0xff]  ;;  %v1569_v49 = vld [vmem:[%s3441_s8 + $0x130] sm:$0xff] }
 0x690   :  { %v1329_v40 = vpop.f32.mrf.mxu3 }
 0x691   :  { %2220 = vmatmul.msk.f32.gmra.mxu2 %vm228_vm0, %v1329_v40  ;;  %v1584_v40 = vld [vmem:[%s3441_s8 + $0x1a8] sm:$0xff] }
 0x692   :  { %1636 = vmatpush.msra.mxu3 %v1584_v40  ;;  %v1533_v40 = vld [vmem:[%s3441_s8 + $0x10] sm:$0xff] }
 0x694   :  { %1637 = vmatpush.msra.mxu3 %v1580_v46 }
 0x696   :  { %1638 = vmatpush.msra.mxu3 %v1576_v10 }
 0x6a7   :  { %v1105_v2 = vpop.f32.mrf.mxu0 }
 0x6a8   :  { %v1113_v25 = vadd.f32 %v1105_v2, %v809_v4  ;;  %v1559_v2 = vld [vmem:[%s3441_s8 + $0xe0] sm:$0xff]  ;;  %v1561_v4 = vld [vmem:[%s3441_s8 + $0xf0] sm:$0xff] }
 0x6ab   :  { %v1361_v44 = vpop.f32.mrf.mxu1 }
 0x6ac   :  { %2221 = vmatmul.msk.f32.gmra.mxu2 %vm228_vm0, %v1361_v44  ;;  %v1579_v44 = vld [vmem:[%s3441_s8 + $0x180] sm:$0xff] }
 0x6ad   :  { %1608 = vmatpush.msrb.mxu0 %v1579_v44 }
 0x6af   :  { %1609 = vmatpush.msrb.mxu0 %v1575_v47 }
 0x6b4   :  { %v1364_v8 = vpop.f32.mrf.mxu1 }
 0x6b5   :  { %2222 = vmatmul.msk.f32.gmra.mxu2 %vm228_vm0, %v1364_v8  ;;  %vm1443_vm0 = vweird.f32 %v2336_v34  ;;  %v1581_v8 = vld [vmem:[%s3441_s8 + $0x190] sm:$0xff] }
 0x6b6   :  { %v3069_v51 = vsel %vm1443_vm0, %v2336_v34, %v1442_v54  ;;  %1666 = vmatpush.msrb.mxu1 %v1581_v8  ;;  %v1560_v34 = vld [vmem:[%s3441_s8 + $0xe8] sm:$0xff] }
 0x6b7   :  { %v1108_v11 = vpop.f32.mrf.mxu0 }
 0x6b8   :  { %v1114_v14 = vadd.f32 %v1108_v11, %v812_v22  ;;  %v1553_v22 = vld [vmem:[%s3441_s8 + $0xb0] sm:$0xff] }
 0x6c7   :  { %v1400_v48 = vpop.f32.mrf.mxu2 }
 0x6c8   :  { %v1412_v50 = vadd.f32 %v1400_v48, %v1111_v37  ;;  %v1577_v37 = vld [vmem:[%s3441_s8 + $0x170] sm:$0xff]  ;;  %v1571_v48 = vld [vmem:[%s3441_s8 + $0x140] sm:$0xff] }
 0x6c9   :  { %1667 = vmatpush.msrb.mxu1 %v1577_v37  ;;  %1610 = vmatpush.msrb.mxu0 %v1571_v48  ;;  %v3289_v48 = vld [vmem:[%s3439_s6] ss:$0 sm:$0xff] }
 0x6ca   :  { %v1420_v52 = vadd.f32 %v2265_v30, %v1412_v50  ;;  %v1572_v50 = vld [vmem:[%s3441_s8 + $0x148] sm:$0xff] }
 0x6cb   :  { %1639 = vmatpush.msra.mxu3 %v1572_v50 }
 0x6cc   :  { %v1424_v55 = vadd.f32 %v2385_v53, %v1420_v52  ;;  %v1573_v52 = vld [vmem:[%s3441_s8 + $0x150] sm:$0xff]  ;;  %v1574_v53 = vld [vmem:[%s3441_s8 + $0x158] sm:$0xff] }
 0x6cd   :  { %1668 = vmatpush.msrb.mxu1 %v1573_v52  ;;  %1640 = vmatpush.msra.mxu3 %v1568_v43 }
 0x6ce   :  { %1430 = vadd.xlane.f32.xlu0 %v1424_v55 }
 0x6cf   :  { %1669 = vmatpush.msrb.mxu1 %v1569_v49 }
 0x714   :  { %v1403_v59 = vpop.f32.mrf.mxu2 }
 0x715   :  { %v1413_v45 = vadd.f32 %v1403_v59, %v1112_v56  ;;  %v1570_v56 = vld [vmem:[%s3441_s8 + $0x138] sm:$0xff]  ;;  %v1563_v59 = vld [vmem:[%s3441_s8 + $0x100] sm:$0xff] }
 0x717   :  { %v1421_v60 = vadd.f32 %v2265_v30, %v1413_v45  ;;  %v1564_v45 = vld [vmem:[%s3441_s8 + $0x108] sm:$0xff] }
 0x718   :  { %1641 = vmatpush.msra.mxu3 %v1564_v45 }
 0x719   :  { %v1425_v62 = vadd.f32 %v2386_v61, %v1421_v60  ;;  %v1565_v60 = vld [vmem:[%s3441_s8 + $0x110] sm:$0xff] }
 0x71a   :  { %1670 = vmatpush.msrb.mxu1 %v1565_v60  ;;  %1642 = vmatpush.msra.mxu3 %v1560_v34 }
 0x71b   :  { %1432 = vadd.xlane.f32.xlu2 %v1425_v62 }
 0x71c   :  { %1671 = vmatpush.msrb.mxu1 %v1561_v4 }
 0x72f   :  { %v1406_v29 = vpop.f32.mrf.mxu2 }
 0x730   :  { %v1414_v0 = vadd.f32 %v1406_v29, %v1113_v25  ;;  %v1562_v25 = vld [vmem:[%s3441_s8 + $0xf8] sm:$0xff] }
 0x732   :  { %v1422_v9 = vadd.f32 %v2265_v30, %v1414_v0  ;;  %v1556_v0 = vld [vmem:[%s3441_s8 + $0xc8] sm:$0xff] }
 0x733   :  { %1643 = vmatpush.msra.mxu3 %v1556_v0 }
 0x734   :  { %v3059_v57 = vadd.f32 %v2387_v12, %v1422_v9  ;;  %v1557_v9 = vld [vmem:[%s3441_s8 + $0xd0] sm:$0xff]  ;;  %v1551_v12 = vld [vmem:[%s3441_s8 + $0xa0] sm:$0xff] }
 0x735   :  { %1672 = vmatpush.msrb.mxu1 %v1557_v9 }
 0x736   :  { %1434 = vadd.xlane.f32.xlu1 %v3059_v57 }
 0x737   :  { %1673 = vmatpush.msrb.mxu1 %v1553_v22  ;;  %v1878_v22 = vld [vmem:[#allocation4 + $0x68] sm:$0xff] }
 0x738   :  { %v1409_v36 = vpop.f32.mrf.mxu2 }
 0x739   :  { %v1415_v58 = vadd.f32 %v1409_v36, %v1114_v14  ;;  %v1554_v14 = vld [vmem:[%s3441_s8 + $0xb8] sm:$0xff]  ;;  %v1548_v36 = vld [vmem:[%s3441_s8 + $0x88] sm:$0xff] }
 0x73b   :  { %v1423_v16 = vadd.f32 %v2265_v30, %v1415_v58  ;;  %v1578_v30 = vld [vmem:[%s3441_s8 + $0x178] sm:$0xff]  ;;  %v1549_v58 = vld [vmem:[%s3441_s8 + $0x90] sm:$0xff] }
 0x73c   :  { %1696 = vmatpush.msra.mxu2 %v1578_v30  ;;  %1674 = vmatpush.msrb.mxu1 %v1549_v58  ;;  %v1928_v58 = vld [vmem:[#allocation4 + $0x1f8] sm:$0xff] }
 0x73d   :  { %v3066_v18 = vadd.f32 %v2388_v17, %v1423_v16  ;;  %v1550_v16 = vld [vmem:[%s3441_s8 + $0x98] sm:$0xff]  ;;  %v1543_v17 = vld [vmem:[%s3441_s8 + $0x60] sm:$0xff] }
 0x73e   :  { %1697 = vmatpush.msra.mxu2 %v1574_v53  ;;  %v3295_v53 = vld [vmem:[%s3440_s7] ss:$0 sm:$0xff] }
 0x73f   :  { %1436 = vadd.xlane.f32.xlu0 %v3066_v18 }
 0x740   :  { %1698 = vmatpush.msra.mxu2 %v1570_v56 }
 0x741   :  { %v1431_v41 = vpop.xlane.xlu0 %1430 }
 0x742   :  { %v1445_v19 = vmul.f32 %v3069_v51, %v1431_v41  ;;  %v1544_v41 = vld [vmem:[%s3441_s8 + $0x68] sm:$0xff] }
 0x744   :  { %v3072_v20 = vsub.f32 %v1424_v55, %v1445_v19  ;;  %v1567_v55 = vld [vmem:[%s3441_s8 + $0x120] sm:$0xff]  ;;  %v1545_v19 = vld [vmem:[%s3441_s8 + $0x70] sm:$0xff] }
 0x745   :  { %1611 = vmatpush.msrb.mxu0 %v1567_v55  ;;  %1675 = vmatpush.msrb.mxu1 %v1545_v19 }
 0x746   :  { %v1453_v21 = vmul.f32 %v3072_v20, %v3072_v20 }
 0x747   :  { %1612 = vmatpush.msrb.mxu0 %v1563_v59  ;;  %1676 = vmatpush.msrb.mxu1 %v1541_v7 }
 0x748   :  { %1457 = vadd.xlane.f32.xlu0 %v1453_v21 }
 0x749   :  { %1613 = vmatpush.msrb.mxu0 %v1559_v2 }
 0x74b   :  { %1614 = vmatpush.msrb.mxu0 %v1555_v5 }
 0x74d   :  { %1615 = vmatpush.msrb.mxu0 %v1551_v12  ;;  %v1911_v12 = vld [vmem:[#allocation4 + $0x170] sm:$0xff] }
 0x74f   :  { %1616 = vmatpush.msrb.mxu0 %v1547_v15  ;;  %v1896_v15 = vld [vmem:[#allocation4 + $0xf8] sm:$0xff] }
 0x751   :  { %1617 = vmatpush.msrb.mxu0 %v1543_v17  ;;  %v1909_v17 = vld [vmem:[#allocation4 + $0x160] sm:$0xff] }
 0x78e   :  { %v1433_v24 = vpop.xlane.xlu2 %1432 }
 0x78f   :  { %v1446_v26 = vmul.f32 %v3069_v51, %v1433_v24  ;;  %v1546_v24 = vld [vmem:[%s3441_s8 + $0x78] sm:$0xff] }
 0x791   :  { %v3077_v42 = vsub.f32 %v1425_v62, %v1446_v26  ;;  %v1566_v62 = vld [vmem:[%s3441_s8 + $0x118] sm:$0xff]  ;;  %v1539_v26 = vld [vmem:[%s3441_s8 + $0x40] sm:$0xff] }
 0x792   :  { %1699 = vmatpush.msra.mxu2 %v1566_v62  ;;  %1618 = vmatpush.msrb.mxu0 %v1539_v26 }
 0x793   :  { %v1454_v27 = vmul.f32 %v3077_v42, %v3077_v42 }
 0x794   :  { %1700 = vmatpush.msra.mxu2 %v1562_v25  ;;  %1619 = vmatpush.msrb.mxu0 %v1535_v32  ;;  %v1895_v32 = vld [vmem:[#allocation4 + $0xf0] sm:$0xff] }
 0x795   :  { %1459 = vadd.xlane.f32.xlu0 %v1454_v27  ;;  %v1540_v27 = vld [vmem:[%s3441_s8 + $0x48] sm:$0xff] }
 0x796   :  { %1701 = vmatpush.msra.mxu2 %v1558_v63  ;;  %1620 = vmatpush.msrb.mxu0 %v1531_v38  ;;  %v1880_v63 = vld [vmem:[#allocation4 + $0x78] sm:$0xff]  ;;  %v1875_v38 = vld [vmem:[#allocation4 + $0x50] sm:$0xff] }
 0x798   :  { %1702 = vmatpush.msra.mxu2 %v1554_v14  ;;  %1933 = vmatpush.msra.mxu0 %v1880_v63  ;;  %v1910_v14 = vld [vmem:[#allocation4 + $0x168] sm:$0xff]  ;;  %v1921_v63 = vld [vmem:[#allocation4 + $0x1c0] sm:$0xff] }
 0x79a   :  { %1703 = vmatpush.msra.mxu2 %v1550_v16 }
 0x79c   :  { %1704 = vmatpush.msra.mxu2 %v1546_v24 }
 0x79e   :  { %1705 = vmatpush.msra.mxu2 %v1542_v3  ;;  %v1876_v3 = vld [vmem:[#allocation4 + $0x58] sm:$0xff] }
 0x7a0   :  { %1706 = vmatpush.msra.mxu2 %v1538_v35  ;;  %v1927_v35 = vld [vmem:[#allocation4 + $0x1f0] sm:$0xff] }
 0x7a2   :  { %1707 = vmatpush.msra.mxu2 %v1534_v13 }
 0x7a4   :  { %2020 = vmatpush.msrb.mxu2 %v1928_v58  ;;  %v1886_v58 = vld [vmem:[#allocation4 + $0xa8] sm:$0xff] }
 0x7a6   :  { %2021 = vmatpush.msrb.mxu2 %v1927_v35 }
 0x7a9   :  { %v1435_v61 = vpop.xlane.xlu1 %1434 }
 0x7aa   :  { %v1447_v1 = vmul.f32 %v3069_v51, %v1435_v61 }
 0x7ac   :  { %v3191_v29 = vsub.f32 %v3059_v57, %v1447_v1  ;;  %v1552_v57 = vld [vmem:[%s3441_s8 + $0xa8] sm:$0xff] }
 0x7ad   :  { %1644 = vmatpush.msra.mxu3 %v1552_v57 }
 0x7ae   :  { %v1455_v11 = vmul.f32 %v3191_v29, %v3191_v29 }
 0x7af   :  { %1645 = vmatpush.msra.mxu3 %v1548_v36 }
 0x7b0   :  { %1461 = vadd.xlane.f32.xlu0 %v1455_v11  ;;  %v1879_v11 = vld [vmem:[#allocation4 + $0x70] sm:$0xff] }
 0x7b1   :  { %1646 = vmatpush.msra.mxu3 %v1544_v41  ;;  %1934 = vmatpush.msra.mxu0 %v1879_v11  ;;  %v1869_v11 = vld [vmem:[#allocation4 + $0x20] sm:$0xff] }
 0x7b2   :  { %v1437_v54 = vpop.xlane.xlu0 %1436 }
 0x7b3   :  { %v1448_v21 = vmul.f32 %v3069_v51, %v1437_v54  ;;  %1647 = vmatpush.msra.mxu3 %v1540_v27  ;;  %v1877_v54 = vld [vmem:[#allocation4 + $0x60] sm:$0xff]  ;;  %1935 = vmatpush.msra.mxu0 %v1878_v22  ;;  %v1920_v22 = vld [vmem:[#allocation4 + $0x1b8] sm:$0xff] }
 0x7b5   :  { %v3254_v28 = vsub.f32 %v3066_v18, %v1448_v21  ;;  %v1537_v18 = vld [vmem:[%s3441_s8 + $0x30] sm:$0xff]  ;;  %1648 = vmatpush.msra.mxu3 %v1536_v33  ;;  %1936 = vmatpush.msra.mxu0 %v1877_v54  ;;  %v1908_v33 = vld [vmem:[#allocation4 + $0x158] sm:$0xff]  ;;  %v1918_v54 = vld [vmem:[#allocation4 + $0x1a8] sm:$0xff] }
 0x7b6   :  { %1677 = vmatpush.msrb.mxu1 %v1537_v18 }
 0x7b7   :  { %v1456_v39 = vmul.f32 %v3254_v28, %v3254_v28  ;;  %1649 = vmatpush.msra.mxu3 %v1532_v23  ;;  %1937 = vmatpush.msra.mxu0 %v1876_v3  ;;  %v1894_v23 = vld [vmem:[#allocation4 + $0xe8] sm:$0xff]  ;;  %v1916_v3 = vld [vmem:[#allocation4 + $0x198] sm:$0xff] }
 0x7b8   :  { %1678 = vmatpush.msrb.mxu1 %v1533_v40 }
 0x7b9   :  { %1463 = vadd.xlane.f32.xlu0 %v1456_v39  ;;  %1962 = vmatpush.msrb.mxu3 %v1896_v15  ;;  %v1900_v15 = vld [vmem:[#allocation4 + $0x118] sm:$0xff] }
 0x7ba   :  { %1938 = vmatpush.msra.mxu0 %v1875_v38  ;;  %v1914_v38 = vld [vmem:[#allocation4 + $0x188] sm:$0xff] }
 0x7bb   :  { %v1458_v6 = vpop.xlane.xlu0 %1457  ;;  %1963 = vmatpush.msrb.mxu3 %v1895_v32  ;;  %v1883_v32 = vld [vmem:[#allocation4 + $0x90] sm:$0xff] }
 0x7bc   :  { %v1465_v44 = vmul.f32 %v1458_v6, %v3069_v51  ;;  %v1907_v6 = vld [vmem:[#allocation4 + $0x150] sm:$0xff] }
 0x7bd   :  { %1964 = vmatpush.msrb.mxu3 %v1894_v23 }
 0x7be   :  { %v1469_v46 = vadd.f32 1e-05, %v1465_v44  ;;  %v1926_v44 = vld [vmem:[#allocation4 + $0x1e8] sm:$0xff] }
 0x7bf   :  { %2022 = vmatpush.msrb.mxu2 %v1926_v44  ;;  %v1913_v44 = vld [vmem:[#allocation4 + $0x180] sm:$0xff] }
 0x7c0   :  { %2337 = vrsqrt.f32 %v1469_v46  ;;  %vm1479_vm10 = vweird.f32 %v1469_v46 }
 0x7c6   :  { %v2338_v8 = vpop.eup %2337 }
 0x7c7   :  { %v1474_v31 = vmul.f32 %v2338_v8, %v1469_v46  ;;  %vm1480_vm1 = vweird.f32 %v2338_v8  ;;  %v1874_v46 = vld [vmem:[#allocation4 + $0x48] sm:$0xff] }
 0x7c8   :  { %vm1481_vm11 = vmor %vm1479_vm10, %vm1480_vm1  ;;  %1939 = vmatpush.msra.mxu0 %v1874_v46 }
 0x7c9   :  { %v1475_v47 = vmul.f32 %v2338_v8, %v1474_v31  ;;  %v1906_v31 = vld [vmem:[#allocation4 + $0x148] sm:$0xff] }
 0x7cb   :  { %v1476_v10 = vmul.f32 0.5, %v1475_v47 }
 0x7cd   :  { %v1477_v37 = vsub.f32 1.5, %v1476_v10 }
 0x7cf   :  { %v1478_v30 = vmul.f32 %v2338_v8, %v1477_v37  ;;  %v1925_v37 = vld [vmem:[#allocation4 + $0x1e0] sm:$0xff] }
 0x7d0   :  { %2023 = vmatpush.msrb.mxu2 %v1925_v37 }
 0x7d1   :  { %v1482_v50 = vsel %vm1481_vm11, %v2338_v8, %v1478_v30  ;;  %v1893_v8 = vld [vmem:[#allocation4 + $0xe0] sm:$0xff]  ;;  %v1892_v30 = vld [vmem:[#allocation4 + $0xd8] sm:$0xff] }
 0x7d2   :  { %v1513_v52 = vmul.f32 %v1482_v50, %v3072_v20  ;;  %1965 = vmatpush.msrb.mxu3 %v1893_v8  ;;  %v1905_v50 = vld [vmem:[#allocation4 + $0x140] sm:$0xff] }
 0x7d4   :  { %v1520_v55 = vmul.f32 %v3289_v48, %v1513_v52  ;;  %1966 = vmatpush.msrb.mxu3 %v1892_v30 }
 0x7d6   :  { %v3299_v43 = vadd.f32 %v3295_v53, %v1520_v55 }
 0x7d8   :  { %1621 = vmatmul.f32.vlgmr.msrb.gmra.mxu0 %v3299_v43  ;;  %1650 = vmatmul.f32.vlgmr.msra.gmra.mxu3 %v3299_v43 }
 0x7d9   :  { %1679 = vmatmul.f32.vlgmr.msrb.gmra.mxu1 %v3299_v43  ;;  %1708 = vmatmul.f32.vlgmr.msra.gmra.mxu2 %v3299_v43 }
 0x808   :  { %v1460_v49 = vpop.xlane.xlu0 %1459 }
 0x809   :  { %v1466_v20 = vmul.f32 %v1460_v49, %v3069_v51  ;;  %v1924_v49 = vld [vmem:[#allocation4 + $0x1d8] sm:$0xff] }
 0x80a   :  { %2024 = vmatpush.msrb.mxu2 %v1924_v49 }
 0x80b   :  { %v1470_v56 = vadd.f32 1e-05, %v1466_v20  ;;  %v1872_v20 = vld [vmem:[#allocation4 + $0x38] sm:$0xff] }
 0x80d   :  { %2339 = vrsqrt.f32 %v1470_v56  ;;  %vm1489_vm13 = vweird.f32 %v1470_v56 }
 0x813   :  { %v2340_v59 = vpop.eup %2339 }
 0x814   :  { %v1484_v45 = vmul.f32 %v2340_v59, %v1470_v56  ;;  %vm1490_vm12 = vweird.f32 %v2340_v59  ;;  %v1891_v56 = vld [vmem:[#allocation4 + $0xd0] sm:$0xff] }
 0x815   :  { %vm1491_vm14 = vmor %vm1489_vm13, %vm1490_vm12  ;;  %1967 = vmatpush.msrb.mxu3 %v1891_v56 }
 0x816   :  { %v1485_v60 = vmul.f32 %v2340_v59, %v1484_v45  ;;  %v1904_v45 = vld [vmem:[#allocation4 + $0x138] sm:$0xff] }
 0x818   :  { %v1486_v61 = vmul.f32 0.5, %v1485_v60  ;;  %v1923_v60 = vld [vmem:[#allocation4 + $0x1d0] sm:$0xff] }
 0x819   :  { %2025 = vmatpush.msrb.mxu2 %v1923_v60 }
 0x81a   :  { %v1487_v62 = vsub.f32 1.5, %v1486_v61  ;;  %v1871_v61 = vld [vmem:[#allocation4 + $0x30] sm:$0xff] }
 0x81c   :  { %v1488_v1 = vmul.f32 %v2340_v59, %v1487_v62  ;;  %v1890_v62 = vld [vmem:[#allocation4 + $0xc8] sm:$0xff] }
 0x81d   :  { %1968 = vmatpush.msrb.mxu3 %v1890_v62 }
 0x81e   :  { %v1492_v2 = vsel %vm1491_vm14, %v2340_v59, %v1488_v1 }
 0x81f   :  { %v1514_v34 = vmul.f32 %v1492_v2, %v3077_v42  ;;  %v1912_v42 = vld [vmem:[#allocation4 + $0x178] sm:$0xff]  ;;  %v1903_v2 = vld [vmem:[#allocation4 + $0x130] sm:$0xff] }
 0x820   :  { %1991 = vmatpush.msra.mxu1 %v1912_v42 }
 0x821   :  { %v1521_v4 = vmul.f32 %v3289_v48, %v1514_v34  ;;  %v1922_v34 = vld [vmem:[#allocation4 + $0x1c8] sm:$0xff] }
 0x822   :  { %1992 = vmatpush.msra.mxu1 %v1911_v12  ;;  %2026 = vmatpush.msrb.mxu2 %v1922_v34  ;;  %v1888_v12 = vld [vmem:[#allocation4 + $0xb8] sm:$0xff] }
 0x823   :  { %v1462_v25 = vpop.xlane.xlu0 %1461  ;;  %v3309_v5 = vadd.f32 %v3295_v53, %v1521_v4 }
 0x824   :  { %v1467_v0 = vmul.f32 %v1462_v25, %v3069_v51  ;;  %1993 = vmatpush.msra.mxu1 %v1910_v14  ;;  %v1870_v25 = vld [vmem:[#allocation4 + $0x28] sm:$0xff]  ;;  %2027 = vmatpush.msrb.mxu2 %v1921_v63  ;;  %v1887_v14 = vld [vmem:[#allocation4 + $0xb0] sm:$0xff] }
 0x825   :  { %1624 = vmatmul.f32.gmra.mxu0 %v3309_v5  ;;  %1653 = vmatmul.f32.gmra.mxu3 %v3309_v5 }
 0x826   :  { %v1471_v9 = vadd.f32 1e-05, %v1467_v0  ;;  %1682 = vmatmul.f32.gmra.mxu1 %v3309_v5  ;;  %1711 = vmatmul.f32.gmra.mxu2 %v3309_v5  ;;  %v1889_v0 = vld [vmem:[#allocation4 + $0xc0] sm:$0xff] }
 0x827   :  { %1994 = vmatpush.msra.mxu1 %v1909_v17  ;;  %1969 = vmatpush.msrb.mxu3 %v1889_v0  ;;  %v1866_v17 = vld [vmem:[#allocation4 + $0x8] sm:$0xff] }
 0x828   :  { %2341 = vrsqrt.f32 %v1471_v9  ;;  %vm1499_vm2 = vweird.f32 %v1471_v9  ;;  %2028 = vmatpush.msrb.mxu2 %v1920_v22 }
 0x829   :  { %1995 = vmatpush.msra.mxu1 %v1908_v33  ;;  %1970 = vmatpush.msrb.mxu3 %v1888_v12 }
 0x82b   :  { %1996 = vmatpush.msra.mxu1 %v1907_v6  ;;  %1971 = vmatpush.msrb.mxu3 %v1887_v14 }
 0x82c   :  { %v1464_v57 = vpop.xlane.xlu0 %1463 }
 0x82d   :  { %v1468_v36 = vmul.f32 %v1464_v57, %v3069_v51  ;;  %1997 = vmatpush.msra.mxu1 %v1906_v31  ;;  %1972 = vmatpush.msrb.mxu3 %v1886_v58 }
 0x82e   :  { %v2342_v16 = vpop.eup %2341 }
 0x82f   :  { %v1494_v41 = vmul.f32 %v2342_v16, %v1471_v9  ;;  %v3317_v19 = vadd.f32 1e-05, %v1468_v36  ;;  %vm1500_vm15 = vweird.f32 %v2342_v16  ;;  %1998 = vmatpush.msra.mxu1 %v1905_v50  ;;  %v1902_v9 = vld [vmem:[#allocation4 + $0x128] sm:$0xff]  ;;  %v1919_v36 = vld [vmem:[#allocation4 + $0x1b0] sm:$0xff] }
 0x830   :  { %vm1501_vm3 = vmor %vm1499_vm2, %vm1500_vm15  ;;  %2029 = vmatpush.msrb.mxu2 %v1919_v36 }
 0x831   :  { %v1495_v21 = vmul.f32 %v2342_v16, %v1494_v41  ;;  %2343 = vrsqrt.f32 %v3317_v19  ;;  %vm1509_vm5 = vweird.f32 %v3317_v19  ;;  %1999 = vmatpush.msra.mxu1 %v1904_v45  ;;  %v1885_v41 = vld [vmem:[#allocation4 + $0xa0] sm:$0xff] }
 0x832   :  { %2030 = vmatpush.msrb.mxu2 %v1918_v54  ;;  %1973 = vmatpush.msrb.mxu3 %v1885_v41 }
 0x833   :  { %v1496_v24 = vmul.f32 0.5, %v1495_v21  ;;  %2000 = vmatpush.msra.mxu1 %v1903_v2  ;;  %v1917_v21 = vld [vmem:[#allocation4 + $0x1a0] sm:$0xff] }
 0x834   :  { %2031 = vmatpush.msrb.mxu2 %v1917_v21 }
 0x835   :  { %v1497_v26 = vsub.f32 1.5, %v1496_v24  ;;  %2001 = vmatpush.msra.mxu1 %v1902_v9  ;;  %v1595_v24 = vld [vmem:[%s3442_s9] sm:$0xf] }
 0x836   :  { %v3352_v33 = vperm.slane %v1595_v24, 0  ;;  %v3354_v35 = vperm.slane %v1595_v24, 2  ;;  %2032 = vmatpush.msrb.mxu2 %v1916_v3  ;;  %v3358_v31 = vperm.slane %v1595_v24, 1 }
 0x837   :  { %v3320_v27 = vpop.eup %2343  ;;  %v1498_v7 = vmul.f32 %v2342_v16, %v1497_v26  ;;  %v1865_v26 = vld [vmem:[#allocation4] sm:$0xff] }
 0x838   :  { %v1504_v18 = vmul.f32 %v3320_v27, %v3317_v19  ;;  %vm1510_vm4 = vweird.f32 %v3320_v27  ;;  %v1898_v19 = vld [vmem:[#allocation4 + $0x108] sm:$0xff] }
 0x839   :  { %v1502_v39 = vsel %vm1501_vm3, %v2342_v16, %v1498_v7  ;;  %vm1511_vm6 = vmor %vm1509_vm5, %vm1510_vm4  ;;  %v1899_v16 = vld [vmem:[#allocation4 + $0x110] sm:$0xff]  ;;  %v1897_v7 = vld [vmem:[#allocation4 + $0x100] sm:$0xff] }
 0x83a   :  { %v1515_v40 = vmul.f32 %v1502_v39, %v3191_v29  ;;  %v1505_v13 = vmul.f32 %v3320_v27, %v1504_v18  ;;  %v1873_v29 = vld [vmem:[#allocation4 + $0x40] sm:$0xff]  ;;  %v1915_v18 = vld [vmem:[#allocation4 + $0x190] sm:$0xff]  ;;  %v1882_v39 = vld [vmem:[#allocation4 + $0x88] sm:$0xff] }
 0x83b   :  { %1940 = vmatpush.msra.mxu0 %v1873_v29  ;;  %2033 = vmatpush.msrb.mxu2 %v1915_v18 }
 0x83c   :  { %v1522_v47 = vmul.f32 %v3289_v48, %v1515_v40  ;;  %v1506_v10 = vmul.f32 0.5, %v1505_v13  ;;  %v1881_v40 = vld [vmem:[#allocation4 + $0x80] sm:$0xff] }
 0x83d   :  { %1941 = vmatpush.msra.mxu0 %v1872_v20  ;;  %2034 = vmatpush.msrb.mxu2 %v1914_v38 }
 0x83e   :  { %v1507_v52 = vsub.f32 1.5, %v1506_v10  ;;  %v3329_v55 = vadd.f32 %v3295_v53, %v1522_v47  ;;  %v3360_v10 = vperm.slane %v1595_v24, 3 }
 0x83f   :  { %1942 = vmatpush.msra.mxu0 %v1871_v61  ;;  %2035 = vmatpush.msrb.mxu2 %v1913_v44 }
 0x840   :  { %v1508_v59 = vmul.f32 %v3320_v27, %v1507_v52  ;;  %1627 = vmatmul.f32.gmra.mxu0 %v3329_v55  ;;  %1656 = vmatmul.f32.gmra.mxu3 %v3329_v55 }
 0x841   :  { %1685 = vmatmul.f32.gmra.mxu1 %v3329_v55  ;;  %1714 = vmatmul.f32.gmra.mxu2 %v3329_v55 }
 0x842   :  { %v1512_v1 = vsel %vm1511_vm6, %v3320_v27, %v1508_v59  ;;  %1943 = vmatpush.msra.mxu0 %v1870_v25  ;;  %v1884_v27 = vld [vmem:[#allocation4 + $0x98] sm:$0xff] }
 0x843   :  { %v1516_v4 = vmul.f32 %v1512_v1, %v3254_v28  ;;  %v1901_v28 = vld [vmem:[#allocation4 + $0x120] sm:$0xff]  ;;  %1974 = vmatpush.msrb.mxu3 %v1884_v27 }
 0x844   :  { %1944 = vmatpush.msra.mxu0 %v1869_v11  ;;  %2002 = vmatpush.msra.mxu1 %v1901_v28 }
 0x845   :  { %v1523_v42 = vmul.f32 %v3289_v48, %v1516_v4  ;;  %v1868_v48 = vld [vmem:[#allocation4 + $0x18] sm:$0xff]  ;;  %1975 = vmatpush.msrb.mxu3 %v1883_v32 }
 0x846   :  { %1945 = vmatpush.msra.mxu0 %v1868_v48  ;;  %2003 = vmatpush.msra.mxu1 %v1900_v15 }
 0x847   :  { %v3343_v57 = vadd.f32 %v3295_v53, %v1523_v42  ;;  %v1867_v53 = vld [vmem:[#allocation4 + $0x10] sm:$0xff]  ;;  %1976 = vmatpush.msrb.mxu3 %v1882_v39 }
 0x848   :  { %1946 = vmatpush.msra.mxu0 %v1867_v53  ;;  %2004 = vmatpush.msra.mxu1 %v1899_v16 }
 0x849   :  { %1630 = vmatmul.f32.gmra.mxu0 %v3343_v57  ;;  %1659 = vmatmul.f32.gmra.mxu3 %v3343_v57 }
 0x84a   :  { %1688 = vmatmul.f32.gmra.mxu1 %v3343_v57  ;;  %1717 = vmatmul.f32.gmra.mxu2 %v3343_v57 }
 0x84b   :  { %1947 = vmatpush.msra.mxu0 %v1866_v17  ;;  %2005 = vmatpush.msra.mxu1 %v1898_v19 }
 0x84c   :  { %1977 = vmatpush.msrb.mxu3 %v1881_v40 }
 0x84d   :  { %1948 = vmatpush.msra.mxu0 %v1865_v26  ;;  %2006 = vmatpush.msra.mxu1 %v1897_v7 }
 0x855   :  { %v1622_v23 = vpop.f32.mrf.mxu0 }
 0x856   :  { %v1623_v13 = vadd.f32 %v1622_v23, %v3352_v33  ;;  %v1680_v6 = vpop.f32.mrf.mxu1 }
 0x857   :  { %v1681_v46 = vadd.f32 %v1680_v6, %v3354_v35 }
 0x858   :  { %v1737_v8 = vmul.f32 0.044715, %v1623_v13  ;;  %v1721_v28 = vmul.f32 0.5, %v1623_v13 }
 0x859   :  { %v1739_v47 = vmul.f32 0.044715, %v1681_v46  ;;  %v1723_v48 = vmul.f32 0.5, %v1681_v46 }
 0x85a   :  { %v1753_v37 = vmul.f32 %v1737_v8, %v1623_v13 }
 0x85b   :  { %v1755_v29 = vmul.f32 %v1739_v47, %v1681_v46  ;;  %v1651_v30 = vpop.f32.mrf.mxu3 }
 0x85c   :  { %v1769_v50 = vmul.f32 %v1753_v37, %v1623_v13  ;;  %v1652_v52 = vadd.f32 %v1651_v30, %v3358_v31  ;;  %v1709_v49 = vpop.f32.mrf.mxu2 }
 0x85d   :  { %v1771_v20 = vmul.f32 %v1755_v29, %v1681_v46  ;;  %v1710_v56 = vadd.f32 %v1709_v49, %v3360_v10 }
 0x85e   :  { %v1738_v59 = vmul.f32 0.044715, %v1652_v52  ;;  %v1785_v45 = vadd.f32 %v1769_v50, %v1623_v13  ;;  %v1722_v16 = vmul.f32 0.5, %v1652_v52 }
 0x85f   :  { %v1740_v60 = vmul.f32 0.044715, %v1710_v56  ;;  %v1787_v61 = vadd.f32 %v1771_v20, %v1681_v46  ;;  %v1724_v17 = vmul.f32 0.5, %v1710_v56 }
 0x860   :  { %v1754_v62 = vmul.f32 %v1738_v59, %v1652_v52  ;;  %v1801_v1 = vmul.f32 0.7978846, %v1785_v45 }
 0x861   :  { %v1756_v2 = vmul.f32 %v1740_v60, %v1710_v56  ;;  %v1803_v34 = vmul.f32 0.7978846, %v1787_v61 }
 0x862   :  { %v1770_v4 = vmul.f32 %v1754_v62, %v1652_v52  ;;  %2345 = vtanh.f32 %v1801_v1 }
 0x863   :  { %v1772_v25 = vmul.f32 %v1756_v2, %v1710_v56  ;;  %2347 = vtanh.f32 %v1803_v34 }
 0x864   :  { %v1786_v0 = vadd.f32 %v1770_v4, %v1652_v52 }
 0x865   :  { %v1788_v9 = vadd.f32 %v1772_v25, %v1710_v56 }
 0x866   :  { %v1802_v63 = vmul.f32 0.7978846, %v1786_v0 }
 0x867   :  { %v1804_v42 = vmul.f32 0.7978846, %v1788_v9 }
 0x868   :  { %v2346_v11 = vpop.eup %2345  ;;  %2349 = vtanh.f32 %v1802_v63 }
 0x869   :  { %v2348_v12 = vpop.eup %2347  ;;  %v1833_v22 = vadd.f32 1.0, %v2346_v11  ;;  %2351 = vtanh.f32 %v1804_v42 }
 0x86a   :  { %v1835_v14 = vadd.f32 1.0, %v2348_v12 }
 0x86b   :  { %v1849_v15 = vmul.f32 %v1833_v22, %v1721_v28 }
 0x86c   :  { %v1851_v36 = vmul.f32 %v1835_v14, %v1723_v48 }
 0x86d   :  { %1949 = vmatmul.f32.vlgmr.msra.gmra.mxu0 %v1849_v15 }
 0x86e   :  { %v2350_v53 = vpop.eup %2349  ;;  %2007 = vmatmul.f32.vlgmr.msra.gmra.mxu1 %v1851_v36 }
 0x86f   :  { %v2352_v58 = vpop.eup %2351  ;;  %v1834_v54 = vadd.f32 1.0, %v2350_v53 }
 0x870   :  { %v1836_v41 = vadd.f32 1.0, %v2352_v58 }
 0x871   :  { %v1850_v19 = vmul.f32 %v1834_v54, %v1722_v16 }
 0x872   :  { %v1852_v21 = vmul.f32 %v1836_v41, %v1724_v17 }
 0x873   :  { %1978 = vmatmul.f32.vlgmr.msrb.gmra.mxu3 %v1850_v19 }
 0x874   :  { %2036 = vmatmul.f32.vlgmr.msrb.gmra.mxu2 %v1852_v21 }
 0x8a2   :  { %v1625_v24 = vpop.f32.mrf.mxu0 }
 0x8a3   :  { %v1626_v26 = vadd.f32 %v1625_v24, %v3352_v33  ;;  %v1683_v27 = vpop.f32.mrf.mxu1 }
 0x8a4   :  { %v1684_v7 = vadd.f32 %v1683_v27, %v3354_v35 }
 0x8a5   :  { %v1741_v3 = vmul.f32 0.044715, %v1626_v26  ;;  %v1725_v1 = vmul.f32 0.5, %v1626_v26 }
 0x8a6   :  { %v1743_v32 = vmul.f32 0.044715, %v1684_v7  ;;  %v1727_v34 = vmul.f32 0.5, %v1684_v7 }
 0x8a7   :  { %v1757_v18 = vmul.f32 %v1741_v3, %v1626_v26 }
 0x8a8   :  { %v1654_v39 = vpop.f32.mrf.mxu3  ;;  %v1759_v38 = vmul.f32 %v1743_v32, %v1684_v7 }
 0x8a9   :  { %v1655_v23 = vadd.f32 %v1654_v39, %v3358_v31  ;;  %v1712_v40 = vpop.f32.mrf.mxu2  ;;  %v1773_v13 = vmul.f32 %v1757_v18, %v1626_v26 }
 0x8aa   :  { %v1713_v6 = vadd.f32 %v1712_v40, %v3360_v10  ;;  %v1775_v44 = vmul.f32 %v1759_v38, %v1684_v7 }
 0x8ab   :  { %v1789_v46 = vadd.f32 %v1773_v13, %v1626_v26  ;;  %v1742_v8 = vmul.f32 0.044715, %v1655_v23  ;;  %v1726_v42 = vmul.f32 0.5, %v1655_v23 }
 0x8ac   :  { %v1791_v47 = vadd.f32 %v1775_v44, %v1684_v7  ;;  %v1744_v37 = vmul.f32 0.044715, %v1713_v6  ;;  %v1728_v28 = vmul.f32 0.5, %v1713_v6 }
 0x8ad   :  { %v1805_v29 = vmul.f32 0.7978846, %v1789_v46  ;;  %v1758_v30 = vmul.f32 %v1742_v8, %v1655_v23 }
 0x8ae   :  { %v1807_v50 = vmul.f32 0.7978846, %v1791_v47  ;;  %v1760_v52 = vmul.f32 %v1744_v37, %v1713_v6 }
 0x8af   :  { %2353 = vtanh.f32 %v1805_v29  ;;  %v1774_v49 = vmul.f32 %v1758_v30, %v1655_v23 }
 0x8b0   :  { %2355 = vtanh.f32 %v1807_v50  ;;  %v1776_v20 = vmul.f32 %v1760_v52, %v1713_v6 }
 0x8b1   :  { %v1790_v56 = vadd.f32 %v1774_v49, %v1655_v23 }
 0x8b2   :  { %v1792_v59 = vadd.f32 %v1776_v20, %v1713_v6 }
 0x8b3   :  { %v1806_v45 = vmul.f32 0.7978846, %v1790_v56 }
 0x8b4   :  { %v1808_v60 = vmul.f32 0.7978846, %v1792_v59 }
 0x8b5   :  { %v2354_v61 = vpop.eup %2353  ;;  %2357 = vtanh.f32 %v1806_v45 }
 0x8b6   :  { %v2356_v62 = vpop.eup %2355  ;;  %v1837_v2 = vadd.f32 1.0, %v2354_v61  ;;  %2359 = vtanh.f32 %v1808_v60 }
 0x8b7   :  { %v1839_v4 = vadd.f32 1.0, %v2356_v62 }
 0x8b8   :  { %v1853_v25 = vmul.f32 %v1837_v2, %v1725_v1 }
 0x8b9   :  { %v1855_v0 = vmul.f32 %v1839_v4, %v1727_v34 }
 0x8ba   :  { %1952 = vmatmul.f32.gmra.mxu0 %v1853_v25 }
 0x8bb   :  { %v2358_v9 = vpop.eup %2357  ;;  %2010 = vmatmul.f32.gmra.mxu1 %v1855_v0 }
 0x8bc   :  { %v2360_v63 = vpop.eup %2359  ;;  %v1838_v11 = vadd.f32 1.0, %v2358_v9 }
 0x8bd   :  { %v1628_v12 = vpop.f32.mrf.mxu0  ;;  %v1840_v22 = vadd.f32 1.0, %v2360_v63 }
 0x8be   :  { %v1629_v48 = vadd.f32 %v1628_v12, %v3352_v33  ;;  %v1686_v14 = vpop.f32.mrf.mxu1  ;;  %v1854_v15 = vmul.f32 %v1838_v11, %v1726_v42 }
 0x8bf   :  { %v1687_v36 = vadd.f32 %v1686_v14, %v3354_v35  ;;  %v1856_v53 = vmul.f32 %v1840_v22, %v1728_v28 }
 0x8c0   :  { %1981 = vmatmul.f32.gmra.mxu3 %v1854_v15  ;;  %v1745_v58 = vmul.f32 0.044715, %v1629_v48  ;;  %v1729_v34 = vmul.f32 0.5, %v1629_v48 }
 0x8c1   :  { %2039 = vmatmul.f32.gmra.mxu2 %v1856_v53  ;;  %v1747_v16 = vmul.f32 0.044715, %v1687_v36  ;;  %v1731_v42 = vmul.f32 0.5, %v1687_v36 }
 0x8c2   :  { %v1761_v54 = vmul.f32 %v1745_v58, %v1629_v48 }
 0x8c3   :  { %v1657_v17 = vpop.f32.mrf.mxu3  ;;  %v1763_v41 = vmul.f32 %v1747_v16, %v1687_v36 }
 0x8c4   :  { %v1658_v19 = vadd.f32 %v1657_v17, %v3358_v31  ;;  %v1715_v21 = vpop.f32.mrf.mxu2  ;;  %v1777_v24 = vmul.f32 %v1761_v54, %v1629_v48 }
 0x8c5   :  { %v1716_v26 = vadd.f32 %v1715_v21, %v3360_v10  ;;  %v1779_v27 = vmul.f32 %v1763_v41, %v1687_v36 }
 0x8c6   :  { %v1631_v7 = vpop.f32.mrf.mxu0  ;;  %v1793_v3 = vadd.f32 %v1777_v24, %v1629_v48  ;;  %v1746_v32 = vmul.f32 0.044715, %v1658_v19  ;;  %v1730_v54 = vmul.f32 0.5, %v1658_v19 }
 0x8c7   :  { %v3373_v18 = vadd.f32 %v1631_v7, %v3352_v33  ;;  %v1689_v39 = vpop.f32.mrf.mxu1  ;;  %v1795_v38 = vadd.f32 %v1779_v27, %v1687_v36  ;;  %v1748_v23 = vmul.f32 0.044715, %v1716_v26  ;;  %v1732_v21 = vmul.f32 0.5, %v1716_v26 }
 0x8c8   :  { %v3376_v40 = vadd.f32 %v1689_v39, %v3354_v35  ;;  %v1809_v13 = vmul.f32 0.7978846, %v1793_v3  ;;  %v1762_v6 = vmul.f32 %v1746_v32, %v1658_v19 }
 0x8c9   :  { %v1811_v44 = vmul.f32 0.7978846, %v1795_v38  ;;  %v1764_v46 = vmul.f32 %v1748_v23, %v1716_v26  ;;  %v1749_v8 = vmul.f32 0.044715, %v3373_v18  ;;  %v1733_v39 = vmul.f32 0.5, %v3373_v18 }
 0x8ca   :  { %2361 = vtanh.f32 %v1809_v13  ;;  %v1778_v47 = vmul.f32 %v1762_v6, %v1658_v19  ;;  %v1751_v37 = vmul.f32 0.044715, %v3376_v40  ;;  %v1735_v23 = vmul.f32 0.5, %v3376_v40 }
 0x8cb   :  { %2363 = vtanh.f32 %v1811_v44  ;;  %v1780_v29 = vmul.f32 %v1764_v46, %v1716_v26  ;;  %v1765_v33 = vmul.f32 %v1749_v8, %v3373_v18 }
 0x8cc   :  { %v1660_v30 = vpop.f32.mrf.mxu3  ;;  %v1794_v50 = vadd.f32 %v1778_v47, %v1658_v19  ;;  %v1767_v52 = vmul.f32 %v1751_v37, %v3376_v40 }
 0x8cd   :  { %v1661_v35 = vadd.f32 %v1660_v30, %v3358_v31  ;;  %v1718_v49 = vpop.f32.mrf.mxu2  ;;  %v1796_v20 = vadd.f32 %v1780_v29, %v1716_v26  ;;  %v1781_v56 = vmul.f32 %v1765_v33, %v3373_v18 }
 0x8ce   :  { %v1719_v59 = vadd.f32 %v1718_v49, %v3360_v10  ;;  %v1810_v45 = vmul.f32 0.7978846, %v1794_v50  ;;  %v1783_v60 = vmul.f32 %v1767_v52, %v3376_v40 }
 0x8cf   :  { %v1812_v61 = vmul.f32 0.7978846, %v1796_v20  ;;  %v1797_v62 = vadd.f32 %v1781_v56, %v3373_v18  ;;  %v1750_v1 = vmul.f32 0.044715, %v1661_v35  ;;  %v1734_v46 = vmul.f32 0.5, %v1661_v35 }
 0x8d0   :  { %v2362_v2 = vpop.eup %2361  ;;  %2365 = vtanh.f32 %v1810_v45  ;;  %v1799_v4 = vadd.f32 %v1783_v60, %v3376_v40  ;;  %v1752_v25 = vmul.f32 0.044715, %v1719_v59  ;;  %v1736_v47 = vmul.f32 0.5, %v1719_v59  ;;  %v2268_v18 = vld [vmem:[%s3444_s11] ss:$0 sm:$0xff] }
 0x8d1   :  { %v2364_v31 = vpop.eup %2363  ;;  %v1841_v0 = vadd.f32 1.0, %v2362_v2  ;;  %2367 = vtanh.f32 %v1812_v61  ;;  %v1813_v9 = vmul.f32 0.7978846, %v1797_v62  ;;  %v1766_v63 = vmul.f32 %v1750_v1, %v1661_v35 }
 0x8d2   :  { %v1843_v10 = vadd.f32 1.0, %v2364_v31  ;;  %v1815_v11 = vmul.f32 0.7978846, %v1799_v4  ;;  %v1768_v12 = vmul.f32 %v1752_v25, %v1719_v59 }
 0x8d3   :  { %v1857_v28 = vmul.f32 %v1841_v0, %v1729_v34  ;;  %2369 = vtanh.f32 %v1813_v9  ;;  %v1782_v22 = vmul.f32 %v1766_v63, %v1661_v35 }
 0x8d4   :  { %v1859_v14 = vmul.f32 %v1843_v10, %v1731_v42  ;;  %2371 = vtanh.f32 %v1815_v11  ;;  %v1784_v15 = vmul.f32 %v1768_v12, %v1719_v59 }
 0x8d5   :  { %1955 = vmatmul.f32.gmra.mxu0 %v1857_v28  ;;  %v1798_v48 = vadd.f32 %v1782_v22, %v1661_v35 }
 0x8d6   :  { %v2366_v53 = vpop.eup %2365  ;;  %2013 = vmatmul.f32.gmra.mxu1 %v1859_v14  ;;  %v1800_v58 = vadd.f32 %v1784_v15, %v1719_v59 }
 0x8d7   :  { %v2368_v16 = vpop.eup %2367  ;;  %v1842_v17 = vadd.f32 1.0, %v2366_v53  ;;  %v1814_v41 = vmul.f32 0.7978846, %v1798_v48 }
 0x8d8   :  { %v1844_v36 = vadd.f32 1.0, %v2368_v16  ;;  %v1816_v24 = vmul.f32 0.7978846, %v1800_v58 }
 0x8d9   :  { %v2370_v27 = vpop.eup %2369  ;;  %v1858_v7 = vmul.f32 %v1842_v17, %v1730_v54  ;;  %2373 = vtanh.f32 %v1814_v41 }
 0x8da   :  { %v2372_v3 = vpop.eup %2371  ;;  %v1860_v32 = vmul.f32 %v1844_v36, %v1732_v21  ;;  %v1845_v38 = vadd.f32 1.0, %v2370_v27  ;;  %2375 = vtanh.f32 %v1816_v24 }
 0x8db   :  { %1984 = vmatmul.f32.gmra.mxu3 %v1858_v7  ;;  %v1847_v13 = vadd.f32 1.0, %v2372_v3 }
 0x8dc   :  { %2042 = vmatmul.f32.gmra.mxu2 %v1860_v32  ;;  %v1861_v19 = vmul.f32 %v1845_v38, %v1733_v39 }
 0x8dd   :  { %v1863_v6 = vmul.f32 %v1847_v13, %v1735_v23 }
 0x8de   :  { %1958 = vmatmul.f32.gmra.mxu0 %v1861_v19 }
 0x8df   :  { %v2374_v26 = vpop.eup %2373  ;;  %2016 = vmatmul.f32.gmra.mxu1 %v1863_v6 }
 0x8e0   :  { %v2376_v44 = vpop.eup %2375  ;;  %v1846_v8 = vadd.f32 1.0, %v2374_v26 }
 0x8e1   :  { %v1848_v37 = vadd.f32 1.0, %v2376_v44 }
 0x8e2   :  { %v1862_v29 = vmul.f32 %v1846_v8, %v1734_v46 }
 0x8e3   :  { %v1864_v33 = vmul.f32 %v1848_v37, %v1736_v47 }
 0x8e4   :  { %1987 = vmatmul.f32.gmra.mxu3 %v1862_v29 }
 0x8e5   :  { %2045 = vmatmul.f32.gmra.mxu2 %v1864_v33  ;;  %v2269_v33 = vld [vmem:[%s3445_s12] ss:$0 sm:$0xff] }
 0x8ea   :  { %v1950_v40 = vpop.f32.mrf.mxu0 }
 0x8eb   :  { %v1951_v30 = vadd.f32 %v2268_v18, %v1950_v40  ;;  %v2008_v49 = vpop.f32.mrf.mxu1  ;;  %v2270_v40 = vld [vmem:[%s3446_s13] ss:$0 sm:$0xff] }
 0x8f6   :  { %v1979_v50 = vpop.f32.mrf.mxu3 }
 0x8f7   :  { %v1980_v52 = vadd.f32 %v1979_v50, %v1951_v30  ;;  %v2037_v56 = vpop.f32.mrf.mxu2 }
 0x8f9   :  { %v2009_v20 = vadd.f32 %v2008_v49, %v1980_v52 }
 0x8fb   :  { %v2038_v45 = vadd.f32 %v2037_v56, %v2009_v20 }
 0x8fd   :  { %v2049_v35 = vadd.f32 %v2038_v45, %v3299_v43 }
 0x8ff   :  { %2055 = vadd.xlane.f32.xlu2 %v2049_v35 }
 0x937   :  { %v1953_v59 = vpop.f32.mrf.mxu0 }
 0x938   :  { %v1954_v60 = vadd.f32 %v2268_v18, %v1953_v59  ;;  %v2011_v1 = vpop.f32.mrf.mxu1 }
 0x943   :  { %v1982_v61 = vpop.f32.mrf.mxu3 }
 0x944   :  { %v1983_v62 = vadd.f32 %v1982_v61, %v1954_v60  ;;  %v2040_v34 = vpop.f32.mrf.mxu2 }
 0x946   :  { %v2012_v2 = vadd.f32 %v2011_v1, %v1983_v62 }
 0x948   :  { %v2041_v4 = vadd.f32 %v2040_v34, %v2012_v2 }
 0x94a   :  { %v2050_v25 = vadd.f32 %v2041_v4, %v3309_v5 }
 0x94c   :  { %2057 = vadd.xlane.f32.xlu1 %v2050_v25 }
 0x952   :  { %v1956_v31 = vpop.f32.mrf.mxu0 }
 0x953   :  { %v1957_v0 = vadd.f32 %v2268_v18, %v1956_v31  ;;  %v2014_v63 = vpop.f32.mrf.mxu1 }
 0x95b   :  { %v1959_v43 = vpop.f32.mrf.mxu0 }
 0x95c   :  { %v1960_v22 = vadd.f32 %v2268_v18, %v1959_v43  ;;  %v2017_v48 = vpop.f32.mrf.mxu1 }
 0x95e   :  { %v1985_v9 = vpop.f32.mrf.mxu3 }
 0x95f   :  { %v1986_v42 = vadd.f32 %v1985_v9, %v1957_v0  ;;  %v2043_v11 = vpop.f32.mrf.mxu2 }
 0x961   :  { %v2015_v10 = vadd.f32 %v2014_v63, %v1986_v42 }
 0x963   :  { %v2044_v12 = vadd.f32 %v2043_v11, %v2015_v10 }
 0x965   :  { %v2051_v28 = vadd.f32 %v2044_v12, %v3329_v55 }
 0x967   :  { %v1988_v14 = vpop.f32.mrf.mxu3  ;;  %2059 = vadd.xlane.f32.xlu0 %v2051_v28 }
 0x968   :  { %v1989_v15 = vadd.f32 %v1988_v14, %v1960_v22  ;;  %v2046_v58 = vpop.f32.mrf.mxu2 }
 0x96a   :  { %v2018_v53 = vadd.f32 %v2017_v48, %v1989_v15 }
 0x96c   :  { %v2047_v5 = vadd.f32 %v2046_v58, %v2018_v53 }
 0x96e   :  { %v2052_v16 = vadd.f32 %v2047_v5, %v3343_v57 }
 0x970   :  { %2061 = vadd.xlane.f32.xlu2 %v2052_v16 }
 0x972   :  { %v2056_v54 = vpop.xlane.xlu2 %2055 }
 0x973   :  { %v2063_v17 = vmul.f32 %v2056_v54, %v3069_v51 }
 0x975   :  { %v2067_v41 = vsub.f32 %v2049_v35, %v2063_v17 }
 0x977   :  { %v2071_v21 = vmul.f32 %v2067_v41, %v2067_v41 }
 0x979   :  { %2075 = vadd.xlane.f32.xlu1 %v2071_v21 }
 0x9bf   :  { %v2058_v36 = vpop.xlane.xlu1 %2057 }
 0x9c0   :  { %v2064_v55 = vmul.f32 %v2058_v36, %v3069_v51 }
 0x9c2   :  { %v2068_v24 = vsub.f32 %v2050_v25, %v2064_v55 }
 0x9c4   :  { %v2072_v27 = vmul.f32 %v2068_v24, %v2068_v24 }
 0x9c6   :  { %2077 = vadd.xlane.f32.xlu0 %v2072_v27 }
 0x9da   :  { %v2060_v7 = vpop.xlane.xlu0 %2059 }
 0x9db   :  { %v2065_v3 = vmul.f32 %v2060_v7, %v3069_v51 }
 0x9dd   :  { %v3400_v32 = vsub.f32 %v2051_v28, %v2065_v3 }
 0x9df   :  { %v2073_v57 = vmul.f32 %v3400_v32, %v3400_v32 }
 0x9e1   :  { %2079 = vadd.xlane.f32.xlu2 %v2073_v57 }
 0x9e3   :  { %v2062_v39 = vpop.xlane.xlu2 %2061 }
 0x9e4   :  { %v2066_v38 = vmul.f32 %v2062_v39, %v3069_v51 }
 0x9e6   :  { %v3405_v23 = vsub.f32 %v2052_v16, %v2066_v38 }
 0x9e8   :  { %v2074_v13 = vmul.f32 %v3405_v23, %v3405_v23 }
 0x9ea   :  { %2081 = vadd.xlane.f32.xlu1 %v2074_v13 }
 0x9ec   :  { %v2076_v19 = vpop.xlane.xlu1 %2075 }
 0x9ed   :  { %v2083_v6 = vmul.f32 %v2076_v19, %v3069_v51 }
 0x9ef   :  { %v2087_v26 = vadd.f32 1e-05, %v2083_v6 }
 0x9f1   :  { %2377 = vrsqrt.f32 %v2087_v26  ;;  %vm2097_vm8 = vweird.f32 %v2087_v26 }
 0x9f7   :  { %v2378_v44 = vpop.eup %2377 }
 0x9f8   :  { %v2092_v46 = vmul.f32 %v2378_v44, %v2087_v26  ;;  %vm2098_vm7 = vweird.f32 %v2378_v44 }
 0x9f9   :  { %vm2099_vm9 = vmor %vm2097_vm8, %vm2098_vm7 }
 0x9fa   :  { %v2093_v8 = vmul.f32 %v2378_v44, %v2092_v46 }
 0x9fc   :  { %v2094_v47 = vmul.f32 0.5, %v2093_v8 }
 0x9fe   :  { %v2095_v37 = vsub.f32 1.5, %v2094_v47 }
 0xa00   :  { %v2096_v29 = vmul.f32 %v2378_v44, %v2095_v37 }
 0xa02   :  { %v2100_v18 = vsel %vm2099_vm9, %v2378_v44, %v2096_v29 }
 0xa03   :  { %v2131_v30 = vmul.f32 %v2100_v18, %v2067_v41 }
 0xa05   :  { %v2138_v50 = vmul.f32 %v2269_v33, %v2131_v30 }
 0xa07   :  { %v2145_v52 = vadd.f32 %v2270_v40, %v2138_v50 }
 0xa09   :  { %2149 = vst [vmem:[%s3447_s14] sm:$0xff] %v2145_v52 }
 0xa39   :  { %v2078_v49 = vpop.xlane.xlu0 %2077 }
 0xa3a   :  { %v2084_v20 = vmul.f32 %v2078_v49, %v3069_v51 }
 0xa3c   :  { %v2088_v56 = vadd.f32 1e-05, %v2084_v20 }
 0xa3e   :  { %2379 = vrsqrt.f32 %v2088_v56  ;;  %vm2107_vm1 = vweird.f32 %v2088_v56 }
 0xa44   :  { %v2380_v45 = vpop.eup %2379 }
 0xa45   :  { %v2102_v35 = vmul.f32 %v2380_v45, %v2088_v56  ;;  %vm2108_vm0 = vweird.f32 %v2380_v45 }
 0xa46   :  { %vm2109_vm10 = vmor %vm2107_vm1, %vm2108_vm0 }
 0xa47   :  { %v2103_v59 = vmul.f32 %v2380_v45, %v2102_v35 }
 0xa49   :  { %v2104_v60 = vmul.f32 0.5, %v2103_v59 }
 0xa4b   :  { %v2105_v61 = vsub.f32 1.5, %v2104_v60 }
 0xa4d   :  { %v2106_v62 = vmul.f32 %v2380_v45, %v2105_v61 }
 0xa4f   :  { %v2110_v1 = vsel %vm2109_vm10, %v2380_v45, %v2106_v62 }
 0xa50   :  { %v2132_v2 = vmul.f32 %v2110_v1, %v2068_v24 }
 0xa52   :  { %v2139_v34 = vmul.f32 %v2269_v33, %v2132_v2 }
 0xa54   :  { %v2146_v4 = vadd.f32 %v2270_v40, %v2139_v34  ;;  %v2080_v25 = vpop.xlane.xlu2 %2079 }
 0xa55   :  { %v2085_v31 = vmul.f32 %v2080_v25, %v3069_v51 }
 0xa56   :  { %2150 = vst [vmem:[%s3447_s14 + $0x8] sm:$0xff] %v2146_v4 }
 0xa57   :  { %v2089_v0 = vadd.f32 1e-05, %v2085_v31 }
 0xa59   :  { %2381 = vrsqrt.f32 %v2089_v0  ;;  %vm2117_vm12 = vweird.f32 %v2089_v0 }
 0xa5d   :  { %v2082_v9 = vpop.xlane.xlu1 %2081 }
 0xa5e   :  { %v2086_v63 = vmul.f32 %v2082_v9, %v3069_v51 }
 0xa5f   :  { %v2382_v42 = vpop.eup %2381 }
 0xa60   :  { %v2112_v10 = vmul.f32 %v2382_v42, %v2089_v0  ;;  %v2090_v11 = vadd.f32 1e-05, %v2086_v63  ;;  %vm2118_vm11 = vweird.f32 %v2382_v42 }
 0xa61   :  { %vm2119_vm13 = vmor %vm2117_vm12, %vm2118_vm11 }
 0xa62   :  { %v2113_v43 = vmul.f32 %v2382_v42, %v2112_v10  ;;  %2383 = vrsqrt.f32 %v2090_v11  ;;  %vm2127_vm15 = vweird.f32 %v2090_v11 }
 0xa64   :  { %v2114_v12 = vmul.f32 0.5, %v2113_v43 }
 0xa66   :  { %v2115_v28 = vsub.f32 1.5, %v2114_v12 }
 0xa68   :  { %v2384_v22 = vpop.eup %2383  ;;  %v2116_v14 = vmul.f32 %v2382_v42, %v2115_v28 }
 0xa69   :  { %v2122_v15 = vmul.f32 %v2384_v22, %v2090_v11  ;;  %vm2128_vm14 = vweird.f32 %v2384_v22 }
 0xa6a   :  { %v2120_v48 = vsel %vm2119_vm13, %v2382_v42, %v2116_v14  ;;  %vm2129_vm2 = vmor %vm2127_vm15, %vm2128_vm14 }
 0xa6b   :  { %v2133_v53 = vmul.f32 %v2120_v48, %v3400_v32  ;;  %v2123_v58 = vmul.f32 %v2384_v22, %v2122_v15 }
 0xa6d   :  { %v2140_v5 = vmul.f32 %v2269_v33, %v2133_v53  ;;  %v2124_v16 = vmul.f32 0.5, %v2123_v58 }
 0xa6f   :  { %v2147_v51 = vadd.f32 %v2270_v40, %v2140_v5  ;;  %v2125_v54 = vsub.f32 1.5, %v2124_v16 }
 0xa71   :  { %2151 = vst [vmem:[%s3447_s14 + $0x10] sm:$0xff] %v2147_v51  ;;  %v2126_v17 = vmul.f32 %v2384_v22, %v2125_v54 }
 0xa73   :  { %v2130_v41 = vsel %vm2129_vm2, %v2384_v22, %v2126_v17 }
 0xa74   :  { %v2134_v21 = vmul.f32 %v2130_v41, %v3405_v23 }
 0xa76   :  { %v2141_v36 = vmul.f32 %v2269_v33, %v2134_v21 }
 0xa78   :  { %v2148_v55 = vadd.f32 %v2270_v40, %v2141_v36 }
 0xa7a   :  { %2152 = vst [vmem:[%s3447_s14 + $0x18] sm:$0xff] %v2148_v55 }
 0xa7b   :  { %2157 = vsyncpa [#allocation3], 1 }
 0xa7c   :  { %2158 = vsyncpa [#allocation5], 1 }

// kernel: roberta_binary_class_forward.6
= control target key start
LH: loop header
LB: loop body
LE: loop exit
PB: predicated region body
PF: predicated region fallthrough
CT: control target
= control target key end

     0   :  { %19 = vsyncpa [#allocation3], 0  ;;  %s3196_s0 = inlined_call_operand.vmem [shape: f32[32,128], index: 0, kind: input, shape index: {}]   ;;  %s3197_s1 = inlined_call_operand.vmem [shape: f32[2,1,16], index: 1, kind: input, shape index: {}]   ;;  %s3198_s2 = inlined_call_operand.hbm [shape: f32[128,384], index: 2, kind: input, shape index: {}]   ;;  %s3199_s3 = inlined_call_operand.vmem [shape: f32[1,384], index: 3, kind: input, shape index: {}]   ;;  %s3200_s4 = inlined_call_operand.hbm [shape: f32[128,128], index: 4, kind: input, shape index: {}]   ;;  %s3201_s5 = inlined_call_operand.vmem [shape: f32[1,128], index: 5, kind: input, shape index: {}]   ;;  %s3202_s6 = inlined_call_operand.vmem [shape: f32[1,128], index: 6, kind: input, shape index: {}]   ;;  %s3203_s7 = inlined_call_operand.vmem [shape: f32[1,128], index: 7, kind: input, shape index: {}]   ;;  %s3204_s8 = inlined_call_operand.hbm [shape: f32[128,512], index: 8, kind: input, shape index: {}]   ;;  %s3205_s9 = inlined_call_operand.vmem [shape: f32[1,512], index: 9, kind: input, shape index: {}]   ;;  %s3206_s10 = inlined_call_operand.hbm [shape: f32[512,128], index: 10, kind: input, shape index: {}]   ;;  %s3207_s11 = inlined_call_operand.vmem [shape: f32[1,128], index: 11, kind: input, shape index: {}]   ;;  %s3208_s12 = inlined_call_operand.vmem [shape: f32[1,128], index: 12, kind: input, shape index: {}]   ;;  %s3209_s13 = inlined_call_operand.vmem [shape: f32[1,128], index: 13, kind: input, shape index: {}]   ;;  %s3210_s14 = inlined_call_operand.vmem [shape: f32[32,128], index: 14, kind: output, shape index: {}]  }
   0x1   :  { %20 = vsyncpa [#allocation5], 0  ;;  %s45_s15 = sshll.u32 %s3200_s4, 4  ;;  %s46_s15 = int_to_ptr.hbm [resolvable:$true] %s45_s15 }
   0x2   :  { %21 = vsyncpa [#allocation8], 0  ;;  %s2528_s16 = smov [#allocation4]   ;;  %s30_s20 = sshll.u32 %s3198_s2, 4  ;;  %s31_s20 = int_to_ptr.hbm [resolvable:$true] %s30_s20 }
   0x3   :  { %s47_s17 = sshll.u32 %s2528_s16, 4  ;;  %s2529_s21 = smov 128   ;;  %s48_s17 = int_to_ptr.vmem [resolvable:$true] %s47_s17 }
   0x4   :  { %s2530_s22 = smov 8   ;;  %s2531_s23 = smov [#allocation2]  }
   0x5   :  { %53 = dma.hbm_to_vmem [thread:$0]  %s46_s15, 2048, %s48_s17, [#allocation5], %s2529_s21, %s2529_s21, %s2530_s22  }
   0x6   :  { %s32_s24 = sshll.u32 %s2531_s23, 4  ;;  %s2532_s25 = smov 384   ;;  %s33_s24 = int_to_ptr.vmem [resolvable:$true] %s32_s24 }
   0x7   :  { %s2533_s26 = smov 24   ;;  %s64_s28 = sshll.u32 %s3204_s8, 4  ;;  %s65_s28 = int_to_ptr.hbm [resolvable:$true] %s64_s28 }
   0x8   :  { %38 = dma.hbm_to_vmem [thread:$0]  %s31_s20, 6144, %s33_s24, [#allocation3], %s2532_s25, %s2532_s25, %s2533_s26  }
   0x9   :  { %s2534_s29 = smov [#allocation6]   ;;  %s79_s18 = sshll.u32 %s3206_s10, 4  ;;  %s80_s18 = int_to_ptr.hbm [resolvable:$true] %s79_s18 }
   0xa   :  { %s66_s30 = sshll.u32 %s2534_s29, 4  ;;  %s2535_s15 = smov 512   ;;  %s67_s30 = int_to_ptr.vmem [resolvable:$true] %s66_s30 }
   0xb   :  { %s2536_s17 = smov 32   ;;  %s2537_s19 = smov [#allocation7]  }
   0xc   :  { %72 = dma.hbm_to_vmem [thread:$0]  %s65_s28, 8192, %s67_s30, [#allocation5], %s2535_s15, %s2535_s15, %s2536_s17  }
   0xd   :  { %s81_s23 = sshll.u32 %s2537_s19, 4  ;;  %s82_s23 = int_to_ptr.vmem [resolvable:$true] %s81_s23 }
   0xe   :  { %87 = dma.hbm_to_vmem [thread:$0]  %s80_s18, 8192, %s82_s23, [#allocation8], %s2529_s21, %s2529_s21, %s2530_s22  }
   0xf   :  { %2522 = dma.done.wait [#allocation3], 6144  }
  0x10   :  { %2523 = vsyncadd [#allocation3], 4294961152 }
  0x11   :  { %2524 = dma.done.wait [#allocation5], 10240  }
  0x12   :  { %2525 = vsyncadd [#allocation5], 4294957056 }
  0x13   :  { %2526 = dma.done.wait [#allocation8], 8192  }
  0x14   :  { %2527 = vsyncadd [#allocation8], 4294959104  ;;  %v160_v0 = vld [vmem:[#allocation2 + $0x170] sm:$0xff]  ;;  %v157_v1 = vld [vmem:[#allocation2 + $0x158] sm:$0xff]  ;;  %s2538_s4 = smov 96   ;;  %vm259_vm0 = vcmask 261120  }
  0x15   :  { %199 = vmatpush.msra.mxu1 %v160_v0  ;;  %v154_v2 = vld [vmem:[#allocation2 + $0x140] sm:$0xff]  ;;  %v159_v3 = vld [vmem:[#allocation2 + $0x168] sm:$0xff]  ;;  %v156_v5 = vld [vmem:[#allocation2 + $0x150] sm:$0xff]  ;;  %vm344_vm1 = vcmask 130048   ;;  %s2539_s30 = smov 64  }
  0x16   :  { %v151_v4 = vld [vmem:[#allocation2 + $0x128] sm:$0xff]  ;;  %170 = vmatpush.msra.mxu0 %v159_v3  ;;  %v153_v6 = vld [vmem:[#allocation2 + $0x138] sm:$0xff]  ;;  %v148_v7 = vld [vmem:[#allocation2 + $0x110] sm:$0xff] }
  0x17   :  { %200 = vmatpush.msra.mxu1 %v157_v1  ;;  %v150_v8 = vld [vmem:[#allocation2 + $0x120] sm:$0xff]  ;;  %v145_v9 = vld [vmem:[#allocation2 + $0xf8] sm:$0xff]  ;;  %v147_v10 = vld [vmem:[#allocation2 + $0x108] sm:$0xff] }
  0x18   :  { %171 = vmatpush.msra.mxu0 %v156_v5  ;;  %v142_v11 = vld [vmem:[#allocation2 + $0xe0] sm:$0xff]  ;;  %v139_v12 = vld [vmem:[#allocation2 + $0xc8] sm:$0xff]  ;;  %v144_v13 = vld [vmem:[#allocation2 + $0xf0] sm:$0xff] }
  0x19   :  { %201 = vmatpush.msra.mxu1 %v154_v2  ;;  %v141_v14 = vld [vmem:[#allocation2 + $0xd8] sm:$0xff]  ;;  %v136_v15 = vld [vmem:[#allocation2 + $0xb0] sm:$0xff]  ;;  %v138_v16 = vld [vmem:[#allocation2 + $0xc0] sm:$0xff] }
  0x1a   :  { %172 = vmatpush.msra.mxu0 %v153_v6  ;;  %v133_v17 = vld [vmem:[#allocation2 + $0x98] sm:$0xff]  ;;  %v135_v18 = vld [vmem:[#allocation2 + $0xa8] sm:$0xff]  ;;  %v130_v19 = vld [vmem:[#allocation2 + $0x80] sm:$0xff] }
  0x1b   :  { %202 = vmatpush.msra.mxu1 %v151_v4  ;;  %v132_v20 = vld [vmem:[#allocation2 + $0x90] sm:$0xff]  ;;  %v127_v21 = vld [vmem:[#allocation2 + $0x68] sm:$0xff]  ;;  %v129_v22 = vld [vmem:[#allocation2 + $0x78] sm:$0xff] }
  0x1c   :  { %173 = vmatpush.msra.mxu0 %v150_v8  ;;  %v124_v23 = vld [vmem:[#allocation2 + $0x50] sm:$0xff]  ;;  %v126_v24 = vld [vmem:[#allocation2 + $0x60] sm:$0xff]  ;;  %v121_v25 = vld [vmem:[#allocation2 + $0x38] sm:$0xff] }
  0x1d   :  { %203 = vmatpush.msra.mxu1 %v148_v7  ;;  %v123_v26 = vld [vmem:[#allocation2 + $0x48] sm:$0xff]  ;;  %v118_v27 = vld [vmem:[#allocation2 + $0x20] sm:$0xff]  ;;  %v120_v28 = vld [vmem:[#allocation2 + $0x30] sm:$0xff] }
  0x1e   :  { %174 = vmatpush.msra.mxu0 %v147_v10  ;;  %v115_v29 = vld [vmem:[#allocation2 + $0x8] sm:$0xff]  ;;  %v2632_v30 = vld [vmem:[%s3196_s0] sm:$0xff]  ;;  %v117_v31 = vld [vmem:[#allocation2 + $0x18] sm:$0xff] }
  0x1f   :  { %204 = vmatpush.msra.mxu1 %v145_v9  ;;  %v114_v32 = vld [vmem:[#allocation2] sm:$0xff]  ;;  %v2639_v33 = vld [vmem:[%s3196_s0 + $0x8] sm:$0xff]  ;;  %v2646_v34 = vld [vmem:[%s3196_s0 + $0x10] sm:$0xff] }
  0x20   :  { %175 = vmatpush.msra.mxu0 %v144_v13  ;;  %v2653_v35 = vld [vmem:[%s3199_s3] sm:$0x7]  ;;  %v113_v46 = vld [vmem:[%s3196_s0 + $0x18] sm:$0xff]  ;;  %v155_v49 = vld [vmem:[#allocation2 + $0x148] sm:$0xff] }
  0x21   :  { %205 = vmatpush.msra.mxu1 %v142_v11  ;;  %v2656_v37 = vperm.slane %v2653_v35, 0  ;;  %v2664_v40 = vperm.slane %v2653_v35, 1  ;;  %v161_v47 = vld [vmem:[#allocation2 + $0x178] sm:$0xff]  ;;  %v158_v48 = vld [vmem:[#allocation2 + $0x160] sm:$0xff]  ;;  %v152_v50 = vld [vmem:[#allocation2 + $0x130] sm:$0xff] }
  0x22   :  { %176 = vmatpush.msra.mxu0 %v141_v14  ;;  %228 = vmatpush.msra.mxu2 %v161_v47  ;;  %v149_v51 = vld [vmem:[#allocation2 + $0x118] sm:$0xff]  ;;  %v146_v52 = vld [vmem:[#allocation2 + $0x100] sm:$0xff]  ;;  %v143_v53 = vld [vmem:[#allocation2 + $0xe8] sm:$0xff] }
  0x23   :  { %206 = vmatpush.msra.mxu1 %v139_v12  ;;  %v140_v54 = vld [vmem:[#allocation2 + $0xd0] sm:$0xff]  ;;  %v137_v55 = vld [vmem:[#allocation2 + $0xb8] sm:$0xff]  ;;  %v134_v56 = vld [vmem:[#allocation2 + $0xa0] sm:$0xff] }
  0x24   :  { %177 = vmatpush.msra.mxu0 %v138_v16  ;;  %229 = vmatpush.msra.mxu2 %v158_v48  ;;  %v131_v58 = vld [vmem:[#allocation2 + $0x88] sm:$0xff]  ;;  %v128_v59 = vld [vmem:[#allocation2 + $0x70] sm:$0xff]  ;;  %v125_v60 = vld [vmem:[#allocation2 + $0x58] sm:$0xff] }
  0x25   :  { %207 = vmatpush.msra.mxu1 %v136_v15  ;;  %v122_v61 = vld [vmem:[#allocation2 + $0x40] sm:$0xff]  ;;  %v119_v0 = vld [vmem:[#allocation2 + $0x28] sm:$0xff]  ;;  %v116_v1 = vld [vmem:[#allocation2 + $0x10] sm:$0xff] }
  0x26   :  { %178 = vmatpush.msra.mxu0 %v135_v18  ;;  %230 = vmatpush.msra.mxu2 %v155_v49  ;;  %v2726_v13 = vld [vmem:[%s3197_s1] ss:$0 sm:$0xff] }
  0x27   :  { %208 = vmatpush.msra.mxu1 %v133_v17 }
  0x28   :  { %179 = vmatpush.msra.mxu0 %v132_v20  ;;  %231 = vmatpush.msra.mxu2 %v152_v50 }
  0x29   :  { %209 = vmatpush.msra.mxu1 %v130_v19 }
  0x2a   :  { %180 = vmatpush.msra.mxu0 %v129_v22  ;;  %232 = vmatpush.msra.mxu2 %v149_v51 }
  0x2b   :  { %210 = vmatpush.msra.mxu1 %v127_v21  ;;  %v2733_v21 = vperm.slane %v2653_v35, 2 }
  0x2c   :  { %181 = vmatpush.msra.mxu0 %v126_v24  ;;  %233 = vmatpush.msra.mxu2 %v146_v52 }
  0x2d   :  { %211 = vmatpush.msra.mxu1 %v124_v23 }
  0x2e   :  { %182 = vmatpush.msra.mxu0 %v123_v26  ;;  %234 = vmatpush.msra.mxu2 %v143_v53 }
  0x2f   :  { %212 = vmatpush.msra.mxu1 %v121_v25 }
  0x30   :  { %183 = vmatpush.msra.mxu0 %v120_v28  ;;  %235 = vmatpush.msra.mxu2 %v140_v54  ;;  %v2775_v54 = vld [vmem:[%s3197_s1 + $0x1] ss:$0 sm:$0xff] }
  0x31   :  { %213 = vmatpush.msra.mxu1 %v118_v27 }
  0x32   :  { %184 = vmatpush.msra.mxu0 %v117_v31  ;;  %236 = vmatpush.msra.mxu2 %v137_v55 }
  0x33   :  { %214 = vmatpush.msra.mxu1 %v115_v29 }
  0x34   :  { %215 = vmatmul.f32.vlgmr.msra.gmra.mxu1 %v2632_v30  ;;  %185 = vmatpush.msra.mxu0 %v114_v32 }
  0x35   :  { %186 = vmatmul.f32.vlgmr.msra.gmra.mxu0 %v2632_v30  ;;  %237 = vmatpush.msra.mxu2 %v134_v56 }
  0x37   :  { %238 = vmatpush.msra.mxu2 %v131_v58 }
  0x39   :  { %239 = vmatpush.msra.mxu2 %v128_v59 }
  0x3b   :  { %240 = vmatpush.msra.mxu2 %v125_v60 }
  0x3c   :  { %218 = vmatmul.f32.gmra.mxu1 %v2639_v33 }
  0x3d   :  { %189 = vmatmul.f32.gmra.mxu0 %v2639_v33  ;;  %241 = vmatpush.msra.mxu2 %v122_v61 }
  0x3f   :  { %242 = vmatpush.msra.mxu2 %v119_v0 }
  0x41   :  { %243 = vmatpush.msra.mxu2 %v116_v1 }
  0x42   :  { %244 = vmatmul.f32.vlgmr.msra.gmra.mxu2 %v2632_v30 }
  0x44   :  { %221 = vmatmul.f32.gmra.mxu1 %v2646_v34 }
  0x45   :  { %192 = vmatmul.f32.gmra.mxu0 %v2646_v34 }
  0x4a   :  { %247 = vmatmul.f32.gmra.mxu2 %v2639_v33 }
  0x4c   :  { %224 = vmatmul.f32.gmra.mxu1 %v113_v46 }
  0x4d   :  { %195 = vmatmul.f32.gmra.mxu0 %v113_v46 }
  0x52   :  { %250 = vmatmul.f32.gmra.mxu2 %v2646_v34 }
  0x5a   :  { %253 = vmatmul.f32.gmra.mxu2 %v113_v46 }
  0xb1   :  { %v216_v36 = vpop.f32.mrf.mxu1 }
  0xb2   :  { %v187_v38 = vpop.f32.mrf.mxu0  ;;  %v2677_v45 = vadd.f32 %v216_v36, %v2664_v40 }
  0xb3   :  { %v2659_v39 = vadd.f32 %v187_v38, %v2656_v37 }
  0xb5   :  { %503 = vrot.lane.b32.xlu1 %v2659_v39, %s2538_s4 }
  0xb9   :  { %v219_v41 = vpop.f32.mrf.mxu1 }
  0xba   :  { %v2667_v42 = vadd.f32 %v219_v41, %v2664_v40  ;;  %v190_v43 = vpop.f32.mrf.mxu0 }
  0xbb   :  { %v2674_v44 = vadd.f32 %v190_v43, %v2656_v37 }
  0xbc   :  { %509 = vrot.lane.b32.xlu0 %v2667_v42, %s2538_s4  ;;  %2191 = vmatpush.xpose.msk.msra.mxu3 %vm259_vm0, %v2667_v42 }
  0xbd   :  { %505 = vrot.lane.b32.xlu1 %v2674_v44, %s2538_s4 }
  0xc0   :  { %2192 = vmatpush.xpose.msk.msra.mxu3 %vm259_vm0, %v2677_v45 }
  0xc1   :  { %v222_v3 = vpop.f32.mrf.mxu1 }
  0xc2   :  { %v193_v5 = vpop.f32.mrf.mxu0  ;;  %v2703_v7 = vadd.f32 %v222_v3, %v2664_v40 }
  0xc3   :  { %2193 = vmatmul.msk.f32.vlgmr.msra.gmra.mxu3 %vm259_vm0, %v2659_v39  ;;  %v2710_v8 = vadd.f32 %v193_v5, %v2656_v37 }
  0xc4   :  { %507 = vrot.lane.b32.xlu0 %v2677_v45, %s2538_s4 }
  0xc5   :  { %v245_v17 = vpop.f32.mrf.mxu2 }
  0xc6   :  { %v246_v24 = vadd.f32 %v245_v17, %v2733_v21 }
  0xc9   :  { %v225_v4 = vpop.f32.mrf.mxu1 }
  0xca   :  { %v2700_v6 = vadd.f32 %v225_v4, %v2664_v40  ;;  %v196_v9 = vpop.f32.mrf.mxu0 }
  0xcb   :  { %2194 = vmatmul.msk.f32.gmra.mxu3 %vm259_vm0, %v2674_v44  ;;  %v2719_v10 = vadd.f32 %v196_v9, %v2656_v37 }
  0xcc   :  { %548 = vrot.lane.b32.xlu0 %v2700_v6, %s2538_s4  ;;  %2195 = vmatpush.xpose.msk.msrb.mxu3 %vm259_vm0, %v2700_v6 }
  0xcd   :  { %v248_v22 = vpop.f32.mrf.mxu2 }
  0xce   :  { %v249_v23 = vadd.f32 %v248_v22, %v2733_v21 }
  0xd0   :  { %2196 = vmatpush.xpose.msk.msrb.mxu3 %vm259_vm0, %v2703_v7  ;;  %v2741_v25 = vpack.i.bf16 %v246_v24, %v249_v23 }
  0xd3   :  { %2197 = vmatmul.msk.f32.vlgmr.msrb.gmra.mxu3 %vm259_vm0, %v2710_v8 }
  0xd4   :  { %542 = vrot.lane.b32.xlu0 %v2710_v8, %s2538_s4  ;;  %461 = vmatpush.msra.mxu3 %v249_v23 }
  0xd6   :  { %462 = vmatpush.msra.mxu3 %v246_v24 }
  0xdb   :  { %2198 = vmatmul.msk.f32.gmra.mxu3 %vm259_vm0, %v2719_v10 }
 0x127   :  { %v504_v62 = vpop.permute.xlu1 %503 }
 0x12e   :  { %v510_v57 = vpop.permute.xlu0 %509 }
 0x12f   :  { %2203 = vmatpush.xpose.msk.msrb.mxu0 %vm259_vm0, %v510_v57  ;;  %v506_v2 = vpop.permute.xlu1 %505 }
 0x136   :  { %v508_v63 = vpop.permute.xlu0 %507 }
 0x137   :  { %2204 = vmatpush.xpose.msk.msrb.mxu0 %vm259_vm0, %v508_v63 }
 0x13a   :  { %2205 = vmatmul.msk.f32.vlgmr.msrb.gmra.mxu0 %vm259_vm0, %v504_v62 }
 0x13e   :  { %v549_v26 = vpop.permute.xlu0 %548 }
 0x13f   :  { %2207 = vmatpush.xpose.msk.msra.mxu0 %vm259_vm0, %v549_v26  ;;  %2255 = vmatpush.xpose.msk.msrb.mxu1 %vm259_vm0, %v549_v26 }
 0x142   :  { %2206 = vmatmul.msk.f32.gmra.mxu0 %vm259_vm0, %v506_v2 }
 0x146   :  { %v289_v27 = vpop.f32.mrf.mxu3  ;;  %v543_v46 = vpop.permute.xlu0 %542 }
 0x147   :  { %v330_v47 = vmul.f32 0.17677669, %v289_v27 }
 0x149   :  { %v340_v50 = vadd.f32 %v2726_v13, %v330_v47 }
 0x14b   :  { %v345_v53 = vsel %vm344_vm1, %v340_v50, -inf }
 0x14e   :  { %v292_v28 = vpop.f32.mrf.mxu3 }
 0x14f   :  { %v331_v29 = vmul.f32 0.17677669, %v292_v28 }
 0x151   :  { %v2754_v30 = vadd.f32 %v2726_v13, %v331_v29 }
 0x153   :  { %v348_v31 = vsel %vm344_vm1, %v2754_v30, -inf }
 0x156   :  { %v324_v51 = vpop.f32.mrf.mxu3 }
 0x157   :  { %v332_v52 = vmul.f32 0.17677669, %v324_v51 }
 0x159   :  { %v2778_v56 = vadd.f32 %v2775_v54, %v332_v52 }
 0x15b   :  { %v351_v59 = vsel %vm344_vm1, %v2778_v56, -inf }
 0x15e   :  { %v327_v61 = vpop.f32.mrf.mxu3 }
 0x15f   :  { %v333_v62 = vmul.f32 0.17677669, %v327_v61 }
 0x161   :  { %v2786_v63 = vadd.f32 %v2775_v54, %v333_v62 }
 0x163   :  { %v354_v0 = vsel %vm344_vm1, %v2786_v63, -inf }
 0x1b7   :  { %v536_v11 = vpop.f32.mrf.mxu0 }
 0x1b8   :  { %v581_v12 = vmul.f32 0.17677669, %v536_v11 }
 0x1ba   :  { %v585_v14 = vadd.f32 %v2726_v13, %v581_v12 }
 0x1bc   :  { %v589_v15 = vsel %vm344_vm1, %v585_v14, -inf }
 0x1bd   :  { %590 = vmax.xlane.f32.xlu2 %v589_v15 }
 0x1bf   :  { %v539_v16 = vpop.f32.mrf.mxu0 }
 0x1c0   :  { %v582_v18 = vmul.f32 0.17677669, %v539_v16 }
 0x1c2   :  { %v586_v19 = vadd.f32 %v2726_v13, %v582_v18 }
 0x1c4   :  { %v592_v20 = vsel %vm344_vm1, %v586_v19, -inf }
 0x1c5   :  { %593 = vmax.xlane.f32.xlu2 %v592_v20 }
 0x1dd   :  { %546 = vrot.lane.b32.xlu2 %v2703_v7, %s2538_s4 }
 0x1e5   :  { %544 = vrot.lane.b32.xlu2 %v2719_v10, %s2538_s4 }
 0x1ed   :  { %2271 = vrot.lane.b32.xlu2 %v2741_v25, %s2538_s4 }
 0x1f5   :  { %851 = vrot.lane.b32.xlu2 %v2667_v42, %s2539_s30 }
 0x1fd   :  { %845 = vrot.lane.b32.xlu2 %v2659_v39, %s2539_s30 }
 0x205   :  { %847 = vrot.lane.b32.xlu2 %v2674_v44, %s2539_s30 }
 0x22e   :  { %349 = vmax.xlane.f32.xlu2 %v348_v31 }
 0x230   :  { %v591_v32 = vpop.xlane.xlu2 %590 }
 0x231   :  { %v601_v33 = vsub.f32 %v585_v14, %v591_v32 }
 0x233   :  { %v605_v34 = vmul.f32 1.442695, %v601_v33 }
 0x235   :  { %2308 = vpow2.f32 %v605_v34 }
 0x238   :  { %v594_v35 = vpop.xlane.xlu2 %593 }
 0x239   :  { %v602_v36 = vsub.f32 %v586_v19, %v594_v35 }
 0x23b   :  { %v2758_v37 = vpop.eup %2308  ;;  %v607_v38 = vmul.f32 1.442695, %v602_v36 }
 0x23c   :  { %v613_v40 = vsel %vm344_vm1, %v2758_v37, 0.0 }
 0x23d   :  { %2310 = vpow2.f32 %v607_v38  ;;  %614 = vadd.xlane.f32.xlu1 %v613_v40 }
 0x240   :  { %v547_v41 = vpop.permute.xlu2 %546 }
 0x241   :  { %2208 = vmatpush.xpose.msk.msra.mxu0 %vm259_vm0, %v547_v41  ;;  %2256 = vmatpush.xpose.msk.msrb.mxu1 %vm259_vm0, %v547_v41 }
 0x243   :  { %v2764_v43 = vpop.eup %2310 }
 0x244   :  { %2209 = vmatmul.msk.f32.vlgmr.msra.gmra.mxu0 %vm259_vm0, %v543_v46  ;;  %v616_v48 = vsel %vm344_vm1, %v2764_v43, 0.0 }
 0x245   :  { %617 = vadd.xlane.f32.xlu0 %v616_v48 }
 0x248   :  { %v545_v49 = vpop.permute.xlu2 %544 }
 0x249   :  { %2210 = vmatmul.msk.f32.vlgmr.msrb.gmra.mxu1 %vm259_vm0, %v545_v49 }
 0x24d   :  { %346 = vmax.xlane.f32.xlu0 %v345_v53 }
 0x250   :  { %v2272_v55 = vpop.permute.xlu2 %2271 }
 0x251   :  { %v2273_v57 = vunpack.i.l.bf16 %v2272_v55  ;;  %v2274_v58 = vunpack.i.h.bf16 %v2272_v55 }
 0x253   :  { %713 = vmatpush.msrb.mxu2 %v2273_v57 }
 0x255   :  { %352 = vmax.xlane.f32.xlu0 %v351_v59  ;;  %714 = vmatpush.msrb.mxu2 %v2274_v58 }
 0x256   :  { %849 = vrot.lane.b32.xlu1 %v2677_v45, %s2539_s30 }
 0x258   :  { %v852_v60 = vpop.permute.xlu2 %851 }
 0x259   :  { %2223 = vmatpush.xpose.msk.msra.mxu2 %vm259_vm0, %v852_v60 }
 0x260   :  { %v846_v1 = vpop.permute.xlu2 %845 }
 0x268   :  { %v848_v4 = vpop.permute.xlu2 %847 }
 0x280   :  { %355 = vmax.xlane.f32.xlu1 %v354_v0 }
 0x2a1   :  { %v350_v19 = vpop.xlane.xlu2 %349 }
 0x2a2   :  { %v358_v32 = vsub.f32 %v2754_v30, %v350_v19 }
 0x2a4   :  { %v363_v46 = vmul.f32 1.442695, %v358_v32 }
 0x2b0   :  { %v615_v2 = vpop.xlane.xlu1 %614 }
 0x2b1   :  { %2312 = vrcp.f32 %v615_v2  ;;  %v636_v12 = vand.u32 2147483648, %v615_v2  ;;  %v634_v15 = vand.u32 2147483647, %v615_v2  ;;  %vm630_vm3 = vweird.f32 %v615_v2 }
 0x2b3   :  { %v637_v18 = vor.u32 1.1754944e-38, %v636_v12  ;;  %vm635_vm5 = vcmp.eq.f32.partialorder %v634_v15, 8.507059e+37  ;;  %v762_v12 = vld [vmem:[#allocation4 + $0x38] sm:$0xff]  ;;  %v760_v15 = vld [vmem:[#allocation4 + $0x28] sm:$0xff] }
 0x2b4   :  { %787 = vmatpush.msrb.mxu0 %v762_v12 }
 0x2b7   :  { %v2313_v3 = vpop.eup %2312 }
 0x2b8   :  { %v626_v5 = vmul.f32 %v2313_v3, %v615_v2  ;;  %v618_v9 = vpop.xlane.xlu0 %617  ;;  %vm631_vm2 = vweird.f32 %v2313_v3 }
 0x2b9   :  { %2314 = vrcp.f32 %v618_v9  ;;  %vm632_vm4 = vmor %vm630_vm3, %vm631_vm2  ;;  %v651_v33 = vand.u32 2147483648, %v618_v9  ;;  %v649_v38 = vand.u32 2147483647, %v618_v9  ;;  %vm645_vm7 = vweird.f32 %v618_v9 }
 0x2ba   :  { %v627_v11 = vsub.f32 1.0, %v626_v5  ;;  %v251_v5 = vpop.f32.mrf.mxu2 }
 0x2bb   :  { %v652_v47 = vor.u32 1.1754944e-38, %v651_v33  ;;  %vm650_vm9 = vcmp.eq.f32.partialorder %v649_v38, 8.507059e+37 }
 0x2bc   :  { %v628_v14 = vmul.f32 %v2313_v3, %v627_v11 }
 0x2be   :  { %v629_v16 = vadd.f32 %v2313_v3, %v628_v14  ;;  %v761_v14 = vld [vmem:[#allocation4 + $0x30] sm:$0xff] }
 0x2bf   :  { %v2315_v17 = vpop.eup %2314  ;;  %788 = vmatpush.msrb.mxu0 %v761_v14 }
 0x2c0   :  { %v641_v20 = vmul.f32 %v2315_v17, %v618_v9  ;;  %v347_v22 = vpop.xlane.xlu0 %346  ;;  %v633_v23 = vsel %vm632_vm4, %v2313_v3, %v629_v16  ;;  %vm646_vm6 = vweird.f32 %v2315_v17  ;;  %v759_v16 = vld [vmem:[#allocation4 + $0x20] sm:$0xff] }
 0x2c1   :  { %v357_v24 = vsub.f32 %v340_v50, %v347_v22  ;;  %v575_v26 = vpop.f32.mrf.mxu0  ;;  %v638_v27 = vsel %vm635_vm5, %v637_v18, %v633_v23  ;;  %vm647_vm8 = vmor %vm645_vm7, %vm646_vm6  ;;  %789 = vmatpush.msrb.mxu0 %v760_v15 }
 0x2c2   :  { %v642_v28 = vsub.f32 1.0, %v641_v20  ;;  %v583_v29 = vmul.f32 0.17677669, %v575_v26  ;;  %v639_v31 = vmul.f32 %v2758_v37, %v638_v27  ;;  %v254_v9 = vpop.f32.mrf.mxu2 }
 0x2c3   :  { %v361_v34 = vmul.f32 1.442695, %v357_v24  ;;  %v255_v11 = vadd.f32 %v254_v9, %v2733_v21  ;;  %790 = vmatpush.msrb.mxu0 %v759_v16 }
 0x2c4   :  { %v643_v35 = vmul.f32 %v2315_v17, %v642_v28  ;;  %2211 = vmatmul.msk.f32.vlgmr.msrb.gmra.mxu2 %vm344_vm1, %v639_v31  ;;  %v587_v36 = vadd.f32 %v2775_v54, %v583_v29 }
 0x2c5   :  { %2316 = vpow2.f32 %v361_v34  ;;  %490 = vmatpush.msrb.mxu3 %v255_v11 }
 0x2c6   :  { %v595_v40 = vsel %vm344_vm1, %v587_v36, -inf  ;;  %v644_v41 = vadd.f32 %v2315_v17, %v643_v35  ;;  %2318 = vpow2.f32 %v363_v46  ;;  %v578_v62 = vpop.f32.mrf.mxu1 }
 0x2c7   :  { %596 = vmax.xlane.f32.xlu2 %v595_v40 }
 0x2c8   :  { %v850_v37 = vpop.permute.xlu1 %849  ;;  %v353_v30 = vpop.xlane.xlu0 %352  ;;  %v648_v48 = vsel %vm647_vm8, %v2315_v17, %v644_v41 }
 0x2c9   :  { %2224 = vmatpush.xpose.msk.msra.mxu2 %vm259_vm0, %v850_v37  ;;  %v653_v49 = vsel %vm650_vm9, %v652_v47, %v648_v48  ;;  %v359_v52 = vsub.f32 %v2778_v56, %v353_v30 }
 0x2ca   :  { %v654_v50 = vmul.f32 %v2764_v43, %v653_v49 }
 0x2cb   :  { %v2797_v51 = vpop.eup %2316  ;;  %v365_v55 = vmul.f32 1.442695, %v359_v52 }
 0x2cc   :  { %2212 = vmatmul.msk.f32.gmra.mxu2 %vm344_vm1, %v654_v50  ;;  %v369_v53 = vsel %vm344_vm1, %v2797_v51, 0.0  ;;  %v2803_v57 = vpop.eup %2318 }
 0x2cd   :  { %370 = vadd.xlane.f32.xlu0 %v369_v53  ;;  %2320 = vpow2.f32 %v365_v55  ;;  %v372_v43 = vsel %vm344_vm1, %v2803_v57, 0.0 }
 0x2d3   :  { %v2808_v58 = vpop.eup %2320 }
 0x2d4   :  { %2225 = vmatmul.msk.f32.vlgmr.msra.gmra.mxu2 %vm259_vm0, %v846_v1  ;;  %v375_v56 = vsel %vm344_vm1, %v2808_v58, 0.0  ;;  %v584_v1 = vmul.f32 0.17677669, %v578_v62 }
 0x2d5   :  { %373 = vadd.xlane.f32.xlu0 %v372_v43 }
 0x2d6   :  { %v2819_v3 = vadd.f32 %v2775_v54, %v584_v1 }
 0x2dc   :  { %2226 = vmatmul.msk.f32.gmra.mxu2 %vm259_vm0, %v848_v4  ;;  %v598_v4 = vsel %vm344_vm1, %v2819_v3, -inf }
 0x2dd   :  { %376 = vadd.xlane.f32.xlu0 %v375_v56 }
 0x2f3   :  { %v356_v59 = vpop.xlane.xlu1 %355 }
 0x2f4   :  { %v360_v60 = vsub.f32 %v2786_v63, %v356_v59  ;;  %v252_v63 = vadd.f32 %v251_v5, %v2733_v21 }
 0x2f6   :  { %v367_v61 = vmul.f32 1.442695, %v360_v60  ;;  %491 = vmatpush.msrb.mxu3 %v252_v63  ;;  %v2830_v34 = vpack.i.bf16 %v252_v63, %v255_v11 }
 0x2f8   :  { %2322 = vpow2.f32 %v367_v61 }
 0x2fe   :  { %v2814_v0 = vpop.eup %2322 }
 0x2ff   :  { %v378_v2 = vsel %vm344_vm1, %v2814_v0, 0.0 }
 0x300   :  { %379 = vadd.xlane.f32.xlu0 %v378_v2 }
 0x308   :  { %599 = vmax.xlane.f32.xlu0 %v598_v4 }
 0x33a   :  { %v597_v17 = vpop.xlane.xlu2 %596 }
 0x33b   :  { %v603_v18 = vsub.f32 %v587_v36, %v597_v17 }
 0x33d   :  { %v609_v19 = vmul.f32 1.442695, %v603_v18 }
 0x33f   :  { %2324 = vpow2.f32 %v609_v19 }
 0x340   :  { %v371_v20 = vpop.xlane.xlu0 %370 }
 0x341   :  { %2326 = vrcp.f32 %v371_v20  ;;  %v392_v29 = vand.u32 2147483648, %v371_v20  ;;  %v390_v32 = vand.u32 2147483647, %v371_v20  ;;  %vm386_vm11 = vweird.f32 %v371_v20 }
 0x343   :  { %v393_v36 = vor.u32 1.1754944e-38, %v392_v29  ;;  %vm391_vm13 = vcmp.eq.f32.partialorder %v390_v32, 8.507059e+37 }
 0x345   :  { %v2825_v22 = vpop.eup %2324 }
 0x346   :  { %v619_v21 = vsel %vm344_vm1, %v2825_v22, 0.0 }
 0x347   :  { %v2327_v23 = vpop.eup %2326  ;;  %v716_v24 = vpop.f32.mrf.mxu2  ;;  %620 = vadd.xlane.f32.xlu0 %v619_v21 }
 0x348   :  { %v382_v26 = vmul.f32 %v2327_v23, %v371_v20  ;;  %2215 = vmatmul.msk.f32.vlgmr.msrb.gmra.mxu0 %vm259_vm0, %v716_v24  ;;  %v374_v27 = vpop.xlane.xlu0 %373  ;;  %vm387_vm10 = vweird.f32 %v2327_v23 }
 0x349   :  { %2328 = vrcp.f32 %v374_v27  ;;  %vm388_vm12 = vmor %vm386_vm11, %vm387_vm10  ;;  %v407_v48 = vand.u32 2147483648, %v374_v27  ;;  %v405_v50 = vand.u32 2147483647, %v374_v27  ;;  %vm401_vm15 = vweird.f32 %v374_v27 }
 0x34a   :  { %v383_v28 = vsub.f32 1.0, %v382_v26 }
 0x34b   :  { %v408_v55 = vor.u32 1.1754944e-38, %v407_v48  ;;  %vm406_vm3 = vcmp.eq.f32.partialorder %v405_v50, 8.507059e+37 }
 0x34c   :  { %v384_v31 = vmul.f32 %v2327_v23, %v383_v28 }
 0x34e   :  { %v385_v33 = vadd.f32 %v2327_v23, %v384_v31 }
 0x34f   :  { %v2329_v35 = vpop.eup %2328  ;;  %v719_v38 = vpop.f32.mrf.mxu2 }
 0x350   :  { %v389_v40 = vsel %vm388_vm12, %v2327_v23, %v385_v33  ;;  %v397_v41 = vmul.f32 %v2329_v35, %v374_v27  ;;  %2216 = vmatmul.msk.f32.gmra.mxu0 %vm259_vm0, %v719_v38  ;;  %v377_v46 = vpop.xlane.xlu0 %376  ;;  %vm402_vm14 = vweird.f32 %v2329_v35  ;;  %v499_v38 = vld [vmem:[#allocation4] sm:$0xff] }
 0x351   :  { %v394_v47 = vsel %vm391_vm13, %v393_v36, %v389_v40  ;;  %2330 = vrcp.f32 %v377_v46  ;;  %vm403_vm2 = vmor %vm401_vm15, %vm402_vm14  ;;  %v420_v2 = vand.u32 2147483647, %v377_v46  ;;  %vm416_vm5 = vweird.f32 %v377_v46  ;;  %v500_v36 = vld [vmem:[#allocation4 + $0x8] sm:$0xff] }
 0x352   :  { %v398_v37 = vsub.f32 1.0, %v397_v41  ;;  %v395_v30 = vmul.f32 %v2797_v51, %v394_v47  ;;  %v422_v51 = vand.u32 2147483648, %v377_v46 }
 0x353   :  { %vm421_vm7 = vcmp.eq.f32.partialorder %v420_v2, 8.507059e+37 }
 0x354   :  { %v399_v49 = vmul.f32 %v2329_v35, %v398_v37  ;;  %2199 = vmatmul.msk.f32.vlgmr.msra.gmra.mxu3 %vm344_vm1, %v395_v30  ;;  %v423_v5 = vor.u32 1.1754944e-38, %v422_v51 }
 0x356   :  { %v400_v52 = vadd.f32 %v2329_v35, %v399_v49 }
 0x357   :  { %v2331_v53 = vpop.eup %2330  ;;  %v878_v43 = vpop.f32.mrf.mxu2 }
 0x358   :  { %v412_v56 = vmul.f32 %v2331_v53, %v377_v46  ;;  %v404_v59 = vsel %vm403_vm2, %v2329_v35, %v400_v52  ;;  %vm417_vm4 = vweird.f32 %v2331_v53  ;;  %v923_v32 = vmul.f32 0.17677669, %v878_v43 }
 0x359   :  { %v409_v60 = vsel %vm406_vm3, %v408_v55, %v404_v59  ;;  %vm418_vm6 = vmor %vm416_vm5, %vm417_vm4 }
 0x35a   :  { %v413_v61 = vsub.f32 1.0, %v412_v56  ;;  %v410_v62 = vmul.f32 %v2803_v57, %v409_v60  ;;  %v2868_v35 = vadd.f32 %v2726_v13, %v923_v32 }
 0x35b   :  { %890 = vrot.lane.b32.xlu0 %v2700_v6, %s2539_s30 }
 0x35c   :  { %v414_v1 = vmul.f32 %v2331_v53, %v413_v61  ;;  %2200 = vmatmul.msk.f32.gmra.mxu3 %vm344_vm1, %v410_v62 }
 0x35e   :  { %v415_v4 = vadd.f32 %v2331_v53, %v414_v1 }
 0x35f   :  { %v881_v9 = vpop.f32.mrf.mxu2 }
 0x360   :  { %v419_v63 = vsel %vm418_vm6, %v2331_v53, %v415_v4  ;;  %v924_v11 = vmul.f32 0.17677669, %v881_v9 }
 0x361   :  { %v424_v12 = vsel %vm421_vm7, %v423_v5, %v419_v63 }
 0x362   :  { %v425_v57 = vmul.f32 %v2808_v58, %v424_v12  ;;  %v2841_v14 = vadd.f32 %v2726_v13, %v924_v11 }
 0x363   :  { %884 = vrot.lane.b32.xlu0 %v2710_v8, %s2539_s30 }
 0x364   :  { %2201 = vmatmul.msk.f32.vlgmr.msrb.gmra.mxu3 %vm344_vm1, %v425_v57  ;;  %v934_v15 = vsel %vm344_vm1, %v2841_v14, -inf }
 0x365   :  { %935 = vmax.xlane.f32.xlu2 %v934_v15 }
 0x36b   :  { %886 = vrot.lane.b32.xlu0 %v2719_v10, %s2539_s30 }
 0x373   :  { %1152 = vrot.lane.b32.xlu0 %v2667_v42, %s2536_s17  ;;  %v380_v16 = vpop.xlane.xlu0 %379 }
 0x374   :  { %2332 = vrcp.f32 %v380_v16  ;;  %v437_v21 = vand.u32 2147483648, %v380_v16  ;;  %v435_v26 = vand.u32 2147483647, %v380_v16  ;;  %vm431_vm9 = vweird.f32 %v380_v16 }
 0x376   :  { %v438_v27 = vor.u32 1.1754944e-38, %v437_v21  ;;  %vm436_vm11 = vcmp.eq.f32.partialorder %v435_v26, 8.507059e+37 }
 0x37a   :  { %v2333_v58 = vpop.eup %2332 }
 0x37b   :  { %v427_v17 = vmul.f32 %v2333_v58, %v380_v16  ;;  %2281 = vrot.lane.b32.xlu0 %v2741_v25, %s2539_s30  ;;  %v600_v18 = vpop.xlane.xlu0 %599  ;;  %vm432_vm8 = vweird.f32 %v2333_v58 }
 0x37c   :  { %v604_v19 = vsub.f32 %v2819_v3, %v600_v18  ;;  %vm433_vm10 = vmor %vm431_vm9, %vm432_vm8 }
 0x37d   :  { %v428_v20 = vsub.f32 1.0, %v427_v17  ;;  %2276 = vrot.lane.b32.xlu2 %v2830_v34, %s2538_s4 }
 0x37e   :  { %v611_v23 = vmul.f32 1.442695, %v604_v19 }
 0x37f   :  { %v429_v24 = vmul.f32 %v2333_v58, %v428_v20 }
 0x380   :  { %2334 = vpow2.f32 %v611_v23 }
 0x381   :  { %v430_v42 = vadd.f32 %v2333_v58, %v429_v24 }
 0x383   :  { %1150 = vrot.lane.b32.xlu0 %v2677_v45, %s2536_s17  ;;  %v434_v28 = vsel %vm433_vm10, %v2333_v58, %v430_v42  ;;  %v931_v45 = vsel %vm344_vm1, %v2868_v35, -inf }
 0x384   :  { %v439_v3 = vsel %vm436_vm11, %v438_v27, %v434_v28 }
 0x385   :  { %v440_v29 = vmul.f32 %v2814_v0, %v439_v3  ;;  %v501_v0 = vld [vmem:[#allocation4 + $0x10] sm:$0xff] }
 0x386   :  { %v2860_v31 = vpop.eup %2334 }
 0x387   :  { %2202 = vmatmul.msk.f32.gmra.mxu3 %vm344_vm1, %v440_v29  ;;  %v622_v33 = vsel %vm344_vm1, %v2860_v31, 0.0 }
 0x388   :  { %623 = vadd.xlane.f32.xlu1 %v622_v33 }
 0x38b   :  { %1146 = vrot.lane.b32.xlu0 %v2659_v39, %s2536_s17  ;;  %v502_v39 = vld [vmem:[#allocation4 + $0x18] sm:$0xff] }
 0x38c   :  { %828 = vmatpush.msra.mxu1 %v502_v39 }
 0x38e   :  { %829 = vmatpush.msra.mxu1 %v501_v0 }
 0x390   :  { %932 = vmax.xlane.f32.xlu1 %v931_v45  ;;  %830 = vmatpush.msra.mxu1 %v500_v36 }
 0x392   :  { %831 = vmatpush.msra.mxu1 %v499_v38 }
 0x393   :  { %1191 = vrot.lane.b32.xlu0 %v2700_v6, %s2536_s17 }
 0x39b   :  { %1185 = vrot.lane.b32.xlu0 %v2710_v8, %s2536_s17 }
 0x3a3   :  { %1187 = vrot.lane.b32.xlu0 %v2719_v10, %s2536_s17 }
 0x3a9   :  { %888 = vrot.lane.b32.xlu1 %v2703_v7, %s2539_s30 }
 0x3ba   :  { %v621_v40 = vpop.xlane.xlu0 %620 }
 0x3bb   :  { %2336 = vrcp.f32 %v621_v40  ;;  %v666_v50 = vand.u32 2147483648, %v621_v40  ;;  %vm660_vm13 = vweird.f32 %v621_v40  ;;  %v664_v53 = vand.u32 2147483647, %v621_v40 }
 0x3bd   :  { %v667_v56 = vor.u32 1.1754944e-38, %v666_v50  ;;  %vm665_vm15 = vcmp.eq.f32.partialorder %v664_v53, 8.507059e+37 }
 0x3c1   :  { %v2337_v6 = vpop.eup %2336 }
 0x3c2   :  { %v656_v46 = vmul.f32 %v2337_v6, %v621_v40  ;;  %vm661_vm12 = vweird.f32 %v2337_v6 }
 0x3c3   :  { %vm662_vm14 = vmor %vm660_vm13, %vm661_vm12 }
 0x3c4   :  { %v657_v8 = vsub.f32 1.0, %v656_v46 }
 0x3c6   :  { %v658_v10 = vmul.f32 %v2337_v6, %v657_v8 }
 0x3c8   :  { %v659_v49 = vadd.f32 %v2337_v6, %v658_v10 }
 0x3ca   :  { %v663_v43 = vsel %vm662_vm14, %v2337_v6, %v659_v49 }
 0x3cb   :  { %v668_v61 = vsel %vm665_vm15, %v667_v56, %v663_v43 }
 0x3cc   :  { %v669_v4 = vmul.f32 %v2825_v22, %v668_v61 }
 0x3cd   :  { %v891_v41 = vpop.permute.xlu0 %890 }
 0x3d5   :  { %v2880_v47 = vpop.permute.xlu0 %884 }
 0x3d7   :  { %v464_v37 = vpop.f32.mrf.mxu3 }
 0x3d8   :  { %v936_v30 = vpop.xlane.xlu2 %935  ;;  %2219 = vmatmul.msk.f32.vlgmr.msra.gmra.mxu1 %vm259_vm0, %v464_v37 }
 0x3d9   :  { %v944_v48 = vsub.f32 %v2841_v14, %v936_v30 }
 0x3db   :  { %v949_v52 = vmul.f32 1.442695, %v944_v48 }
 0x3dd   :  { %2338 = vpow2.f32 %v949_v52  ;;  %v2884_v55 = vpop.permute.xlu0 %886 }
 0x3df   :  { %v467_v59 = vpop.f32.mrf.mxu3 }
 0x3e0   :  { %v2277_v60 = vpop.permute.xlu2 %2276  ;;  %2220 = vmatmul.msk.f32.gmra.mxu1 %vm259_vm0, %v467_v59 }
 0x3e1   :  { %v2278_v62 = vunpack.i.l.bf16 %v2277_v60  ;;  %v2279_v1 = vunpack.i.h.bf16 %v2277_v60 }
 0x3e3   :  { %v2887_v51 = vpop.eup %2338  ;;  %750 = vmatpush.msra.mxu3 %v2278_v62 }
 0x3e4   :  { %v958_v2 = vsel %vm344_vm1, %v2887_v51, 0.0 }
 0x3e5   :  { %751 = vmatpush.msra.mxu3 %v2279_v1  ;;  %959 = vadd.xlane.f32.xlu1 %v958_v2  ;;  %v1153_v5 = vpop.permute.xlu0 %1152 }
 0x3e6   :  { %2213 = vmatmul.msk.f32.vlgmr.msra.gmra.mxu3 %vm344_vm1, %v669_v4  ;;  %2239 = vmatpush.xpose.msk.msrb.mxu1 %vm259_vm0, %v1153_v5 }
 0x3e7   :  { %2227 = vmatpush.xpose.msk.msrb.mxu3 %vm259_vm0, %v891_v41  ;;  %v493_v9 = vpop.f32.mrf.mxu3 }
 0x3e8   :  { %2221 = vmatmul.msk.f32.gmra.mxu1 %vm259_vm0, %v493_v9 }
 0x3ed   :  { %v2282_v63 = vpop.permute.xlu0 %2281 }
 0x3ee   :  { %v2283_v11 = vunpack.i.l.bf16 %v2282_v63  ;;  %v2284_v12 = vunpack.i.h.bf16 %v2282_v63 }
 0x3f0   :  { %1053 = vmatpush.msrb.mxu2 %v2283_v11 }
 0x3f2   :  { %1054 = vmatpush.msrb.mxu2 %v2284_v12 }
 0x3f5   :  { %v1151_v57 = vpop.permute.xlu0 %1150 }
 0x3f6   :  { %2240 = vmatpush.xpose.msk.msrb.mxu1 %vm259_vm0, %v1151_v57 }
 0x3fb   :  { %v624_v22 = vpop.xlane.xlu1 %623 }
 0x3fc   :  { %2340 = vrcp.f32 %v624_v22  ;;  %v681_v20 = vand.u32 2147483648, %v624_v22  ;;  %v679_v24 = vand.u32 2147483647, %v624_v22  ;;  %vm675_vm3 = vweird.f32 %v624_v22 }
 0x3fd   :  { %v1147_v14 = vpop.permute.xlu0 %1146 }
 0x3fe   :  { %1189 = vrot.lane.b32.xlu1 %v2703_v7, %s2536_s17  ;;  %v682_v42 = vor.u32 1.1754944e-38, %v681_v20  ;;  %vm680_vm5 = vcmp.eq.f32.partialorder %v679_v24, 8.507059e+37  ;;  %v1099_v20 = vld [vmem:[#allocation4 + $0x50] sm:$0xff] }
 0x402   :  { %v2341_v15 = vpop.eup %2340 }
 0x403   :  { %v671_v16 = vmul.f32 %v2341_v15, %v624_v22  ;;  %v933_v58 = vpop.xlane.xlu1 %932  ;;  %vm676_vm2 = vweird.f32 %v2341_v15 }
 0x404   :  { %v943_v17 = vsub.f32 %v2868_v35, %v933_v58  ;;  %vm677_vm4 = vmor %vm675_vm3, %vm676_vm2 }
 0x405   :  { %v672_v18 = vsub.f32 1.0, %v671_v16  ;;  %v1192_v19 = vpop.permute.xlu0 %1191 }
 0x406   :  { %v947_v21 = vmul.f32 1.442695, %v943_v17  ;;  %2243 = vmatpush.xpose.msk.msra.mxu2 %vm259_vm0, %v1192_v19  ;;  %v1100_v19 = vld [vmem:[#allocation4 + $0x58] sm:$0xff] }
 0x407   :  { %v673_v23 = vmul.f32 %v2341_v15, %v672_v18  ;;  %1125 = vmatpush.msra.mxu0 %v1100_v19 }
 0x408   :  { %2342 = vpow2.f32 %v947_v21  ;;  %v1098_v21 = vld [vmem:[#allocation4 + $0x48] sm:$0xff] }
 0x409   :  { %v674_v26 = vadd.f32 %v2341_v15, %v673_v23  ;;  %1126 = vmatpush.msra.mxu0 %v1099_v20  ;;  %v1097_v23 = vld [vmem:[#allocation4 + $0x40] sm:$0xff] }
 0x40a   :  { %v496_v27 = vpop.f32.mrf.mxu3 }
 0x40b   :  { %2222 = vmatmul.msk.f32.gmra.mxu1 %vm259_vm0, %v496_v27  ;;  %v678_v7 = vsel %vm677_vm4, %v2341_v15, %v674_v26  ;;  %1127 = vmatpush.msra.mxu0 %v1098_v21 }
 0x40c   :  { %v683_v28 = vsel %vm680_vm5, %v682_v42, %v678_v7 }
 0x40d   :  { %v684_v3 = vmul.f32 %v2860_v31, %v683_v28  ;;  %v1186_v22 = vpop.permute.xlu0 %1185  ;;  %1128 = vmatpush.msra.mxu0 %v1097_v23 }
 0x40e   :  { %v2343_v29 = vpop.eup %2342 }
 0x40f   :  { %2214 = vmatmul.msk.f32.gmra.mxu3 %vm344_vm1, %v684_v3  ;;  %v955_v32 = vsel %vm344_vm1, %v2343_v29, 0.0 }
 0x410   :  { %956 = vadd.xlane.f32.xlu2 %v955_v32 }
 0x413   :  { %2241 = vmatmul.msk.f32.vlgmr.msrb.gmra.mxu1 %vm259_vm0, %v1147_v14 }
 0x415   :  { %v1188_v18 = vpop.permute.xlu0 %1187 }
 0x41b   :  { %v889_v33 = vpop.permute.xlu1 %888 }
 0x41c   :  { %2228 = vmatpush.xpose.msk.msrb.mxu3 %vm259_vm0, %v889_v33 }
 0x41f   :  { %2229 = vmatmul.msk.f32.vlgmr.msrb.gmra.mxu3 %vm259_vm0, %v2880_v47 }
 0x427   :  { %2230 = vmatmul.msk.f32.gmra.mxu3 %vm259_vm0, %v2884_v55 }
 0x428   :  { %1148 = vrot.lane.b32.xlu2 %v2674_v44, %s2536_s17 }
 0x455   :  { %v2914_v45 = vpop.f32.mrf.mxu1 }
 0x458   :  { %v960_v31 = vpop.xlane.xlu1 %959 }
 0x459   :  { %2344 = vrcp.f32 %v960_v31  ;;  %v993_v61 = vand.u32 2147483648, %v960_v31  ;;  %vm987_vm11 = vweird.f32 %v960_v31  ;;  %v991_v4 = vand.u32 2147483647, %v960_v31 }
 0x45b   :  { %v994_v9 = vor.u32 1.1754944e-38, %v993_v61  ;;  %vm992_vm13 = vcmp.eq.f32.partialorder %v991_v4, 8.507059e+37 }
 0x45d   :  { %v2917_v0 = vpop.f32.mrf.mxu1 }
 0x45f   :  { %v2345_v40 = vpop.eup %2344 }
 0x460   :  { %v983_v6 = vmul.f32 %v2345_v40, %v960_v31  ;;  %vm988_vm9 = vweird.f32 %v2345_v40 }
 0x461   :  { %vm989_vm12 = vmor %vm987_vm11, %vm988_vm9 }
 0x462   :  { %v984_v46 = vsub.f32 1.0, %v983_v6 }
 0x464   :  { %v985_v30 = vmul.f32 %v2345_v40, %v984_v46 }
 0x465   :  { %v2919_v36 = vpop.f32.mrf.mxu1 }
 0x466   :  { %v986_v60 = vadd.f32 %v2345_v40, %v985_v30 }
 0x468   :  { %v990_v5 = vsel %vm989_vm12, %v2345_v40, %v986_v60 }
 0x469   :  { %v753_v35 = vpop.f32.mrf.mxu3  ;;  %v995_v63 = vsel %vm992_vm13, %v994_v9, %v990_v5 }
 0x46a   :  { %2217 = vmatmul.msk.f32.gmra.mxu0 %vm259_vm0, %v753_v35  ;;  %v996_v11 = vmul.f32 %v2887_v51, %v995_v63 }
 0x470   :  { %v1190_v39 = vpop.permute.xlu1 %1189 }
 0x471   :  { %2244 = vmatpush.xpose.msk.msra.mxu2 %vm259_vm0, %v1190_v39 }
 0x483   :  { %v957_v38 = vpop.xlane.xlu2 %956 }
 0x484   :  { %2346 = vrcp.f32 %v957_v38  ;;  %v978_v37 = vand.u32 2147483648, %v957_v38  ;;  %v976_v49 = vand.u32 2147483647, %v957_v38  ;;  %vm972_vm7 = vweird.f32 %v957_v38 }
 0x486   :  { %v979_v55 = vor.u32 1.1754944e-38, %v978_v37  ;;  %vm977_vm10 = vcmp.eq.f32.partialorder %v976_v49, 8.507059e+37 }
 0x488   :  { %v2921_v41 = vpop.f32.mrf.mxu1 }
 0x48a   :  { %v2347_v44 = vpop.eup %2346 }
 0x48b   :  { %v968_v8 = vmul.f32 %v2347_v44, %v957_v38  ;;  %v1149_v47 = vpop.permute.xlu2 %1148  ;;  %vm973_vm6 = vweird.f32 %v2347_v44 }
 0x48c   :  { %2242 = vmatmul.msk.f32.gmra.mxu1 %vm259_vm0, %v1149_v47  ;;  %vm974_vm8 = vmor %vm972_vm7, %vm973_vm6 }
 0x48d   :  { %v969_v10 = vsub.f32 1.0, %v968_v8 }
 0x48f   :  { %v970_v48 = vmul.f32 %v2347_v44, %v969_v10 }
 0x490   :  { %v1179_v50 = vpop.f32.mrf.mxu1 }
 0x491   :  { %v971_v52 = vadd.f32 %v2347_v44, %v970_v48  ;;  %v1224_v53 = vmul.f32 0.17677669, %v1179_v50 }
 0x492   :  { %v756_v43 = vpop.f32.mrf.mxu3 }
 0x493   :  { %v975_v56 = vsel %vm974_vm8, %v2347_v44, %v971_v52  ;;  %2218 = vmatmul.msk.f32.gmra.mxu0 %vm259_vm0, %v756_v43  ;;  %v1228_v59 = vadd.f32 %v2726_v13, %v1224_v53 }
 0x494   :  { %v980_v62 = vsel %vm977_vm10, %v979_v55, %v975_v56 }
 0x495   :  { %v1232_v1 = vsel %vm344_vm1, %v1228_v59, -inf  ;;  %v981_v2 = vmul.f32 %v2343_v29, %v980_v62 }
 0x496   :  { %1233 = vmax.xlane.f32.xlu1 %v1232_v1 }
 0x497   :  { %2231 = vmatmul.msk.f32.vlgmr.msrb.gmra.mxu2 %vm344_vm1, %v981_v2 }
 0x49f   :  { %2232 = vmatmul.msk.f32.gmra.mxu2 %vm344_vm1, %v996_v11 }
 0x4a2   :  { %v917_v12 = vpop.f32.mrf.mxu3 }
 0x4a3   :  { %v925_v57 = vmul.f32 0.17677669, %v917_v12 }
 0x4a5   :  { %v929_v14 = vadd.f32 %v2775_v54, %v925_v57 }
 0x4a7   :  { %2245 = vmatmul.msk.f32.vlgmr.msra.gmra.mxu2 %vm259_vm0, %v1186_v22  ;;  %v937_v15 = vsel %vm344_vm1, %v929_v14, -inf }
 0x4a8   :  { %938 = vmax.xlane.f32.xlu2 %v937_v15 }
 0x4aa   :  { %v920_v16 = vpop.f32.mrf.mxu3 }
 0x4ab   :  { %v926_v58 = vmul.f32 0.17677669, %v920_v16 }
 0x4ad   :  { %v930_v17 = vadd.f32 %v2775_v54, %v926_v58 }
 0x4af   :  { %2246 = vmatmul.msk.f32.gmra.mxu2 %vm259_vm0, %v1188_v18  ;;  %v940_v51 = vsel %vm344_vm1, %v930_v17, -inf }
 0x4b0   :  { %941 = vmax.xlane.f32.xlu0 %v940_v51 }
 0x509   :  { %v1234_v24 = vpop.xlane.xlu1 %1233  ;;  %v1182_v26 = vpop.f32.mrf.mxu1 }
 0x50a   :  { %v1244_v42 = vsub.f32 %v1228_v59, %v1234_v24  ;;  %v1225_v27 = vmul.f32 0.17677669, %v1182_v26 }
 0x50c   :  { %v1248_v7 = vmul.f32 1.442695, %v1244_v42  ;;  %v1229_v28 = vadd.f32 %v2726_v13, %v1225_v27 }
 0x50e   :  { %2348 = vpow2.f32 %v1248_v7  ;;  %v1235_v3 = vsel %vm344_vm1, %v1229_v28, -inf }
 0x50f   :  { %1236 = vmax.xlane.f32.xlu2 %v1235_v3 }
 0x514   :  { %v2938_v29 = vpop.eup %2348 }
 0x515   :  { %v1256_v32 = vsel %vm344_vm1, %v2938_v29, 0.0 }
 0x516   :  { %1257 = vadd.xlane.f32.xlu1 %v1256_v32 }
 0x51a   :  { %v1056_v33 = vpop.f32.mrf.mxu2 }
 0x51b   :  { %v939_v31 = vpop.xlane.xlu2 %938  ;;  %2235 = vmatmul.msk.f32.vlgmr.msra.gmra.mxu0 %vm259_vm0, %v1056_v33 }
 0x51c   :  { %v945_v35 = vsub.f32 %v929_v14, %v939_v31 }
 0x51e   :  { %v951_v39 = vmul.f32 1.442695, %v945_v35 }
 0x520   :  { %2350 = vpow2.f32 %v951_v39 }
 0x522   :  { %v1059_v38 = vpop.f32.mrf.mxu2 }
 0x523   :  { %v942_v40 = vpop.xlane.xlu0 %941  ;;  %2236 = vmatmul.msk.f32.gmra.mxu0 %vm259_vm0, %v1059_v38 }
 0x524   :  { %v946_v6 = vsub.f32 %v930_v17, %v942_v40 }
 0x526   :  { %v2944_v13 = vpop.eup %2350  ;;  %v953_v46 = vmul.f32 1.442695, %v946_v6 }
 0x527   :  { %v961_v44 = vsel %vm344_vm1, %v2944_v13, 0.0 }
 0x528   :  { %962 = vadd.xlane.f32.xlu2 %v961_v44  ;;  %2352 = vpow2.f32 %v953_v46 }
 0x52a   :  { %v1218_v8 = vpop.f32.mrf.mxu2 }
 0x52b   :  { %v1226_v47 = vmul.f32 0.17677669, %v1218_v8 }
 0x52d   :  { %v1230_v10 = vadd.f32 %v2775_v54, %v1226_v47 }
 0x52e   :  { %v2950_v49 = vpop.eup %2352 }
 0x52f   :  { %v1238_v37 = vsel %vm344_vm1, %v1230_v10, -inf  ;;  %v964_v52 = vsel %vm344_vm1, %v2950_v49, 0.0 }
 0x530   :  { %1239 = vmax.xlane.f32.xlu0 %v1238_v37 }
 0x532   :  { %v1221_v30 = vpop.f32.mrf.mxu2 }
 0x533   :  { %v1227_v48 = vmul.f32 0.17677669, %v1221_v30 }
 0x535   :  { %v1231_v50 = vadd.f32 %v2775_v54, %v1227_v48 }
 0x537   :  { %v1241_v53 = vsel %vm344_vm1, %v1231_v50, -inf }
 0x538   :  { %965 = vadd.xlane.f32.xlu0 %v964_v52  ;;  %1242 = vmax.xlane.f32.xlu1 %v1241_v53 }
 0x540   :  { %2286 = vrot.lane.b32.xlu2 %v2830_v34, %s2539_s30 }
 0x548   :  { %2296 = vrot.lane.b32.xlu2 %v2830_v34, %s2536_s17 }
 0x551   :  { %2291 = vrot.lane.b32.xlu1 %v2741_v25, %s2536_s17 }
 0x582   :  { %v1237_v55 = vpop.xlane.xlu2 %1236 }
 0x583   :  { %v1245_v43 = vsub.f32 %v1229_v28, %v1237_v55 }
 0x585   :  { %v1250_v56 = vmul.f32 1.442695, %v1245_v43 }
 0x587   :  { %2354 = vpow2.f32 %v1250_v56 }
 0x589   :  { %v2966_v34 = vpop.xlane.xlu1 %1257 }
 0x58a   :  { %vm1273_vm9 = vweird.f32 %v2966_v34  ;;  %v1277_v37 = vand.u32 2147483647, %v2966_v34 }
 0x58c   :  { %vm1278_vm11 = vcmp.eq.f32.partialorder %v1277_v37, 8.507059e+37 }
 0x58d   :  { %v2962_v54 = vpop.eup %2354 }
 0x58e   :  { %v1259_v59 = vsel %vm344_vm1, %v2962_v54, 0.0 }
 0x58f   :  { %1260 = vadd.xlane.f32.xlu0 %v1259_v59 }
 0x59b   :  { %v963_v60 = vpop.xlane.xlu2 %962 }
 0x59c   :  { %2356 = vrcp.f32 %v963_v60  ;;  %v1008_v9 = vand.u32 2147483648, %v963_v60  ;;  %v1006_v57 = vand.u32 2147483647, %v963_v60  ;;  %vm1002_vm15 = vweird.f32 %v963_v60 }
 0x59d   :  { %2358 = vrcp.f32 %v2966_v34 }
 0x59e   :  { %v1009_v14 = vor.u32 1.1754944e-38, %v1008_v9  ;;  %vm1007_vm3 = vcmp.eq.f32.partialorder %v1006_v57, 8.507059e+37  ;;  %v1401_v9 = vld [vmem:[#allocation4 + $0x78] sm:$0xff] }
 0x59f   :  { %1426 = vmatpush.msrb.mxu2 %v1401_v9 }
 0x5a2   :  { %v2357_v61 = vpop.eup %2356 }
 0x5a3   :  { %v998_v62 = vmul.f32 %v2357_v61, %v963_v60  ;;  %v2287_v1 = vpop.permute.xlu2 %2286  ;;  %v1240_v2 = vpop.xlane.xlu0 %1239  ;;  %vm1003_vm14 = vweird.f32 %v2357_v61 }
 0x5a4   :  { %v2288_v4 = vunpack.i.l.bf16 %v2287_v1  ;;  %v1246_v25 = vsub.f32 %v1230_v10, %v1240_v2  ;;  %v2289_v63 = vunpack.i.h.bf16 %v2287_v1  ;;  %vm1004_vm2 = vmor %vm1002_vm15, %vm1003_vm14  ;;  %v2359_v19 = vpop.eup %2358  ;;  %v1279_v10 = vand.u32 2147483648, %v2966_v34 }
 0x5a5   :  { %v999_v5 = vsub.f32 1.0, %v998_v62  ;;  %v1269_v27 = vmul.f32 %v2359_v19, %v2966_v34  ;;  %vm1274_vm8 = vweird.f32 %v2359_v19 }
 0x5a6   :  { %v1252_v11 = vmul.f32 1.442695, %v1246_v25  ;;  %1088 = vmatpush.msra.mxu3 %v2288_v4  ;;  %vm1275_vm10 = vmor %vm1273_vm9, %vm1274_vm8  ;;  %v1280_v48 = vor.u32 1.1754944e-38, %v1279_v10 }
 0x5a7   :  { %v1000_v12 = vmul.f32 %v2357_v61, %v999_v5  ;;  %v1270_v3 = vsub.f32 1.0, %v1269_v27 }
 0x5a8   :  { %2360 = vpow2.f32 %v1252_v11  ;;  %1089 = vmatpush.msra.mxu3 %v2289_v63  ;;  %v1400_v63 = vld [vmem:[#allocation4 + $0x70] sm:$0xff]  ;;  %v1399_v11 = vld [vmem:[#allocation4 + $0x68] sm:$0xff] }
 0x5a9   :  { %v1001_v22 = vadd.f32 %v2357_v61, %v1000_v12  ;;  %v1271_v40 = vmul.f32 %v2359_v19, %v1270_v3  ;;  %1427 = vmatpush.msrb.mxu2 %v1400_v63 }
 0x5ab   :  { %v1005_v15 = vsel %vm1004_vm2, %v2357_v61, %v1001_v22  ;;  %v2297_v16 = vpop.permute.xlu2 %2296  ;;  %v966_v58 = vpop.xlane.xlu0 %965  ;;  %v1272_v8 = vadd.f32 %v2359_v19, %v1271_v40  ;;  %1428 = vmatpush.msrb.mxu2 %v1399_v11 }
 0x5ac   :  { %v1010_v17 = vsel %vm1007_vm3, %v1009_v14, %v1005_v15  ;;  %v2298_v18 = vunpack.i.l.bf16 %v2297_v16  ;;  %2362 = vrcp.f32 %v966_v58  ;;  %v1243_v51 = vpop.xlane.xlu1 %1242  ;;  %v2299_v24 = vunpack.i.h.bf16 %v2297_v16  ;;  %v1398_v14 = vld [vmem:[#allocation4 + $0x60] sm:$0xff] }
 0x5ad   :  { %v1247_v20 = vsub.f32 %v1231_v50, %v1243_v51  ;;  %v1011_v21 = vmul.f32 %v2944_v13, %v1010_v17  ;;  %v1023_v33 = vand.u32 2147483648, %v966_v58  ;;  %v1021_v39 = vand.u32 2147483647, %v966_v58  ;;  %1429 = vmatpush.msrb.mxu2 %v1398_v14 }
 0x5ae   :  { %v2970_v23 = vpop.eup %2360  ;;  %1389 = vmatpush.msra.mxu1 %v2298_v18  ;;  %vm1017_vm5 = vweird.f32 %v966_v58  ;;  %v1276_v30 = vsel %vm1275_vm10, %v2359_v19, %v1272_v8 }
 0x5af   :  { %v1254_v26 = vmul.f32 1.442695, %v1247_v20  ;;  %2233 = vmatmul.msk.f32.vlgmr.msra.gmra.mxu3 %vm344_vm1, %v1011_v21  ;;  %v1262_v42 = vsel %vm344_vm1, %v2970_v23, 0.0  ;;  %v1024_v6 = vor.u32 1.1754944e-38, %v1023_v33  ;;  %vm1022_vm7 = vcmp.eq.f32.partialorder %v1021_v39, 8.507059e+37 }
 0x5b0   :  { %1390 = vmatpush.msra.mxu1 %v2299_v24  ;;  %1263 = vadd.xlane.f32.xlu0 %v1262_v42  ;;  %v1281_v52 = vsel %vm1278_vm11, %v1280_v48, %v1276_v30  ;;  %v2302_v30 = vld [vmem:[%s3201_s5] ss:$0 sm:$0xff] }
 0x5b1   :  { %2364 = vpow2.f32 %v1254_v26  ;;  %v1282_v43 = vmul.f32 %v2938_v29, %v1281_v52 }
 0x5b2   :  { %v2363_v7 = vpop.eup %2362 }
 0x5b3   :  { %v1013_v28 = vmul.f32 %v2363_v7, %v966_v58  ;;  %vm1018_vm4 = vweird.f32 %v2363_v7 }
 0x5b4   :  { %vm1019_vm6 = vmor %vm1017_vm5, %vm1018_vm4 }
 0x5b5   :  { %v1014_v32 = vsub.f32 1.0, %v1013_v28 }
 0x5b7   :  { %v2976_v31 = vpop.eup %2364  ;;  %v1015_v35 = vmul.f32 %v2363_v7, %v1014_v32 }
 0x5b8   :  { %v1265_v38 = vsel %vm344_vm1, %v2976_v31, 0.0 }
 0x5b9   :  { %1266 = vadd.xlane.f32.xlu0 %v1265_v38  ;;  %v1016_v13 = vadd.f32 %v2363_v7, %v1015_v35 }
 0x5bb   :  { %v1020_v44 = vsel %vm1019_vm6, %v2363_v7, %v1016_v13  ;;  %v792_v13 = vpop.f32.mrf.mxu0 }
 0x5bc   :  { %v1025_v46 = vsel %vm1022_vm7, %v1024_v6, %v1020_v44  ;;  %v834_v10 = vadd.f32 %v2914_v45, %v792_v13  ;;  %v1616_v13 = vld [vmem:[#allocation6 + $0x1b0] sm:$0xff] }
 0x5bd   :  { %v1026_v47 = vmul.f32 %v2950_v49, %v1025_v46 }
 0x5bf   :  { %2234 = vmatmul.msk.f32.gmra.mxu3 %vm344_vm1, %v1026_v47 }
 0x5c3   :  { %v2292_v50 = vpop.permute.xlu1 %2291  ;;  %v795_v6 = vpop.f32.mrf.mxu0 }
 0x5c4   :  { %v2293_v53 = vunpack.i.l.bf16 %v2292_v50  ;;  %v2294_v55 = vunpack.i.h.bf16 %v2292_v50 }
 0x5c6   :  { %1354 = vmatpush.msrb.mxu3 %v2293_v53  ;;  %v2422_v53 = vld [vmem:[%s3196_s0] sm:$0xff] }
 0x5c8   :  { %1355 = vmatpush.msrb.mxu3 %v2294_v55 }
 0x5c9   :  { %2247 = vmatmul.msk.f32.vlgmr.msrb.gmra.mxu3 %vm344_vm1, %v1282_v43 }
 0x5cb   :  { %v798_v46 = vpop.f32.mrf.mxu0 }
 0x602   :  { %v1261_v49 = vpop.xlane.xlu0 %1260 }
 0x603   :  { %2366 = vrcp.f32 %v1261_v49  ;;  %v1294_v61 = vand.u32 2147483648, %v1261_v49  ;;  %v1292_v1 = vand.u32 2147483647, %v1261_v49  ;;  %vm1288_vm13 = vweird.f32 %v1261_v49 }
 0x605   :  { %v1295_v34 = vor.u32 1.1754944e-38, %v1294_v61  ;;  %vm1293_vm15 = vcmp.eq.f32.partialorder %v1292_v1, 8.507059e+37  ;;  %v2423_v61 = vld [vmem:[%s3196_s0 + $0x8] sm:$0xff]  ;;  %v2540_v1 = vmov 128.0  }
 0x609   :  { %v2367_v56 = vpop.eup %2366 }
 0x60a   :  { %v1284_v59 = vmul.f32 %v2367_v56, %v1261_v49  ;;  %vm1289_vm12 = vweird.f32 %v2367_v56  ;;  %v837_v49 = vadd.f32 %v2917_v0, %v795_v6  ;;  %v1617_v6 = vld [vmem:[#allocation6 + $0x1b8] sm:$0xff] }
 0x60b   :  { %vm1290_vm14 = vmor %vm1288_vm13, %vm1289_vm12 }
 0x60c   :  { %v1285_v60 = vsub.f32 1.0, %v1284_v59 }
 0x60e   :  { %v1286_v62 = vmul.f32 %v2367_v56, %v1285_v60 }
 0x610   :  { %v1287_v2 = vadd.f32 %v2367_v56, %v1286_v62 }
 0x612   :  { %v1291_v4 = vsel %vm1290_vm14, %v2367_v56, %v1287_v2 }
 0x613   :  { %v1296_v25 = vsel %vm1293_vm15, %v1295_v34, %v1291_v4  ;;  %v840_v4 = vadd.f32 %v2919_v36, %v798_v46  ;;  %v1611_v46 = vld [vmem:[#allocation6 + $0x188] sm:$0xff] }
 0x614   :  { %v1297_v29 = vmul.f32 %v2962_v54, %v1296_v25 }
 0x616   :  { %2248 = vmatmul.msk.f32.gmra.mxu3 %vm344_vm1, %v1297_v29 }
 0x623   :  { %v1264_v5 = vpop.xlane.xlu0 %1263 }
 0x624   :  { %2368 = vrcp.f32 %v1264_v5  ;;  %v1309_v16 = vand.u32 2147483648, %v1264_v5  ;;  %v1307_v54 = vand.u32 2147483647, %v1264_v5  ;;  %vm1303_vm3 = vweird.f32 %v1264_v5 }
 0x626   :  { %v1310_v18 = vor.u32 1.1754944e-38, %v1309_v16  ;;  %vm1308_vm5 = vcmp.eq.f32.partialorder %v1307_v54, 8.507059e+37 }
 0x62a   :  { %v2369_v12 = vpop.eup %2368 }
 0x62b   :  { %v1299_v57 = vmul.f32 %v2369_v12, %v1264_v5  ;;  %vm1304_vm2 = vweird.f32 %v2369_v12 }
 0x62c   :  { %v1267_v22 = vpop.xlane.xlu0 %1266  ;;  %vm1305_vm4 = vmor %vm1303_vm3, %vm1304_vm2 }
 0x62d   :  { %v1300_v15 = vsub.f32 1.0, %v1299_v57  ;;  %2370 = vrcp.f32 %v1267_v22  ;;  %v1324_v27 = vand.u32 2147483648, %v1267_v22  ;;  %v1322_v28 = vand.u32 2147483647, %v1267_v22 }
 0x62e   :  { %vm1318_vm7 = vweird.f32 %v1267_v22  ;;  %2372 = vrcp.f32 %v2540_v1 }
 0x62f   :  { %v1301_v58 = vmul.f32 %v2369_v12, %v1300_v15  ;;  %v1325_v32 = vor.u32 1.1754944e-38, %v1324_v27  ;;  %vm1323_vm9 = vcmp.eq.f32.partialorder %v1322_v28, 8.507059e+37  ;;  %v1623_v28 = vld [vmem:[#allocation6 + $0x1e8] sm:$0xff] }
 0x630   :  { %1665 = vmatpush.msra.mxu3 %v1623_v28 }
 0x631   :  { %v1302_v17 = vadd.f32 %v2369_v12, %v1301_v58 }
 0x632   :  { %v1091_v51 = vpop.f32.mrf.mxu3 }
 0x633   :  { %v2371_v19 = vpop.eup %2370  ;;  %v1306_v20 = vsel %vm1305_vm4, %v2369_v12, %v1302_v17  ;;  %2237 = vmatmul.msk.f32.gmra.mxu0 %vm259_vm0, %v1091_v51  ;;  %v2424_v12 = vld [vmem:[%s3196_s0 + $0x10] sm:$0xff]  ;;  %v2425_v17 = vld [vmem:[%s3196_s0 + $0x18] sm:$0xff] }
 0x634   :  { %v1311_v21 = vsel %vm1308_vm5, %v1310_v18, %v1306_v20  ;;  %v1314_v24 = vmul.f32 %v2371_v19, %v1267_v22  ;;  %vm1319_vm6 = vweird.f32 %v2371_v19  ;;  %v2373_v34 = vpop.eup %2372 }
 0x635   :  { %v1312_v26 = vmul.f32 %v2970_v23, %v1311_v21  ;;  %vm1320_vm8 = vmor %vm1318_vm7, %vm1319_vm6  ;;  %v1470_v5 = vmul.f32 128.0, %v2373_v34 }
 0x636   :  { %v1315_v42 = vsub.f32 1.0, %v1314_v24 }
 0x637   :  { %2249 = vmatmul.msk.f32.vlgmr.msra.gmra.mxu1 %vm344_vm1, %v1312_v26  ;;  %v1471_v63 = vsub.f32 1.0, %v1470_v5  ;;  %v1586_v5 = vld [vmem:[#allocation6 + $0xc0] sm:$0xff] }
 0x638   :  { %v1316_v7 = vmul.f32 %v2371_v19, %v1315_v42 }
 0x639   :  { %v1472_v15 = vmul.f32 %v2373_v34, %v1471_v63  ;;  %v1589_v63 = vld [vmem:[#allocation6 + $0xd8] sm:$0xff] }
 0x63a   :  { %v1317_v3 = vadd.f32 %v2371_v19, %v1316_v7  ;;  %v1622_v7 = vld [vmem:[#allocation6 + $0x1e0] sm:$0xff] }
 0x63b   :  { %v1473_v54 = vadd.f32 %v2373_v34, %v1472_v15  ;;  %1636 = vmatpush.msrb.mxu0 %v1622_v7  ;;  %v1578_v15 = vld [vmem:[#allocation6 + $0x80] sm:$0xff]  ;;  %v1572_v7 = vld [vmem:[#allocation6 + $0x50] sm:$0xff] }
 0x63c   :  { %v1321_v33 = vsel %vm1320_vm8, %v2371_v19, %v1317_v3  ;;  %v1624_v3 = vld [vmem:[#allocation6 + $0x1f0] sm:$0xff] }
 0x63d   :  { %v1326_v35 = vsel %vm1323_vm9, %v1325_v32, %v1321_v33  ;;  %v1625_v32 = vld [vmem:[#allocation6 + $0x1f8] sm:$0xff]  ;;  %v1618_v33 = vld [vmem:[#allocation6 + $0x1c0] sm:$0xff]  ;;  %1694 = vmatpush.msrb.mxu1 %v1624_v3 }
 0x63e   :  { %v1327_v39 = vmul.f32 %v2976_v31, %v1326_v35  ;;  %v801_v31 = vpop.f32.mrf.mxu0  ;;  %v1619_v35 = vld [vmem:[#allocation6 + $0x1c8] sm:$0xff]  ;;  %1723 = vmatpush.msra.mxu2 %v1625_v32  ;;  %1637 = vmatpush.msrb.mxu0 %v1618_v33  ;;  %v1573_v3 = vld [vmem:[#allocation6 + $0x58] sm:$0xff]  ;;  %v1566_v32 = vld [vmem:[#allocation6 + $0x20] sm:$0xff] }
 0x63f   :  { %v843_v22 = vadd.f32 %v2921_v41, %v801_v31  ;;  %1666 = vmatpush.msra.mxu3 %v1619_v35  ;;  %v1613_v31 = vld [vmem:[#allocation6 + $0x198] sm:$0xff]  ;;  %v1567_v33 = vld [vmem:[#allocation6 + $0x28] sm:$0xff]  ;;  %v1568_v35 = vld [vmem:[#allocation6 + $0x30] sm:$0xff] }
 0x640   :  { %2250 = vmatmul.msk.f32.gmra.mxu1 %vm344_vm1, %v1327_v39  ;;  %v1620_v39 = vld [vmem:[#allocation6 + $0x1d0] sm:$0xff] }
 0x641   :  { %1695 = vmatpush.msrb.mxu1 %v1620_v39  ;;  %v1569_v39 = vld [vmem:[#allocation6 + $0x38] sm:$0xff] }
 0x642   :  { %v1094_v38 = vpop.f32.mrf.mxu3 }
 0x643   :  { %2238 = vmatmul.msk.f32.gmra.mxu0 %vm259_vm0, %v1094_v38  ;;  %v1621_v38 = vld [vmem:[#allocation6 + $0x1d8] sm:$0xff]  ;;  %1696 = vmatpush.msrb.mxu1 %v1616_v13 }
 0x644   :  { %1724 = vmatpush.msra.mxu2 %v1621_v38  ;;  %v1565_v13 = vld [vmem:[#allocation6 + $0x18] sm:$0xff] }
 0x646   :  { %v1130_v47 = vpop.f32.mrf.mxu0  ;;  %1725 = vmatpush.msra.mxu2 %v1617_v6 }
 0x647   :  { %v1142_v37 = vadd.f32 %v1130_v47, %v834_v10  ;;  %v1606_v47 = vld [vmem:[#allocation6 + $0x160] sm:$0xff]  ;;  %v1607_v10 = vld [vmem:[#allocation6 + $0x168] sm:$0xff] }
 0x648   :  { %1726 = vmatpush.msra.mxu2 %v1613_v31 }
 0x64c   :  { %v1357_v23 = vpop.f32.mrf.mxu3 }
 0x64d   :  { %2251 = vmatmul.msk.f32.vlgmr.msrb.gmra.mxu2 %vm259_vm0, %v1357_v23  ;;  %v1614_v23 = vld [vmem:[#allocation6 + $0x1a0] sm:$0xff] }
 0x64e   :  { %v1133_v43 = vpop.f32.mrf.mxu0  ;;  %1638 = vmatpush.msrb.mxu0 %v1614_v23  ;;  %v1562_v23 = vld [vmem:[#allocation6] sm:$0xff] }
 0x64f   :  { %v1143_v56 = vadd.f32 %v1133_v43, %v837_v49  ;;  %v1599_v43 = vld [vmem:[#allocation6 + $0x128] sm:$0xff]  ;;  %v1600_v49 = vld [vmem:[#allocation6 + $0x130] sm:$0xff] }
 0x699   :  { %v1360_v40 = vpop.f32.mrf.mxu3 }
 0x69a   :  { %2252 = vmatmul.msk.f32.gmra.mxu2 %vm259_vm0, %v1360_v40  ;;  %v1615_v40 = vld [vmem:[#allocation6 + $0x1a8] sm:$0xff] }
 0x69b   :  { %1667 = vmatpush.msra.mxu3 %v1615_v40  ;;  %v1563_v40 = vld [vmem:[#allocation6 + $0x8] sm:$0xff] }
 0x69d   :  { %1668 = vmatpush.msra.mxu3 %v1611_v46 }
 0x69f   :  { %1669 = vmatpush.msra.mxu3 %v1607_v10 }
 0x6b0   :  { %v1136_v2 = vpop.f32.mrf.mxu0 }
 0x6b1   :  { %v1144_v25 = vadd.f32 %v1136_v2, %v840_v4  ;;  %v1590_v2 = vld [vmem:[#allocation6 + $0xe0] sm:$0xff]  ;;  %v1592_v4 = vld [vmem:[#allocation6 + $0xf0] sm:$0xff] }
 0x6b4   :  { %v1392_v44 = vpop.f32.mrf.mxu1 }
 0x6b5   :  { %2253 = vmatmul.msk.f32.gmra.mxu2 %vm259_vm0, %v1392_v44  ;;  %v1610_v44 = vld [vmem:[#allocation6 + $0x180] sm:$0xff] }
 0x6b6   :  { %1639 = vmatpush.msrb.mxu0 %v1610_v44 }
 0x6b8   :  { %1640 = vmatpush.msrb.mxu0 %v1606_v47 }
 0x6bd   :  { %v1395_v8 = vpop.f32.mrf.mxu1 }
 0x6be   :  { %2254 = vmatmul.msk.f32.gmra.mxu2 %vm259_vm0, %v1395_v8  ;;  %vm1474_vm0 = vweird.f32 %v2373_v34  ;;  %v1612_v8 = vld [vmem:[#allocation6 + $0x190] sm:$0xff] }
 0x6bf   :  { %v3024_v51 = vsel %vm1474_vm0, %v2373_v34, %v1473_v54  ;;  %1697 = vmatpush.msrb.mxu1 %v1612_v8  ;;  %v1591_v34 = vld [vmem:[#allocation6 + $0xe8] sm:$0xff] }
 0x6c0   :  { %v1139_v11 = vpop.f32.mrf.mxu0 }
 0x6c1   :  { %v1145_v14 = vadd.f32 %v1139_v11, %v843_v22  ;;  %v1583_v22 = vld [vmem:[#allocation6 + $0xa8] sm:$0xff] }
 0x6d0   :  { %v1431_v48 = vpop.f32.mrf.mxu2 }
 0x6d1   :  { %v1443_v50 = vadd.f32 %v1431_v48, %v1142_v37  ;;  %v1608_v37 = vld [vmem:[#allocation6 + $0x170] sm:$0xff]  ;;  %v1602_v48 = vld [vmem:[#allocation6 + $0x140] sm:$0xff] }
 0x6d2   :  { %1698 = vmatpush.msrb.mxu1 %v1608_v37  ;;  %1641 = vmatpush.msrb.mxu0 %v1602_v48  ;;  %v3052_v48 = vld [vmem:[%s3202_s6] ss:$0 sm:$0xff] }
 0x6d3   :  { %v1451_v52 = vadd.f32 %v2302_v30, %v1443_v50  ;;  %v1603_v50 = vld [vmem:[#allocation6 + $0x148] sm:$0xff] }
 0x6d4   :  { %1670 = vmatpush.msra.mxu3 %v1603_v50 }
 0x6d5   :  { %v1455_v55 = vadd.f32 %v2422_v53, %v1451_v52  ;;  %v1604_v52 = vld [vmem:[#allocation6 + $0x150] sm:$0xff]  ;;  %v1605_v53 = vld [vmem:[#allocation6 + $0x158] sm:$0xff] }
 0x6d6   :  { %1699 = vmatpush.msrb.mxu1 %v1604_v52  ;;  %1671 = vmatpush.msra.mxu3 %v1599_v43 }
 0x6d7   :  { %1461 = vadd.xlane.f32.xlu0 %v1455_v55 }
 0x6d8   :  { %1700 = vmatpush.msrb.mxu1 %v1600_v49 }
 0x71d   :  { %v1434_v59 = vpop.f32.mrf.mxu2 }
 0x71e   :  { %v1444_v45 = vadd.f32 %v1434_v59, %v1143_v56  ;;  %v1601_v56 = vld [vmem:[#allocation6 + $0x138] sm:$0xff]  ;;  %v1594_v59 = vld [vmem:[#allocation6 + $0x100] sm:$0xff] }
 0x720   :  { %v1452_v60 = vadd.f32 %v2302_v30, %v1444_v45  ;;  %v1595_v45 = vld [vmem:[#allocation6 + $0x108] sm:$0xff] }
 0x721   :  { %1672 = vmatpush.msra.mxu3 %v1595_v45 }
 0x722   :  { %v1456_v62 = vadd.f32 %v2423_v61, %v1452_v60  ;;  %v1596_v60 = vld [vmem:[#allocation6 + $0x110] sm:$0xff] }
 0x723   :  { %1701 = vmatpush.msrb.mxu1 %v1596_v60  ;;  %1673 = vmatpush.msra.mxu3 %v1591_v34 }
 0x724   :  { %1463 = vadd.xlane.f32.xlu2 %v1456_v62 }
 0x725   :  { %1702 = vmatpush.msrb.mxu1 %v1592_v4 }
 0x738   :  { %v1437_v29 = vpop.f32.mrf.mxu2 }
 0x739   :  { %v1445_v0 = vadd.f32 %v1437_v29, %v1144_v25  ;;  %v1593_v25 = vld [vmem:[#allocation6 + $0xf8] sm:$0xff] }
 0x73b   :  { %v1453_v9 = vadd.f32 %v2302_v30, %v1445_v0  ;;  %v1587_v0 = vld [vmem:[#allocation6 + $0xc8] sm:$0xff] }
 0x73c   :  { %1674 = vmatpush.msra.mxu3 %v1587_v0 }
 0x73d   :  { %v3014_v57 = vadd.f32 %v2424_v12, %v1453_v9  ;;  %v1588_v9 = vld [vmem:[#allocation6 + $0xd0] sm:$0xff]  ;;  %v1582_v12 = vld [vmem:[#allocation6 + $0xa0] sm:$0xff] }
 0x73e   :  { %1703 = vmatpush.msrb.mxu1 %v1588_v9  ;;  %1675 = vmatpush.msra.mxu3 %v1583_v22 }
 0x73f   :  { %1465 = vadd.xlane.f32.xlu1 %v3014_v57 }
 0x741   :  { %v1440_v36 = vpop.f32.mrf.mxu2 }
 0x742   :  { %v1446_v16 = vadd.f32 %v1440_v36, %v1145_v14  ;;  %v1584_v14 = vld [vmem:[#allocation6 + $0xb0] sm:$0xff]  ;;  %v1579_v36 = vld [vmem:[#allocation6 + $0x88] sm:$0xff] }
 0x743   :  { %1704 = vmatpush.msrb.mxu1 %v1584_v14  ;;  %1676 = vmatpush.msra.mxu3 %v1579_v36  ;;  %v1909_v14 = vld [vmem:[#allocation7 + $0x68] sm:$0xff] }
 0x744   :  { %v1454_v58 = vadd.f32 %v2302_v30, %v1446_v16  ;;  %v1609_v30 = vld [vmem:[#allocation6 + $0x178] sm:$0xff]  ;;  %v1580_v16 = vld [vmem:[#allocation6 + $0x90] sm:$0xff] }
 0x745   :  { %1727 = vmatpush.msra.mxu2 %v1609_v30  ;;  %1705 = vmatpush.msrb.mxu1 %v1580_v16  ;;  %v1959_v16 = vld [vmem:[#allocation7 + $0x1f8] sm:$0xff] }
 0x746   :  { %v3021_v18 = vadd.f32 %v2425_v17, %v1454_v58  ;;  %v1581_v58 = vld [vmem:[#allocation6 + $0x98] sm:$0xff]  ;;  %v1574_v17 = vld [vmem:[#allocation6 + $0x60] sm:$0xff] }
 0x747   :  { %1728 = vmatpush.msra.mxu2 %v1605_v53  ;;  %v3058_v53 = vld [vmem:[%s3203_s7] ss:$0 sm:$0xff] }
 0x748   :  { %1467 = vadd.xlane.f32.xlu0 %v3021_v18 }
 0x749   :  { %1729 = vmatpush.msra.mxu2 %v1601_v56 }
 0x74a   :  { %v1462_v41 = vpop.xlane.xlu0 %1461 }
 0x74b   :  { %v1476_v19 = vmul.f32 %v3024_v51, %v1462_v41  ;;  %v1575_v41 = vld [vmem:[#allocation6 + $0x68] sm:$0xff] }
 0x74c   :  { %1677 = vmatpush.msra.mxu3 %v1575_v41 }
 0x74d   :  { %v3027_v20 = vsub.f32 %v1455_v55, %v1476_v19  ;;  %v1598_v55 = vld [vmem:[#allocation6 + $0x120] sm:$0xff]  ;;  %v1576_v19 = vld [vmem:[#allocation6 + $0x70] sm:$0xff] }
 0x74e   :  { %1642 = vmatpush.msrb.mxu0 %v1598_v55  ;;  %1706 = vmatpush.msrb.mxu1 %v1576_v19 }
 0x74f   :  { %v1484_v21 = vmul.f32 %v3027_v20, %v3027_v20 }
 0x750   :  { %1643 = vmatpush.msrb.mxu0 %v1594_v59  ;;  %1707 = vmatpush.msrb.mxu1 %v1572_v7 }
 0x751   :  { %1488 = vadd.xlane.f32.xlu0 %v1484_v21 }
 0x752   :  { %1644 = vmatpush.msrb.mxu0 %v1590_v2  ;;  %1708 = vmatpush.msrb.mxu1 %v1568_v35 }
 0x754   :  { %1645 = vmatpush.msrb.mxu0 %v1586_v5 }
 0x756   :  { %1646 = vmatpush.msrb.mxu0 %v1582_v12  ;;  %v1942_v12 = vld [vmem:[#allocation7 + $0x170] sm:$0xff] }
 0x758   :  { %1647 = vmatpush.msrb.mxu0 %v1578_v15  ;;  %v1927_v15 = vld [vmem:[#allocation7 + $0xf8] sm:$0xff] }
 0x75a   :  { %1648 = vmatpush.msrb.mxu0 %v1574_v17  ;;  %v1940_v17 = vld [vmem:[#allocation7 + $0x160] sm:$0xff] }
 0x797   :  { %v1464_v24 = vpop.xlane.xlu2 %1463 }
 0x798   :  { %v1477_v26 = vmul.f32 %v3024_v51, %v1464_v24  ;;  %v1577_v24 = vld [vmem:[#allocation6 + $0x78] sm:$0xff] }
 0x79a   :  { %v3032_v42 = vsub.f32 %v1456_v62, %v1477_v26  ;;  %v1597_v62 = vld [vmem:[#allocation6 + $0x118] sm:$0xff]  ;;  %v1570_v26 = vld [vmem:[#allocation6 + $0x40] sm:$0xff] }
 0x79b   :  { %1730 = vmatpush.msra.mxu2 %v1597_v62  ;;  %1649 = vmatpush.msrb.mxu0 %v1570_v26 }
 0x79c   :  { %v1485_v27 = vmul.f32 %v3032_v42, %v3032_v42 }
 0x79d   :  { %1731 = vmatpush.msra.mxu2 %v1593_v25  ;;  %1650 = vmatpush.msrb.mxu0 %v1566_v32  ;;  %v1926_v32 = vld [vmem:[#allocation7 + $0xf0] sm:$0xff] }
 0x79e   :  { %1490 = vadd.xlane.f32.xlu0 %v1485_v27  ;;  %v1571_v27 = vld [vmem:[#allocation6 + $0x48] sm:$0xff] }
 0x79f   :  { %1732 = vmatpush.msra.mxu2 %v1589_v63  ;;  %1678 = vmatpush.msra.mxu3 %v1571_v27  ;;  %v1911_v63 = vld [vmem:[#allocation7 + $0x78] sm:$0xff] }
 0x7a0   :  { %1651 = vmatpush.msrb.mxu0 %v1562_v23  ;;  %v1906_v23 = vld [vmem:[#allocation7 + $0x50] sm:$0xff] }
 0x7a1   :  { %1679 = vmatpush.msra.mxu3 %v1567_v33  ;;  %v1939_v33 = vld [vmem:[#allocation7 + $0x158] sm:$0xff] }
 0x7a2   :  { %1964 = vmatpush.msra.mxu0 %v1911_v63  ;;  %v1952_v63 = vld [vmem:[#allocation7 + $0x1c0] sm:$0xff] }
 0x7a3   :  { %1680 = vmatpush.msra.mxu3 %v1563_v40  ;;  %v1925_v40 = vld [vmem:[#allocation7 + $0xe8] sm:$0xff] }
 0x7a5   :  { %1993 = vmatpush.msrb.mxu3 %v1927_v15  ;;  %v1931_v15 = vld [vmem:[#allocation7 + $0x118] sm:$0xff] }
 0x7a7   :  { %1994 = vmatpush.msrb.mxu3 %v1926_v32  ;;  %v1914_v32 = vld [vmem:[#allocation7 + $0x90] sm:$0xff] }
 0x7a9   :  { %1995 = vmatpush.msrb.mxu3 %v1925_v40 }
 0x7b2   :  { %v1466_v61 = vpop.xlane.xlu1 %1465 }
 0x7b3   :  { %v1478_v1 = vmul.f32 %v3024_v51, %v1466_v61 }
 0x7b5   :  { %v3038_v29 = vsub.f32 %v3014_v57, %v1478_v1  ;;  %v1585_v57 = vld [vmem:[#allocation6 + $0xb8] sm:$0xff] }
 0x7b6   :  { %1733 = vmatpush.msra.mxu2 %v1585_v57  ;;  %v1941_v57 = vld [vmem:[#allocation7 + $0x168] sm:$0xff] }
 0x7b7   :  { %v1486_v11 = vmul.f32 %v3038_v29, %v3038_v29 }
 0x7b8   :  { %1734 = vmatpush.msra.mxu2 %v1581_v58 }
 0x7b9   :  { %1492 = vadd.xlane.f32.xlu0 %v1486_v11  ;;  %v1910_v11 = vld [vmem:[#allocation7 + $0x70] sm:$0xff] }
 0x7ba   :  { %1735 = vmatpush.msra.mxu2 %v1577_v24  ;;  %1965 = vmatpush.msra.mxu0 %v1910_v11  ;;  %v1900_v11 = vld [vmem:[#allocation7 + $0x20] sm:$0xff] }
 0x7bb   :  { %v1468_v54 = vpop.xlane.xlu0 %1467 }
 0x7bc   :  { %v1479_v21 = vmul.f32 %v3024_v51, %v1468_v54  ;;  %1736 = vmatpush.msra.mxu2 %v1573_v3  ;;  %v1908_v54 = vld [vmem:[#allocation7 + $0x60] sm:$0xff]  ;;  %1966 = vmatpush.msra.mxu0 %v1909_v14  ;;  %v1907_v3 = vld [vmem:[#allocation7 + $0x58] sm:$0xff] }
 0x7bd   :  { %v1951_v14 = vld [vmem:[#allocation7 + $0x1b8] sm:$0xff] }
 0x7be   :  { %v3044_v28 = vsub.f32 %v3021_v18, %v1479_v21  ;;  %v1564_v18 = vld [vmem:[#allocation6 + $0x10] sm:$0xff]  ;;  %1737 = vmatpush.msra.mxu2 %v1569_v39  ;;  %1967 = vmatpush.msra.mxu0 %v1908_v54  ;;  %v1949_v54 = vld [vmem:[#allocation7 + $0x1a8] sm:$0xff] }
 0x7bf   :  { %1709 = vmatpush.msrb.mxu1 %v1564_v18  ;;  %v1958_v39 = vld [vmem:[#allocation7 + $0x1f0] sm:$0xff] }
 0x7c0   :  { %v1487_v38 = vmul.f32 %v3044_v28, %v3044_v28  ;;  %1738 = vmatpush.msra.mxu2 %v1565_v13  ;;  %1968 = vmatpush.msra.mxu0 %v1907_v3  ;;  %v1947_v3 = vld [vmem:[#allocation7 + $0x198] sm:$0xff] }
 0x7c2   :  { %1494 = vadd.xlane.f32.xlu0 %v1487_v38  ;;  %2051 = vmatpush.msrb.mxu2 %v1959_v16  ;;  %v1917_v16 = vld [vmem:[#allocation7 + $0xa8] sm:$0xff] }
 0x7c3   :  { %1969 = vmatpush.msra.mxu0 %v1906_v23  ;;  %v1945_v23 = vld [vmem:[#allocation7 + $0x188] sm:$0xff] }
 0x7c4   :  { %v1489_v6 = vpop.xlane.xlu0 %1488  ;;  %2052 = vmatpush.msrb.mxu2 %v1958_v39 }
 0x7c5   :  { %v1496_v44 = vmul.f32 %v1489_v6, %v3024_v51  ;;  %v1938_v6 = vld [vmem:[#allocation7 + $0x150] sm:$0xff] }
 0x7c7   :  { %v1500_v46 = vadd.f32 1e-05, %v1496_v44  ;;  %v1957_v44 = vld [vmem:[#allocation7 + $0x1e8] sm:$0xff] }
 0x7c8   :  { %2053 = vmatpush.msrb.mxu2 %v1957_v44  ;;  %v1944_v44 = vld [vmem:[#allocation7 + $0x180] sm:$0xff] }
 0x7c9   :  { %2374 = vrsqrt.f32 %v1500_v46  ;;  %vm1510_vm10 = vweird.f32 %v1500_v46 }
 0x7cf   :  { %v2375_v8 = vpop.eup %2374 }
 0x7d0   :  { %v1505_v31 = vmul.f32 %v2375_v8, %v1500_v46  ;;  %vm1511_vm1 = vweird.f32 %v2375_v8  ;;  %v1905_v46 = vld [vmem:[#allocation7 + $0x48] sm:$0xff] }
 0x7d1   :  { %vm1512_vm11 = vmor %vm1510_vm10, %vm1511_vm1  ;;  %1970 = vmatpush.msra.mxu0 %v1905_v46 }
 0x7d2   :  { %v1506_v47 = vmul.f32 %v2375_v8, %v1505_v31  ;;  %v1937_v31 = vld [vmem:[#allocation7 + $0x148] sm:$0xff] }
 0x7d4   :  { %v1507_v10 = vmul.f32 0.5, %v1506_v47 }
 0x7d6   :  { %v1508_v37 = vsub.f32 1.5, %v1507_v10 }
 0x7d8   :  { %v1509_v30 = vmul.f32 %v2375_v8, %v1508_v37  ;;  %v1956_v37 = vld [vmem:[#allocation7 + $0x1e0] sm:$0xff] }
 0x7d9   :  { %2054 = vmatpush.msrb.mxu2 %v1956_v37 }
 0x7da   :  { %v1513_v50 = vsel %vm1512_vm11, %v2375_v8, %v1509_v30  ;;  %v1924_v8 = vld [vmem:[#allocation7 + $0xe0] sm:$0xff]  ;;  %v1923_v30 = vld [vmem:[#allocation7 + $0xd8] sm:$0xff] }
 0x7db   :  { %v1544_v52 = vmul.f32 %v1513_v50, %v3027_v20  ;;  %1996 = vmatpush.msrb.mxu3 %v1924_v8  ;;  %v1936_v50 = vld [vmem:[#allocation7 + $0x140] sm:$0xff] }
 0x7dd   :  { %v1551_v55 = vmul.f32 %v3052_v48, %v1544_v52  ;;  %1997 = vmatpush.msrb.mxu3 %v1923_v30 }
 0x7df   :  { %v3062_v43 = vadd.f32 %v3058_v53, %v1551_v55 }
 0x7e1   :  { %1652 = vmatmul.f32.vlgmr.msrb.gmra.mxu0 %v3062_v43  ;;  %1681 = vmatmul.f32.vlgmr.msra.gmra.mxu3 %v3062_v43 }
 0x7e2   :  { %1710 = vmatmul.f32.vlgmr.msrb.gmra.mxu1 %v3062_v43  ;;  %1739 = vmatmul.f32.vlgmr.msra.gmra.mxu2 %v3062_v43 }
 0x811   :  { %v1491_v49 = vpop.xlane.xlu0 %1490 }
 0x812   :  { %v1497_v20 = vmul.f32 %v1491_v49, %v3024_v51  ;;  %v1955_v49 = vld [vmem:[#allocation7 + $0x1d8] sm:$0xff] }
 0x813   :  { %2055 = vmatpush.msrb.mxu2 %v1955_v49 }
 0x814   :  { %v1501_v56 = vadd.f32 1e-05, %v1497_v20  ;;  %v1903_v20 = vld [vmem:[#allocation7 + $0x38] sm:$0xff] }
 0x816   :  { %2376 = vrsqrt.f32 %v1501_v56  ;;  %vm1520_vm13 = vweird.f32 %v1501_v56 }
 0x81c   :  { %v2377_v59 = vpop.eup %2376 }
 0x81d   :  { %v1515_v45 = vmul.f32 %v2377_v59, %v1501_v56  ;;  %vm1521_vm12 = vweird.f32 %v2377_v59  ;;  %v1922_v56 = vld [vmem:[#allocation7 + $0xd0] sm:$0xff] }
 0x81e   :  { %vm1522_vm14 = vmor %vm1520_vm13, %vm1521_vm12  ;;  %1998 = vmatpush.msrb.mxu3 %v1922_v56 }
 0x81f   :  { %v1516_v60 = vmul.f32 %v2377_v59, %v1515_v45  ;;  %v1935_v45 = vld [vmem:[#allocation7 + $0x138] sm:$0xff] }
 0x821   :  { %v1517_v61 = vmul.f32 0.5, %v1516_v60  ;;  %v1954_v60 = vld [vmem:[#allocation7 + $0x1d0] sm:$0xff] }
 0x822   :  { %2056 = vmatpush.msrb.mxu2 %v1954_v60 }
 0x823   :  { %v1518_v62 = vsub.f32 1.5, %v1517_v61  ;;  %v1902_v61 = vld [vmem:[#allocation7 + $0x30] sm:$0xff] }
 0x825   :  { %v1519_v1 = vmul.f32 %v2377_v59, %v1518_v62  ;;  %v1921_v62 = vld [vmem:[#allocation7 + $0xc8] sm:$0xff] }
 0x826   :  { %1999 = vmatpush.msrb.mxu3 %v1921_v62 }
 0x827   :  { %v1523_v2 = vsel %vm1522_vm14, %v2377_v59, %v1519_v1 }
 0x828   :  { %v1545_v34 = vmul.f32 %v1523_v2, %v3032_v42  ;;  %v1943_v42 = vld [vmem:[#allocation7 + $0x178] sm:$0xff]  ;;  %v1934_v2 = vld [vmem:[#allocation7 + $0x130] sm:$0xff] }
 0x829   :  { %2022 = vmatpush.msra.mxu1 %v1943_v42 }
 0x82a   :  { %v1552_v4 = vmul.f32 %v3052_v48, %v1545_v34  ;;  %v1953_v34 = vld [vmem:[#allocation7 + $0x1c8] sm:$0xff] }
 0x82b   :  { %2023 = vmatpush.msra.mxu1 %v1942_v12  ;;  %2057 = vmatpush.msrb.mxu2 %v1953_v34  ;;  %v1919_v12 = vld [vmem:[#allocation7 + $0xb8] sm:$0xff] }
 0x82c   :  { %v1493_v25 = vpop.xlane.xlu0 %1492  ;;  %v3072_v5 = vadd.f32 %v3058_v53, %v1552_v4 }
 0x82d   :  { %v1498_v0 = vmul.f32 %v1493_v25, %v3024_v51  ;;  %2024 = vmatpush.msra.mxu1 %v1941_v57  ;;  %v1901_v25 = vld [vmem:[#allocation7 + $0x28] sm:$0xff]  ;;  %2058 = vmatpush.msrb.mxu2 %v1952_v63  ;;  %v1918_v57 = vld [vmem:[#allocation7 + $0xb0] sm:$0xff] }
 0x82e   :  { %1655 = vmatmul.f32.gmra.mxu0 %v3072_v5  ;;  %1684 = vmatmul.f32.gmra.mxu3 %v3072_v5 }
 0x82f   :  { %v1502_v9 = vadd.f32 1e-05, %v1498_v0  ;;  %1713 = vmatmul.f32.gmra.mxu1 %v3072_v5  ;;  %1742 = vmatmul.f32.gmra.mxu2 %v3072_v5  ;;  %v1920_v0 = vld [vmem:[#allocation7 + $0xc0] sm:$0xff] }
 0x830   :  { %2025 = vmatpush.msra.mxu1 %v1940_v17  ;;  %2000 = vmatpush.msrb.mxu3 %v1920_v0  ;;  %v1897_v17 = vld [vmem:[#allocation7 + $0x8] sm:$0xff] }
 0x831   :  { %2378 = vrsqrt.f32 %v1502_v9  ;;  %vm1530_vm2 = vweird.f32 %v1502_v9  ;;  %2059 = vmatpush.msrb.mxu2 %v1951_v14 }
 0x832   :  { %2026 = vmatpush.msra.mxu1 %v1939_v33  ;;  %2001 = vmatpush.msrb.mxu3 %v1919_v12 }
 0x834   :  { %2027 = vmatpush.msra.mxu1 %v1938_v6  ;;  %2002 = vmatpush.msrb.mxu3 %v1918_v57 }
 0x835   :  { %v1495_v22 = vpop.xlane.xlu0 %1494 }
 0x836   :  { %v1499_v36 = vmul.f32 %v1495_v22, %v3024_v51  ;;  %2028 = vmatpush.msra.mxu1 %v1937_v31  ;;  %2003 = vmatpush.msrb.mxu3 %v1917_v16 }
 0x837   :  { %v2379_v58 = vpop.eup %2378 }
 0x838   :  { %v1525_v41 = vmul.f32 %v2379_v58, %v1502_v9  ;;  %v3080_v19 = vadd.f32 1e-05, %v1499_v36  ;;  %vm1531_vm15 = vweird.f32 %v2379_v58  ;;  %2029 = vmatpush.msra.mxu1 %v1936_v50  ;;  %v1933_v9 = vld [vmem:[#allocation7 + $0x128] sm:$0xff]  ;;  %v1950_v36 = vld [vmem:[#allocation7 + $0x1b0] sm:$0xff] }
 0x839   :  { %vm1532_vm3 = vmor %vm1530_vm2, %vm1531_vm15  ;;  %2060 = vmatpush.msrb.mxu2 %v1950_v36 }
 0x83a   :  { %v1526_v21 = vmul.f32 %v2379_v58, %v1525_v41  ;;  %2380 = vrsqrt.f32 %v3080_v19  ;;  %vm1540_vm5 = vweird.f32 %v3080_v19  ;;  %2030 = vmatpush.msra.mxu1 %v1935_v45  ;;  %v1916_v41 = vld [vmem:[#allocation7 + $0xa0] sm:$0xff] }
 0x83b   :  { %2061 = vmatpush.msrb.mxu2 %v1949_v54  ;;  %2004 = vmatpush.msrb.mxu3 %v1916_v41 }
 0x83c   :  { %v1527_v24 = vmul.f32 0.5, %v1526_v21  ;;  %2031 = vmatpush.msra.mxu1 %v1934_v2  ;;  %v1948_v21 = vld [vmem:[#allocation7 + $0x1a0] sm:$0xff] }
 0x83d   :  { %2062 = vmatpush.msrb.mxu2 %v1948_v21 }
 0x83e   :  { %v1528_v26 = vsub.f32 1.5, %v1527_v24  ;;  %2032 = vmatpush.msra.mxu1 %v1933_v9  ;;  %v1626_v24 = vld [vmem:[%s3205_s9] sm:$0xf] }
 0x83f   :  { %v3115_v33 = vperm.slane %v1626_v24, 0  ;;  %v3117_v39 = vperm.slane %v1626_v24, 2  ;;  %2063 = vmatpush.msrb.mxu2 %v1947_v3  ;;  %v3121_v31 = vperm.slane %v1626_v24, 1 }
 0x840   :  { %v3083_v27 = vpop.eup %2380  ;;  %v1529_v7 = vmul.f32 %v2379_v58, %v1528_v26  ;;  %v1896_v26 = vld [vmem:[#allocation7] sm:$0xff] }
 0x841   :  { %v1535_v35 = vmul.f32 %v3083_v27, %v3080_v19  ;;  %vm1541_vm4 = vweird.f32 %v3083_v27  ;;  %v1929_v19 = vld [vmem:[#allocation7 + $0x108] sm:$0xff] }
 0x842   :  { %v1533_v38 = vsel %vm1532_vm3, %v2379_v58, %v1529_v7  ;;  %vm1542_vm6 = vmor %vm1540_vm5, %vm1541_vm4  ;;  %v1930_v58 = vld [vmem:[#allocation7 + $0x110] sm:$0xff]  ;;  %v1928_v7 = vld [vmem:[#allocation7 + $0x100] sm:$0xff] }
 0x843   :  { %v1546_v18 = vmul.f32 %v1533_v38, %v3038_v29  ;;  %v1536_v13 = vmul.f32 %v3083_v27, %v1535_v35  ;;  %v1904_v29 = vld [vmem:[#allocation7 + $0x40] sm:$0xff]  ;;  %v1946_v35 = vld [vmem:[#allocation7 + $0x190] sm:$0xff]  ;;  %v1913_v38 = vld [vmem:[#allocation7 + $0x88] sm:$0xff] }
 0x844   :  { %1971 = vmatpush.msra.mxu0 %v1904_v29  ;;  %2064 = vmatpush.msrb.mxu2 %v1946_v35 }
 0x845   :  { %v1553_v47 = vmul.f32 %v3052_v48, %v1546_v18  ;;  %v1537_v10 = vmul.f32 0.5, %v1536_v13  ;;  %v1912_v18 = vld [vmem:[#allocation7 + $0x80] sm:$0xff] }
 0x846   :  { %1972 = vmatpush.msra.mxu0 %v1903_v20  ;;  %2065 = vmatpush.msrb.mxu2 %v1945_v23 }
 0x847   :  { %v1538_v52 = vsub.f32 1.5, %v1537_v10  ;;  %v3092_v55 = vadd.f32 %v3058_v53, %v1553_v47  ;;  %v3123_v10 = vperm.slane %v1626_v24, 3 }
 0x848   :  { %1973 = vmatpush.msra.mxu0 %v1902_v61  ;;  %2066 = vmatpush.msrb.mxu2 %v1944_v44 }
 0x849   :  { %v1539_v59 = vmul.f32 %v3083_v27, %v1538_v52  ;;  %1658 = vmatmul.f32.gmra.mxu0 %v3092_v55  ;;  %1687 = vmatmul.f32.gmra.mxu3 %v3092_v55 }
 0x84a   :  { %1716 = vmatmul.f32.gmra.mxu1 %v3092_v55  ;;  %1745 = vmatmul.f32.gmra.mxu2 %v3092_v55 }
 0x84b   :  { %v1543_v1 = vsel %vm1542_vm6, %v3083_v27, %v1539_v59  ;;  %1974 = vmatpush.msra.mxu0 %v1901_v25  ;;  %v1915_v27 = vld [vmem:[#allocation7 + $0x98] sm:$0xff] }
 0x84c   :  { %v1547_v4 = vmul.f32 %v1543_v1, %v3044_v28  ;;  %v1932_v28 = vld [vmem:[#allocation7 + $0x120] sm:$0xff]  ;;  %2005 = vmatpush.msrb.mxu3 %v1915_v27 }
 0x84d   :  { %1975 = vmatpush.msra.mxu0 %v1900_v11  ;;  %2033 = vmatpush.msra.mxu1 %v1932_v28 }
 0x84e   :  { %v1554_v42 = vmul.f32 %v3052_v48, %v1547_v4  ;;  %v1899_v48 = vld [vmem:[#allocation7 + $0x18] sm:$0xff]  ;;  %2006 = vmatpush.msrb.mxu3 %v1914_v32 }
 0x84f   :  { %1976 = vmatpush.msra.mxu0 %v1899_v48  ;;  %2034 = vmatpush.msra.mxu1 %v1931_v15 }
 0x850   :  { %v3106_v22 = vadd.f32 %v3058_v53, %v1554_v42  ;;  %v1898_v53 = vld [vmem:[#allocation7 + $0x10] sm:$0xff]  ;;  %2007 = vmatpush.msrb.mxu3 %v1913_v38 }
 0x851   :  { %1977 = vmatpush.msra.mxu0 %v1898_v53  ;;  %2035 = vmatpush.msra.mxu1 %v1930_v58 }
 0x852   :  { %1661 = vmatmul.f32.gmra.mxu0 %v3106_v22  ;;  %1690 = vmatmul.f32.gmra.mxu3 %v3106_v22 }
 0x853   :  { %1719 = vmatmul.f32.gmra.mxu1 %v3106_v22  ;;  %1748 = vmatmul.f32.gmra.mxu2 %v3106_v22 }
 0x854   :  { %1978 = vmatpush.msra.mxu0 %v1897_v17  ;;  %2036 = vmatpush.msra.mxu1 %v1929_v19 }
 0x855   :  { %2008 = vmatpush.msrb.mxu3 %v1912_v18 }
 0x856   :  { %1979 = vmatpush.msra.mxu0 %v1896_v26  ;;  %2037 = vmatpush.msra.mxu1 %v1928_v7 }
 0x85e   :  { %v1653_v40 = vpop.f32.mrf.mxu0 }
 0x85f   :  { %v1654_v13 = vadd.f32 %v1653_v40, %v3115_v33  ;;  %v1711_v6 = vpop.f32.mrf.mxu1 }
 0x860   :  { %v1712_v46 = vadd.f32 %v1711_v6, %v3117_v39 }
 0x861   :  { %v1768_v8 = vmul.f32 0.044715, %v1654_v13  ;;  %v1752_v28 = vmul.f32 0.5, %v1654_v13 }
 0x862   :  { %v1770_v47 = vmul.f32 0.044715, %v1712_v46  ;;  %v1754_v48 = vmul.f32 0.5, %v1712_v46 }
 0x863   :  { %v1784_v37 = vmul.f32 %v1768_v8, %v1654_v13 }
 0x864   :  { %v1786_v29 = vmul.f32 %v1770_v47, %v1712_v46  ;;  %v1682_v30 = vpop.f32.mrf.mxu3 }
 0x865   :  { %v1800_v50 = vmul.f32 %v1784_v37, %v1654_v13  ;;  %v1683_v52 = vadd.f32 %v1682_v30, %v3121_v31  ;;  %v1740_v49 = vpop.f32.mrf.mxu2 }
 0x866   :  { %v1802_v20 = vmul.f32 %v1786_v29, %v1712_v46  ;;  %v1741_v56 = vadd.f32 %v1740_v49, %v3123_v10 }
 0x867   :  { %v1769_v59 = vmul.f32 0.044715, %v1683_v52  ;;  %v1816_v45 = vadd.f32 %v1800_v50, %v1654_v13  ;;  %v1753_v58 = vmul.f32 0.5, %v1683_v52 }
 0x868   :  { %v1771_v60 = vmul.f32 0.044715, %v1741_v56  ;;  %v1818_v61 = vadd.f32 %v1802_v20, %v1712_v46  ;;  %v1755_v17 = vmul.f32 0.5, %v1741_v56 }
 0x869   :  { %v1785_v62 = vmul.f32 %v1769_v59, %v1683_v52  ;;  %v1832_v1 = vmul.f32 0.7978846, %v1816_v45 }
 0x86a   :  { %v1787_v2 = vmul.f32 %v1771_v60, %v1741_v56  ;;  %v1834_v34 = vmul.f32 0.7978846, %v1818_v61 }
 0x86b   :  { %v1801_v4 = vmul.f32 %v1785_v62, %v1683_v52  ;;  %2382 = vtanh.f32 %v1832_v1 }
 0x86c   :  { %v1803_v25 = vmul.f32 %v1787_v2, %v1741_v56  ;;  %2384 = vtanh.f32 %v1834_v34 }
 0x86d   :  { %v1817_v0 = vadd.f32 %v1801_v4, %v1683_v52 }
 0x86e   :  { %v1819_v9 = vadd.f32 %v1803_v25, %v1741_v56 }
 0x86f   :  { %v1833_v63 = vmul.f32 0.7978846, %v1817_v0 }
 0x870   :  { %v1835_v42 = vmul.f32 0.7978846, %v1819_v9 }
 0x871   :  { %v2383_v11 = vpop.eup %2382  ;;  %2386 = vtanh.f32 %v1833_v63 }
 0x872   :  { %v2385_v12 = vpop.eup %2384  ;;  %v1864_v14 = vadd.f32 1.0, %v2383_v11  ;;  %2388 = vtanh.f32 %v1835_v42 }
 0x873   :  { %v1866_v57 = vadd.f32 1.0, %v2385_v12 }
 0x874   :  { %v1880_v15 = vmul.f32 %v1864_v14, %v1752_v28 }
 0x875   :  { %v1882_v36 = vmul.f32 %v1866_v57, %v1754_v48 }
 0x876   :  { %1980 = vmatmul.f32.vlgmr.msra.gmra.mxu0 %v1880_v15 }
 0x877   :  { %v2387_v53 = vpop.eup %2386  ;;  %2038 = vmatmul.f32.vlgmr.msra.gmra.mxu1 %v1882_v36 }
 0x878   :  { %v2389_v16 = vpop.eup %2388  ;;  %v1865_v54 = vadd.f32 1.0, %v2387_v53 }
 0x879   :  { %v1867_v41 = vadd.f32 1.0, %v2389_v16 }
 0x87a   :  { %v1881_v19 = vmul.f32 %v1865_v54, %v1753_v58 }
 0x87b   :  { %v1883_v21 = vmul.f32 %v1867_v41, %v1755_v17 }
 0x87c   :  { %2009 = vmatmul.f32.vlgmr.msrb.gmra.mxu3 %v1881_v19 }
 0x87d   :  { %2067 = vmatmul.f32.vlgmr.msrb.gmra.mxu2 %v1883_v21 }
 0x8ab   :  { %v1656_v24 = vpop.f32.mrf.mxu0 }
 0x8ac   :  { %v1657_v26 = vadd.f32 %v1656_v24, %v3115_v33  ;;  %v1714_v27 = vpop.f32.mrf.mxu1 }
 0x8ad   :  { %v1715_v7 = vadd.f32 %v1714_v27, %v3117_v39 }
 0x8ae   :  { %v1772_v3 = vmul.f32 0.044715, %v1657_v26  ;;  %v1756_v1 = vmul.f32 0.5, %v1657_v26 }
 0x8af   :  { %v1774_v32 = vmul.f32 0.044715, %v1715_v7  ;;  %v1758_v34 = vmul.f32 0.5, %v1715_v7 }
 0x8b0   :  { %v1788_v35 = vmul.f32 %v1772_v3, %v1657_v26 }
 0x8b1   :  { %v1685_v38 = vpop.f32.mrf.mxu3  ;;  %v1790_v23 = vmul.f32 %v1774_v32, %v1715_v7 }
 0x8b2   :  { %v1686_v40 = vadd.f32 %v1685_v38, %v3121_v31  ;;  %v1743_v18 = vpop.f32.mrf.mxu2  ;;  %v1804_v13 = vmul.f32 %v1788_v35, %v1657_v26 }
 0x8b3   :  { %v1744_v6 = vadd.f32 %v1743_v18, %v3123_v10  ;;  %v1806_v44 = vmul.f32 %v1790_v23, %v1715_v7 }
 0x8b4   :  { %v1820_v46 = vadd.f32 %v1804_v13, %v1657_v26  ;;  %v1773_v8 = vmul.f32 0.044715, %v1686_v40  ;;  %v1757_v42 = vmul.f32 0.5, %v1686_v40 }
 0x8b5   :  { %v1822_v47 = vadd.f32 %v1806_v44, %v1715_v7  ;;  %v1775_v37 = vmul.f32 0.044715, %v1744_v6  ;;  %v1759_v28 = vmul.f32 0.5, %v1744_v6 }
 0x8b6   :  { %v1836_v29 = vmul.f32 0.7978846, %v1820_v46  ;;  %v1789_v30 = vmul.f32 %v1773_v8, %v1686_v40 }
 0x8b7   :  { %v1838_v50 = vmul.f32 0.7978846, %v1822_v47  ;;  %v1791_v52 = vmul.f32 %v1775_v37, %v1744_v6 }
 0x8b8   :  { %2390 = vtanh.f32 %v1836_v29  ;;  %v1805_v49 = vmul.f32 %v1789_v30, %v1686_v40 }
 0x8b9   :  { %2392 = vtanh.f32 %v1838_v50  ;;  %v1807_v20 = vmul.f32 %v1791_v52, %v1744_v6 }
 0x8ba   :  { %v1821_v56 = vadd.f32 %v1805_v49, %v1686_v40 }
 0x8bb   :  { %v1823_v59 = vadd.f32 %v1807_v20, %v1744_v6 }
 0x8bc   :  { %v1837_v45 = vmul.f32 0.7978846, %v1821_v56 }
 0x8bd   :  { %v1839_v60 = vmul.f32 0.7978846, %v1823_v59 }
 0x8be   :  { %v2391_v61 = vpop.eup %2390  ;;  %2394 = vtanh.f32 %v1837_v45 }
 0x8bf   :  { %v2393_v62 = vpop.eup %2392  ;;  %v1868_v2 = vadd.f32 1.0, %v2391_v61  ;;  %2396 = vtanh.f32 %v1839_v60 }
 0x8c0   :  { %v1870_v4 = vadd.f32 1.0, %v2393_v62 }
 0x8c1   :  { %v1884_v25 = vmul.f32 %v1868_v2, %v1756_v1 }
 0x8c2   :  { %v1886_v0 = vmul.f32 %v1870_v4, %v1758_v34 }
 0x8c3   :  { %1983 = vmatmul.f32.gmra.mxu0 %v1884_v25 }
 0x8c4   :  { %v2395_v9 = vpop.eup %2394  ;;  %2041 = vmatmul.f32.gmra.mxu1 %v1886_v0 }
 0x8c5   :  { %v2397_v63 = vpop.eup %2396  ;;  %v1869_v11 = vadd.f32 1.0, %v2395_v9 }
 0x8c6   :  { %v1659_v12 = vpop.f32.mrf.mxu0  ;;  %v1871_v14 = vadd.f32 1.0, %v2397_v63 }
 0x8c7   :  { %v1660_v48 = vadd.f32 %v1659_v12, %v3115_v33  ;;  %v1717_v57 = vpop.f32.mrf.mxu1  ;;  %v1885_v15 = vmul.f32 %v1869_v11, %v1757_v42 }
 0x8c8   :  { %v1718_v36 = vadd.f32 %v1717_v57, %v3117_v39  ;;  %v1887_v53 = vmul.f32 %v1871_v14, %v1759_v28 }
 0x8c9   :  { %2012 = vmatmul.f32.gmra.mxu3 %v1885_v15  ;;  %v1776_v16 = vmul.f32 0.044715, %v1660_v48  ;;  %v1760_v34 = vmul.f32 0.5, %v1660_v48 }
 0x8ca   :  { %2070 = vmatmul.f32.gmra.mxu2 %v1887_v53  ;;  %v1778_v58 = vmul.f32 0.044715, %v1718_v36  ;;  %v1762_v42 = vmul.f32 0.5, %v1718_v36 }
 0x8cb   :  { %v1792_v54 = vmul.f32 %v1776_v16, %v1660_v48 }
 0x8cc   :  { %v1688_v17 = vpop.f32.mrf.mxu3  ;;  %v1794_v41 = vmul.f32 %v1778_v58, %v1718_v36 }
 0x8cd   :  { %v1689_v19 = vadd.f32 %v1688_v17, %v3121_v31  ;;  %v1746_v21 = vpop.f32.mrf.mxu2  ;;  %v1808_v24 = vmul.f32 %v1792_v54, %v1660_v48 }
 0x8ce   :  { %v1747_v26 = vadd.f32 %v1746_v21, %v3123_v10  ;;  %v1810_v27 = vmul.f32 %v1794_v41, %v1718_v36 }
 0x8cf   :  { %v1662_v7 = vpop.f32.mrf.mxu0  ;;  %v1824_v3 = vadd.f32 %v1808_v24, %v1660_v48  ;;  %v1777_v32 = vmul.f32 0.044715, %v1689_v19  ;;  %v1761_v54 = vmul.f32 0.5, %v1689_v19 }
 0x8d0   :  { %v3136_v35 = vadd.f32 %v1662_v7, %v3115_v33  ;;  %v1720_v38 = vpop.f32.mrf.mxu1  ;;  %v1826_v23 = vadd.f32 %v1810_v27, %v1718_v36  ;;  %v1779_v40 = vmul.f32 0.044715, %v1747_v26  ;;  %v1763_v21 = vmul.f32 0.5, %v1747_v26 }
 0x8d1   :  { %v3139_v18 = vadd.f32 %v1720_v38, %v3117_v39  ;;  %v1840_v13 = vmul.f32 0.7978846, %v1824_v3  ;;  %v1793_v6 = vmul.f32 %v1777_v32, %v1689_v19 }
 0x8d2   :  { %v1842_v44 = vmul.f32 0.7978846, %v1826_v23  ;;  %v1795_v46 = vmul.f32 %v1779_v40, %v1747_v26  ;;  %v1780_v8 = vmul.f32 0.044715, %v3136_v35  ;;  %v1764_v38 = vmul.f32 0.5, %v3136_v35 }
 0x8d3   :  { %2398 = vtanh.f32 %v1840_v13  ;;  %v1809_v47 = vmul.f32 %v1793_v6, %v1689_v19  ;;  %v1782_v37 = vmul.f32 0.044715, %v3139_v18  ;;  %v1766_v40 = vmul.f32 0.5, %v3139_v18 }
 0x8d4   :  { %2400 = vtanh.f32 %v1842_v44  ;;  %v1811_v29 = vmul.f32 %v1795_v46, %v1747_v26  ;;  %v1796_v33 = vmul.f32 %v1780_v8, %v3136_v35 }
 0x8d5   :  { %v1691_v30 = vpop.f32.mrf.mxu3  ;;  %v1825_v50 = vadd.f32 %v1809_v47, %v1689_v19  ;;  %v1798_v52 = vmul.f32 %v1782_v37, %v3139_v18 }
 0x8d6   :  { %v1692_v39 = vadd.f32 %v1691_v30, %v3121_v31  ;;  %v1749_v49 = vpop.f32.mrf.mxu2  ;;  %v1827_v20 = vadd.f32 %v1811_v29, %v1747_v26  ;;  %v1812_v56 = vmul.f32 %v1796_v33, %v3136_v35 }
 0x8d7   :  { %v1750_v59 = vadd.f32 %v1749_v49, %v3123_v10  ;;  %v1841_v45 = vmul.f32 0.7978846, %v1825_v50  ;;  %v1814_v60 = vmul.f32 %v1798_v52, %v3139_v18 }
 0x8d8   :  { %v1843_v61 = vmul.f32 0.7978846, %v1827_v20  ;;  %v1828_v62 = vadd.f32 %v1812_v56, %v3136_v35  ;;  %v1781_v1 = vmul.f32 0.044715, %v1692_v39  ;;  %v1765_v46 = vmul.f32 0.5, %v1692_v39 }
 0x8d9   :  { %v2399_v2 = vpop.eup %2398  ;;  %2402 = vtanh.f32 %v1841_v45  ;;  %v1830_v4 = vadd.f32 %v1814_v60, %v3139_v18  ;;  %v1783_v25 = vmul.f32 0.044715, %v1750_v59  ;;  %v1767_v47 = vmul.f32 0.5, %v1750_v59  ;;  %v2305_v35 = vld [vmem:[%s3207_s11] ss:$0 sm:$0xff] }
 0x8da   :  { %v2401_v31 = vpop.eup %2400  ;;  %v1872_v0 = vadd.f32 1.0, %v2399_v2  ;;  %2404 = vtanh.f32 %v1843_v61  ;;  %v1844_v9 = vmul.f32 0.7978846, %v1828_v62  ;;  %v1797_v63 = vmul.f32 %v1781_v1, %v1692_v39 }
 0x8db   :  { %v1874_v10 = vadd.f32 1.0, %v2401_v31  ;;  %v1846_v11 = vmul.f32 0.7978846, %v1830_v4  ;;  %v1799_v12 = vmul.f32 %v1783_v25, %v1750_v59 }
 0x8dc   :  { %v1888_v28 = vmul.f32 %v1872_v0, %v1760_v34  ;;  %2406 = vtanh.f32 %v1844_v9  ;;  %v1813_v14 = vmul.f32 %v1797_v63, %v1692_v39 }
 0x8dd   :  { %v1890_v57 = vmul.f32 %v1874_v10, %v1762_v42  ;;  %2408 = vtanh.f32 %v1846_v11  ;;  %v1815_v15 = vmul.f32 %v1799_v12, %v1750_v59 }
 0x8de   :  { %1986 = vmatmul.f32.gmra.mxu0 %v1888_v28  ;;  %v1829_v48 = vadd.f32 %v1813_v14, %v1692_v39 }
 0x8df   :  { %v2403_v53 = vpop.eup %2402  ;;  %2044 = vmatmul.f32.gmra.mxu1 %v1890_v57  ;;  %v1831_v16 = vadd.f32 %v1815_v15, %v1750_v59 }
 0x8e0   :  { %v2405_v58 = vpop.eup %2404  ;;  %v1873_v17 = vadd.f32 1.0, %v2403_v53  ;;  %v1845_v41 = vmul.f32 0.7978846, %v1829_v48 }
 0x8e1   :  { %v1875_v36 = vadd.f32 1.0, %v2405_v58  ;;  %v1847_v24 = vmul.f32 0.7978846, %v1831_v16 }
 0x8e2   :  { %v2407_v27 = vpop.eup %2406  ;;  %v1889_v7 = vmul.f32 %v1873_v17, %v1761_v54  ;;  %2410 = vtanh.f32 %v1845_v41 }
 0x8e3   :  { %v2409_v3 = vpop.eup %2408  ;;  %v1891_v32 = vmul.f32 %v1875_v36, %v1763_v21  ;;  %v1876_v23 = vadd.f32 1.0, %v2407_v27  ;;  %2412 = vtanh.f32 %v1847_v24 }
 0x8e4   :  { %2015 = vmatmul.f32.gmra.mxu3 %v1889_v7  ;;  %v1878_v13 = vadd.f32 1.0, %v2409_v3 }
 0x8e5   :  { %2073 = vmatmul.f32.gmra.mxu2 %v1891_v32  ;;  %v1892_v19 = vmul.f32 %v1876_v23, %v1764_v38 }
 0x8e6   :  { %v1894_v6 = vmul.f32 %v1878_v13, %v1766_v40 }
 0x8e7   :  { %1989 = vmatmul.f32.gmra.mxu0 %v1892_v19 }
 0x8e8   :  { %v2411_v26 = vpop.eup %2410  ;;  %2047 = vmatmul.f32.gmra.mxu1 %v1894_v6 }
 0x8e9   :  { %v2413_v44 = vpop.eup %2412  ;;  %v1877_v8 = vadd.f32 1.0, %v2411_v26 }
 0x8ea   :  { %v1879_v37 = vadd.f32 1.0, %v2413_v44 }
 0x8eb   :  { %v1893_v29 = vmul.f32 %v1877_v8, %v1765_v46 }
 0x8ec   :  { %v1895_v33 = vmul.f32 %v1879_v37, %v1767_v47 }
 0x8ed   :  { %2018 = vmatmul.f32.gmra.mxu3 %v1893_v29 }
 0x8ee   :  { %2076 = vmatmul.f32.gmra.mxu2 %v1895_v33  ;;  %v2306_v33 = vld [vmem:[%s3208_s12] ss:$0 sm:$0xff] }
 0x8f3   :  { %v1981_v18 = vpop.f32.mrf.mxu0 }
 0x8f4   :  { %v1982_v30 = vadd.f32 %v2305_v35, %v1981_v18  ;;  %v2039_v49 = vpop.f32.mrf.mxu1  ;;  %v2307_v18 = vld [vmem:[%s3209_s13] ss:$0 sm:$0xff] }
 0x8ff   :  { %v2010_v50 = vpop.f32.mrf.mxu3 }
 0x900   :  { %v2011_v52 = vadd.f32 %v2010_v50, %v1982_v30  ;;  %v2068_v56 = vpop.f32.mrf.mxu2 }
 0x902   :  { %v2040_v20 = vadd.f32 %v2039_v49, %v2011_v52 }
 0x904   :  { %v2069_v45 = vadd.f32 %v2068_v56, %v2040_v20 }
 0x906   :  { %v2080_v39 = vadd.f32 %v2069_v45, %v3062_v43 }
 0x908   :  { %2086 = vadd.xlane.f32.xlu2 %v2080_v39 }
 0x940   :  { %v1984_v59 = vpop.f32.mrf.mxu0 }
 0x941   :  { %v1985_v60 = vadd.f32 %v2305_v35, %v1984_v59  ;;  %v2042_v1 = vpop.f32.mrf.mxu1 }
 0x94c   :  { %v2013_v61 = vpop.f32.mrf.mxu3 }
 0x94d   :  { %v2014_v62 = vadd.f32 %v2013_v61, %v1985_v60  ;;  %v2071_v34 = vpop.f32.mrf.mxu2 }
 0x94f   :  { %v2043_v2 = vadd.f32 %v2042_v1, %v2014_v62 }
 0x951   :  { %v2072_v4 = vadd.f32 %v2071_v34, %v2043_v2 }
 0x953   :  { %v2081_v25 = vadd.f32 %v2072_v4, %v3072_v5 }
 0x955   :  { %2088 = vadd.xlane.f32.xlu1 %v2081_v25 }
 0x95b   :  { %v1987_v31 = vpop.f32.mrf.mxu0 }
 0x95c   :  { %v1988_v0 = vadd.f32 %v2305_v35, %v1987_v31  ;;  %v2045_v63 = vpop.f32.mrf.mxu1 }
 0x964   :  { %v1990_v43 = vpop.f32.mrf.mxu0 }
 0x965   :  { %v1991_v14 = vadd.f32 %v2305_v35, %v1990_v43  ;;  %v2048_v48 = vpop.f32.mrf.mxu1 }
 0x967   :  { %v2016_v9 = vpop.f32.mrf.mxu3 }
 0x968   :  { %v2017_v42 = vadd.f32 %v2016_v9, %v1988_v0  ;;  %v2074_v11 = vpop.f32.mrf.mxu2 }
 0x96a   :  { %v2046_v10 = vadd.f32 %v2045_v63, %v2017_v42 }
 0x96c   :  { %v2075_v12 = vadd.f32 %v2074_v11, %v2046_v10 }
 0x96e   :  { %v2082_v28 = vadd.f32 %v2075_v12, %v3092_v55 }
 0x970   :  { %v2019_v57 = vpop.f32.mrf.mxu3  ;;  %2090 = vadd.xlane.f32.xlu0 %v2082_v28 }
 0x971   :  { %v2020_v15 = vadd.f32 %v2019_v57, %v1991_v14  ;;  %v2077_v16 = vpop.f32.mrf.mxu2 }
 0x973   :  { %v2049_v53 = vadd.f32 %v2048_v48, %v2020_v15 }
 0x975   :  { %v2078_v5 = vadd.f32 %v2077_v16, %v2049_v53 }
 0x977   :  { %v2083_v58 = vadd.f32 %v2078_v5, %v3106_v22 }
 0x979   :  { %2092 = vadd.xlane.f32.xlu2 %v2083_v58 }
 0x97b   :  { %v2087_v54 = vpop.xlane.xlu2 %2086 }
 0x97c   :  { %v2094_v17 = vmul.f32 %v2087_v54, %v3024_v51 }
 0x97e   :  { %v2098_v41 = vsub.f32 %v2080_v39, %v2094_v17 }
 0x980   :  { %v2102_v21 = vmul.f32 %v2098_v41, %v2098_v41 }
 0x982   :  { %2106 = vadd.xlane.f32.xlu1 %v2102_v21 }
 0x9c8   :  { %v2089_v36 = vpop.xlane.xlu1 %2088 }
 0x9c9   :  { %v2095_v55 = vmul.f32 %v2089_v36, %v3024_v51 }
 0x9cb   :  { %v2099_v24 = vsub.f32 %v2081_v25, %v2095_v55 }
 0x9cd   :  { %v2103_v27 = vmul.f32 %v2099_v24, %v2099_v24 }
 0x9cf   :  { %2108 = vadd.xlane.f32.xlu0 %v2103_v27 }
 0x9e3   :  { %v2091_v7 = vpop.xlane.xlu0 %2090 }
 0x9e4   :  { %v2096_v3 = vmul.f32 %v2091_v7, %v3024_v51 }
 0x9e6   :  { %v3163_v32 = vsub.f32 %v2082_v28, %v2096_v3 }
 0x9e8   :  { %v2104_v22 = vmul.f32 %v3163_v32, %v3163_v32 }
 0x9ea   :  { %2110 = vadd.xlane.f32.xlu2 %v2104_v22 }
 0x9ec   :  { %v2093_v38 = vpop.xlane.xlu2 %2092 }
 0x9ed   :  { %v2097_v23 = vmul.f32 %v2093_v38, %v3024_v51 }
 0x9ef   :  { %v3168_v40 = vsub.f32 %v2083_v58, %v2097_v23 }
 0x9f1   :  { %v2105_v13 = vmul.f32 %v3168_v40, %v3168_v40 }
 0x9f3   :  { %2112 = vadd.xlane.f32.xlu1 %v2105_v13 }
 0x9f5   :  { %v2107_v19 = vpop.xlane.xlu1 %2106 }
 0x9f6   :  { %v2114_v6 = vmul.f32 %v2107_v19, %v3024_v51 }
 0x9f8   :  { %v2118_v26 = vadd.f32 1e-05, %v2114_v6 }
 0x9fa   :  { %2414 = vrsqrt.f32 %v2118_v26  ;;  %vm2128_vm8 = vweird.f32 %v2118_v26 }
 0xa00   :  { %v2415_v44 = vpop.eup %2414 }
 0xa01   :  { %v2123_v46 = vmul.f32 %v2415_v44, %v2118_v26  ;;  %vm2129_vm7 = vweird.f32 %v2415_v44 }
 0xa02   :  { %vm2130_vm9 = vmor %vm2128_vm8, %vm2129_vm7 }
 0xa03   :  { %v2124_v8 = vmul.f32 %v2415_v44, %v2123_v46 }
 0xa05   :  { %v2125_v47 = vmul.f32 0.5, %v2124_v8 }
 0xa07   :  { %v2126_v37 = vsub.f32 1.5, %v2125_v47 }
 0xa09   :  { %v2127_v29 = vmul.f32 %v2415_v44, %v2126_v37 }
 0xa0b   :  { %v2131_v35 = vsel %vm2130_vm9, %v2415_v44, %v2127_v29 }
 0xa0c   :  { %v2162_v30 = vmul.f32 %v2131_v35, %v2098_v41 }
 0xa0e   :  { %v2169_v50 = vmul.f32 %v2306_v33, %v2162_v30 }
 0xa10   :  { %v2176_v52 = vadd.f32 %v2307_v18, %v2169_v50 }
 0xa12   :  { %2180 = vst [vmem:[%s3210_s14] sm:$0xff] %v2176_v52 }
 0xa42   :  { %v2109_v49 = vpop.xlane.xlu0 %2108 }
 0xa43   :  { %v2115_v20 = vmul.f32 %v2109_v49, %v3024_v51 }
 0xa45   :  { %v2119_v56 = vadd.f32 1e-05, %v2115_v20 }
 0xa47   :  { %2416 = vrsqrt.f32 %v2119_v56  ;;  %vm2138_vm1 = vweird.f32 %v2119_v56 }
 0xa4d   :  { %v2417_v45 = vpop.eup %2416 }
 0xa4e   :  { %v2133_v39 = vmul.f32 %v2417_v45, %v2119_v56  ;;  %vm2139_vm0 = vweird.f32 %v2417_v45 }
 0xa4f   :  { %vm2140_vm10 = vmor %vm2138_vm1, %vm2139_vm0 }
 0xa50   :  { %v2134_v59 = vmul.f32 %v2417_v45, %v2133_v39 }
 0xa52   :  { %v2135_v60 = vmul.f32 0.5, %v2134_v59 }
 0xa54   :  { %v2136_v61 = vsub.f32 1.5, %v2135_v60 }
 0xa56   :  { %v2137_v62 = vmul.f32 %v2417_v45, %v2136_v61 }
 0xa58   :  { %v2141_v1 = vsel %vm2140_vm10, %v2417_v45, %v2137_v62 }
 0xa59   :  { %v2163_v2 = vmul.f32 %v2141_v1, %v2099_v24 }
 0xa5b   :  { %v2170_v34 = vmul.f32 %v2306_v33, %v2163_v2 }
 0xa5d   :  { %v2177_v4 = vadd.f32 %v2307_v18, %v2170_v34  ;;  %v2111_v25 = vpop.xlane.xlu2 %2110 }
 0xa5e   :  { %v2116_v31 = vmul.f32 %v2111_v25, %v3024_v51 }
 0xa5f   :  { %2181 = vst [vmem:[%s3210_s14 + $0x8] sm:$0xff] %v2177_v4 }
 0xa60   :  { %v2120_v0 = vadd.f32 1e-05, %v2116_v31 }
 0xa62   :  { %2418 = vrsqrt.f32 %v2120_v0  ;;  %vm2148_vm12 = vweird.f32 %v2120_v0 }
 0xa66   :  { %v2113_v9 = vpop.xlane.xlu1 %2112 }
 0xa67   :  { %v2117_v63 = vmul.f32 %v2113_v9, %v3024_v51 }
 0xa68   :  { %v2419_v42 = vpop.eup %2418 }
 0xa69   :  { %v2143_v10 = vmul.f32 %v2419_v42, %v2120_v0  ;;  %v2121_v11 = vadd.f32 1e-05, %v2117_v63  ;;  %vm2149_vm11 = vweird.f32 %v2419_v42 }
 0xa6a   :  { %vm2150_vm13 = vmor %vm2148_vm12, %vm2149_vm11 }
 0xa6b   :  { %v2144_v43 = vmul.f32 %v2419_v42, %v2143_v10  ;;  %2420 = vrsqrt.f32 %v2121_v11  ;;  %vm2158_vm15 = vweird.f32 %v2121_v11 }
 0xa6d   :  { %v2145_v12 = vmul.f32 0.5, %v2144_v43 }
 0xa6f   :  { %v2146_v28 = vsub.f32 1.5, %v2145_v12 }
 0xa71   :  { %v2421_v14 = vpop.eup %2420  ;;  %v2147_v57 = vmul.f32 %v2419_v42, %v2146_v28 }
 0xa72   :  { %v2153_v15 = vmul.f32 %v2421_v14, %v2121_v11  ;;  %vm2159_vm14 = vweird.f32 %v2421_v14 }
 0xa73   :  { %v2151_v48 = vsel %vm2150_vm13, %v2419_v42, %v2147_v57  ;;  %vm2160_vm2 = vmor %vm2158_vm15, %vm2159_vm14 }
 0xa74   :  { %v2164_v53 = vmul.f32 %v2151_v48, %v3163_v32  ;;  %v2154_v16 = vmul.f32 %v2421_v14, %v2153_v15 }
 0xa76   :  { %v2171_v5 = vmul.f32 %v2306_v33, %v2164_v53  ;;  %v2155_v58 = vmul.f32 0.5, %v2154_v16 }
 0xa78   :  { %v2178_v51 = vadd.f32 %v2307_v18, %v2171_v5  ;;  %v2156_v54 = vsub.f32 1.5, %v2155_v58 }
 0xa7a   :  { %2182 = vst [vmem:[%s3210_s14 + $0x10] sm:$0xff] %v2178_v51  ;;  %v2157_v17 = vmul.f32 %v2421_v14, %v2156_v54 }
 0xa7c   :  { %v2161_v41 = vsel %vm2160_vm2, %v2421_v14, %v2157_v17 }
 0xa7d   :  { %v2165_v21 = vmul.f32 %v2161_v41, %v3168_v40 }
 0xa7f   :  { %v2172_v36 = vmul.f32 %v2306_v33, %v2165_v21 }
 0xa81   :  { %v2179_v55 = vadd.f32 %v2307_v18, %v2172_v36 }
 0xa83   :  { %2183 = vst [vmem:[%s3210_s14 + $0x18] sm:$0xff] %v2179_v55 }
 0xa84   :  { %2188 = vsyncpa [#allocation3], 1 }
 0xa85   :  { %2189 = vsyncpa [#allocation5], 1 }
 0xa86   :  { %2190 = vsyncpa [#allocation8], 1 }

</bundles_post_ra>
